<compile_context>
chip_gen: v7x
topology: tpu7x:2x2x1
jax: 0.10.0
libtpu: 0.0.40
codegen_flags: <defaults>
</compile_context>

<pallas_src>
import math
import functools

import jax
import jax.numpy as jnp
from jax.experimental import pallas as pl
from jax.experimental.pallas import tpu as pltpu


# ----------------------------------------------------------------------------
# helpers
# ----------------------------------------------------------------------------
def _layer_norm(y, w, b, eps=1e-5):
    # single-pass variance: E[x^2] - mu^2 (one cross-lane reduction, rsqrt -> EUP)
    mu = jnp.mean(y, axis=-1, keepdims=True)
    var = jnp.mean(y * y, axis=-1, keepdims=True) - mu * mu
    return (y - mu) * jax.lax.rsqrt(var + eps) * w + b


def _num_tensorcores():
    """Best-effort TensorCore count query; conservative fallback of 1."""
    try:
        info = pltpu.get_tpu_info()
    except Exception:
        return 1
    for attr in ("num_cores", "core_count", "num_tensorcores",
                 "tensor_cores_per_chip"):
        val = getattr(info, attr, None)
        if isinstance(val, int) and val > 0:
            return val
    return 1


def _pick_b_blocks(B, S):
    """Split the batch across TCs only when each block keeps >=256 matmul rows."""
    if B % 2 == 0 and (B // 2) * S >= 256 and _num_tensorcores() >= 2:
        return 2
    return 1


# ----------------------------------------------------------------------------
# Fused Pallas kernel: ALL encoder layers for a block of Bh sequences
# ----------------------------------------------------------------------------
def fused_encoder_kernel(
    x_ref,       # (Bh, S, E)  f32   activations
    wqkv_ref,    # (L, E, 3E)  bf16  in_proj_weight^T (q-cols pre-scaled by 1/sqrt(Dh))
    bqkv_ref,    # (L, 1, 3E)  f32   in_proj_bias     (q part pre-scaled)
    wo_ref,      # (L, E, E)   bf16  out_proj.weight^T
    bo_ref,      # (L, 1, E)   f32   out_proj.bias
    ln1w_ref,    # (L, 1, E)   f32   norm1.weight
    ln1b_ref,    # (L, 1, E)   f32   norm1.bias
    w1_ref,      # (L, E, F)   bf16  linear1.weight^T
    b1_ref,      # (L, 1, F)   f32   linear1.bias
    w2_ref,      # (L, F, E)   bf16  linear2.weight^T
    b2_ref,      # (L, 1, E)   f32   linear2.bias
    ln2w_ref,    # (L, 1, E)   f32   norm2.weight
    ln2b_ref,    # (L, 1, E)   f32   norm2.bias
    o_ref,       # (Bh, S, E)  f32
    *,
    nhead: int,
    num_layers: int,
):
    Bh, S, E = x_ref.shape
    H = nhead
    Dh = E // H
    M = Bh * S  # rows fed to every matmul (batch folded into M)

    # (Bh, S, E) -> (Bh*S, E): leading-dim collapse (layout-free when S % 8 == 0).
    x = x_ref[...].reshape(M, E).astype(jnp.float32)

    for l in range(num_layers):        # static unroll over fused layers
        # ---------------- QKV projection (bf16 MXU, f32 acc); scale pre-folded
        qkv = jnp.dot(x.astype(jnp.bfloat16), wqkv_ref[l],
                      preferred_element_type=jnp.float32) + bqkv_ref[l]  # (M, 3E)
        qkv3 = qkv.reshape(Bh, S, 3 * E)

        # ---- heads folded into the batch dim (head-major): (H*Bh, S, Dh) -----
        q_h = jnp.concatenate(
            [qkv3[:, :, h * Dh:(h + 1) * Dh] for h in range(H)], axis=0)
        k_h = jnp.concatenate(
            [qkv3[:, :, E + h * Dh:E + (h + 1) * Dh] for h in range(H)], axis=0)
        v_h = jnp.concatenate(
            [qkv3[:, :, 2 * E + h * Dh:2 * E + (h + 1) * Dh] for h in range(H)],
            axis=0)

        # ---- batched attention over all heads (2 MXU ops per layer) ----------
        s = jnp.einsum('bqd,bkd->bqk',
                       q_h.astype(jnp.bfloat16), k_h.astype(jnp.bfloat16),
                       preferred_element_type=jnp.float32)       # (H*Bh, S, S)
        s = s - jnp.max(s, axis=-1, keepdims=True)
        p = jnp.exp(s)
        p = p * pl.reciprocal(jnp.sum(p, axis=-1, keepdims=True), approx=True)
        ctx = jnp.einsum('bqk,bkd->bqd',
                         p.astype(jnp.bfloat16), v_h.astype(jnp.bfloat16),
                         preferred_element_type=jnp.float32)     # (H*Bh, S, Dh)

        # ---- heads back along lanes, ONE out-projection matmul ---------------
        ctx = jnp.concatenate(
            [ctx[h * Bh:(h + 1) * Bh] for h in range(H)], axis=-1)  # (Bh, S, E)
        attn = jnp.dot(ctx.reshape(M, E).astype(jnp.bfloat16), wo_ref[l],
                       preferred_element_type=jnp.float32) + bo_ref[l]  # (M, E)

        # ---------------- residual + LayerNorm1 -------------------------------
        y = _layer_norm(x + attn, ln1w_ref[l], ln1b_ref[l])

        # ---------------- feed-forward (relu) + residual + LayerNorm2 ---------
        hdn = jnp.dot(y.astype(jnp.bfloat16), w1_ref[l],
                      preferred_element_type=jnp.float32) + b1_ref[l]   # (M, F)
        hdn = jnp.maximum(hdn, 0.0)
        ff = jnp.dot(hdn.astype(jnp.bfloat16), w2_ref[l],
                     preferred_element_type=jnp.float32) + b2_ref[l]    # (M, E)
        x = _layer_norm(y + ff, ln2w_ref[l], ln2b_ref[l])

    o_ref[...] = x.reshape(Bh, S, E).astype(o_ref.dtype)


# ----------------------------------------------------------------------------
# pallas_call wrapper
# ----------------------------------------------------------------------------
def fused_temporal_encoder(x_bse, packed, nhead, num_layers, b_blocks=None):
    """Run all encoder layers on x_bse of shape (B, S, E) in one pallas_call."""
    B, S, E = x_bse.shape
    if b_blocks is None:
        b_blocks = _pick_b_blocks(B, S)
    if b_blocks < 1 or B % b_blocks != 0:
        b_blocks = 1
    Bh = B // b_blocks

    weight_list = [
        packed["wqkvT"], packed["bqkv"], packed["woT"], packed["bo"],
        packed["ln1w"], packed["ln1b"], packed["w1T"], packed["b1"],
        packed["w2T"], packed["b2"], packed["ln2w"], packed["ln2b"],
    ]

    def _const_spec(arr):
        # whole array resident in VMEM, same block for every grid step
        nd = arr.ndim
        return pl.BlockSpec(arr.shape, lambda b, _nd=nd: (0,) * _nd)

    return pl.pallas_call(
        functools.partial(fused_encoder_kernel, nhead=nhead,
                          num_layers=num_layers),
        out_shape=jax.ShapeDtypeStruct((B, S, E), jnp.float32),
        grid=(b_blocks,),
        in_specs=[pl.BlockSpec((Bh, S, E), lambda b: (b, 0, 0))]
        + [_const_spec(w) for w in weight_list],
        out_specs=pl.BlockSpec((Bh, S, E), lambda b: (b, 0, 0)),
        compiler_params=pltpu.CompilerParams(
            dimension_semantics=(
                ("parallel",) if b_blocks > 1 else ("arbitrary",))),
    )(x_bse, *weight_list)


# ----------------------------------------------------------------------------
# Host-side weight packing (done ONCE at load time, outside the jit hot path):
# stack layers, pre-transpose, cast matmul weights to bf16, fold softmax scale
# into the q rows of the in-projection weight AND bias.
# ----------------------------------------------------------------------------
def pack_layer_params(layer_params, nhead):
    E = layer_params[0]["wo"].shape[0]
    Dh = E // nhead
    scale = 1.0 / math.sqrt(Dh)

    def fold_q_scale_w(wqkv):                      # (3E, E) torch layout
        return jnp.concatenate([wqkv[:E] * scale, wqkv[E:]], axis=0)

    def fold_q_scale_b(bqkv):                      # (1, 3E)
        return jnp.concatenate([bqkv[:, :E] * scale, bqkv[:, E:]], axis=-1)

    def stack(key):
        return jnp.stack([p[key] for p in layer_params], axis=0)

    return {
        "wqkvT": jnp.stack([fold_q_scale_w(p["wqkv"]).T
                            for p in layer_params]).astype(jnp.bfloat16),
        "bqkv":  jnp.stack([fold_q_scale_b(p["bqkv"]) for p in layer_params]),
        "woT":   jnp.stack([p["wo"].T for p in layer_params]).astype(jnp.bfloat16),
        "bo":    stack("bo"),
        "ln1w":  stack("ln1w"),
        "ln1b":  stack("ln1b"),
        "w1T":   jnp.stack([p["w1"].T for p in layer_params]).astype(jnp.bfloat16),
        "b1":    stack("b1"),
        "w2T":   jnp.stack([p["w2"].T for p in layer_params]).astype(jnp.bfloat16),
        "b2":    stack("b2"),
        "ln2w":  stack("ln2w"),
        "ln2b":  stack("ln2b"),
    }


# ----------------------------------------------------------------------------
# TemporalTransformer forward (single transpose each way, packed weights in)
# ----------------------------------------------------------------------------
def temporal_transformer_forward(x, packed, nhead, num_layers, b_blocks=None):
    """x: (n, c, t, v) float32  ->  (n, c, t, v) float32."""
    n, c, t, v = x.shape
    # (n, c, t, v) -> (n, v, t, c) -> (n*v, t, c)  == torch's (t, n*v, c) batch
    xb = jnp.transpose(x, (0, 3, 2, 1)).reshape(n * v, t, c)
    out = fused_temporal_encoder(xb, packed, nhead, num_layers, b_blocks)
    # (n*v, t, c) -> (n, v, t, c) -> (n, c, t, v)
    return jnp.transpose(out.reshape(n, v, t, c), (0, 3, 2, 1))


# ----------------------------------------------------------------------------
# Pure-JAX f32 reference (follows the PyTorch permutes / layer math exactly)
# ----------------------------------------------------------------------------
def reference_forward(x, layer_params, nhead):
    n, c, t, v = x.shape
    xs = jnp.transpose(x, (2, 0, 3, 1)).reshape(t, n * v, c)   # (S, B, E)
    S, B, E = xs.shape
    H = nhead
    Dh = E // H
    y = xs
    for p in layer_params:
        qkv = y @ p["wqkv"].T + p["bqkv"][0]                   # (S, B, 3E)
        q, k, vv = qkv[..., :E], qkv[..., E:2 * E], qkv[..., 2 * E:]
        heads = []
        for h in range(H):
            hs, he = h * Dh, (h + 1) * Dh
            qh = q[..., hs:he] / math.sqrt(Dh)
            kh = k[..., hs:he]
            vh = vv[..., hs:he]
            s = jnp.einsum('qbd,kbd->bqk', qh, kh)
            pr = jax.nn.softmax(s, axis=-1)
            heads.append(jnp.einsum('bqk,kbd->qbd', pr, vh))
        attn = jnp.concatenate(heads, axis=-1) @ p["wo"].T + p["bo"][0]
        y1 = _layer_norm(y + attn, p["ln1w"][0], p["ln1b"][0])
        hdn = jnp.maximum(y1 @ p["w1"].T + p["b1"][0], 0.0)
        ff = hdn @ p["w2"].T + p["b2"][0]
        y = _layer_norm(y1 + ff, p["ln2w"][0], p["ln2b"][0])
    ys = y.reshape(t, n, v, c)
    return jnp.transpose(ys, (1, 3, 0, 2))


# ----------------------------------------------------------------------------
# Deterministic parameter initialization (PyTorch parameter shapes)
# ----------------------------------------------------------------------------
def init_layer_params(key, d_model, ff_hidden):
    ks = jax.random.split(key, 4)
    s = 0.02
    return {
        # MultiheadAttention
        "wqkv": s * jax.random.normal(ks[0], (3 * d_model, d_model), jnp.float32),
        "bqkv": jnp.zeros((1, 3 * d_model), jnp.float32),
        "wo":   s * jax.random.normal(ks[1], (d_model, d_model), jnp.float32),
        "bo":   jnp.zeros((1, d_model), jnp.float32),
        # LayerNorm 1
        "ln1w": jnp.ones((1, d_model), jnp.float32),
        "ln1b": jnp.zeros((1, d_model), jnp.float32),
        # Feed-forward
        "w1":   s * jax.random.normal(ks[2], (ff_hidden, d_model), jnp.float32),
        "b1":   jnp.zeros((1, ff_hidden), jnp.float32),
        "w2":   s * jax.random.normal(ks[3], (d_model, ff_hidden), jnp.float32),
        "b2":   jnp.zeros((1, d_model), jnp.float32),
        # LayerNorm 2
        "ln2w": jnp.ones((1, d_model), jnp.float32),
        "ln2b": jnp.zeros((1, d_model), jnp.float32),
    }


if __name__ == "__main__":
    # Small shapes consistent with the module's TemporalTransformer usage
    n, c, t, v = 2, 32, 8, 4          # batch, channels(=d_model), time, nodes
    nhead = 4
    ff_hidden_size = 64
    num_self_att_layers = 2

    key = jax.random.PRNGKey(0)
    k_x, k_p = jax.random.split(key)
    x = jax.random.normal(k_x, (n, c, t, v), jnp.float32)

    layer_keys = jax.random.split(k_p, num_self_att_layers)
    layer_params = [init_layer_params(k, c, ff_hidden_size) for k in layer_keys]

    # Pack weights ONCE at load time (stack/transpose/bf16/scale-fold not in hot path)
    packed = pack_layer_params(layer_params, nhead)

    fwd = jax.jit(functools.partial(temporal_transformer_forward,
                                    nhead=nhead,
                                    num_layers=num_self_att_layers))
    out = jax.block_until_ready(fwd(x, packed))

    assert out.shape == (n, c, t, v), out.shape
    assert out.dtype == jnp.float32
    assert bool(jnp.all(jnp.isfinite(out)))

    # loose tolerance: bf16 matmul operands + approx softmax reciprocal
    ref = reference_forward(x, layer_params, nhead)
    max_err = float(jnp.max(jnp.abs(out - ref)))
    assert max_err < 0.1, max_err

    print("KERNEL_OK")
</pallas_src>

<mosaic_0001>
module attributes {stable_mosaic.version = 11 : i64} {
  func.func @fused_encoder_kernel(%arg0: i32, %arg1: memref<8x8x32xf32, #tpu.memory_space<vmem>>, %arg2: memref<2x32x96xbf16, #tpu.memory_space<vmem>>, %arg3: memref<2x1x96xf32, #tpu.memory_space<vmem>>, %arg4: memref<2x32x32xbf16, #tpu.memory_space<vmem>>, %arg5: memref<2x1x32xf32, #tpu.memory_space<vmem>>, %arg6: memref<2x1x32xf32, #tpu.memory_space<vmem>>, %arg7: memref<2x1x32xf32, #tpu.memory_space<vmem>>, %arg8: memref<2x32x64xbf16, #tpu.memory_space<vmem>>, %arg9: memref<2x1x64xf32, #tpu.memory_space<vmem>>, %arg10: memref<2x64x32xbf16, #tpu.memory_space<vmem>>, %arg11: memref<2x1x32xf32, #tpu.memory_space<vmem>>, %arg12: memref<2x1x32xf32, #tpu.memory_space<vmem>>, %arg13: memref<2x1x32xf32, #tpu.memory_space<vmem>>, %arg14: memref<8x8x32xf32, #tpu.memory_space<vmem>>) attributes {dimension_semantics = [#tpu.dimension_semantics<arbitrary>], iteration_bounds = array<i64: 1>, scalar_prefetch = 0 : i64, scratch_operands = 0 : i64, tpu.core_type = #tpu.core_type<tc>, window_params = [{transform_indices = @transform_0, window_bounds = array<i64: 8, 8, 32>}, {pipeline_mode = #tpu.pipeline_mode<synchronous>, transform_indices = @transform_1, window_bounds = array<i64: 2, 32, 96>}, {pipeline_mode = #tpu.pipeline_mode<synchronous>, transform_indices = @transform_2, window_bounds = array<i64: 2, 1, 96>}, {pipeline_mode = #tpu.pipeline_mode<synchronous>, transform_indices = @transform_3, window_bounds = array<i64: 2, 32, 32>}, {pipeline_mode = #tpu.pipeline_mode<synchronous>, transform_indices = @transform_4, window_bounds = array<i64: 2, 1, 32>}, {pipeline_mode = #tpu.pipeline_mode<synchronous>, transform_indices = @transform_5, window_bounds = array<i64: 2, 1, 32>}, {pipeline_mode = #tpu.pipeline_mode<synchronous>, transform_indices = @transform_6, window_bounds = array<i64: 2, 1, 32>}, {pipeline_mode = #tpu.pipeline_mode<synchronous>, transform_indices = @transform_7, window_bounds = array<i64: 2, 32, 64>}, {pipeline_mode = #tpu.pipeline_mode<synchronous>, transform_indices = @transform_8, window_bounds = array<i64: 2, 1, 64>}, {pipeline_mode = #tpu.pipeline_mode<synchronous>, transform_indices = @transform_9, window_bounds = array<i64: 2, 64, 32>}, {pipeline_mode = #tpu.pipeline_mode<synchronous>, transform_indices = @transform_10, window_bounds = array<i64: 2, 1, 32>}, {pipeline_mode = #tpu.pipeline_mode<synchronous>, transform_indices = @transform_11, window_bounds = array<i64: 2, 1, 32>}, {pipeline_mode = #tpu.pipeline_mode<synchronous>, transform_indices = @transform_12, window_bounds = array<i64: 2, 1, 32>}, {transform_indices = @transform_13, window_bounds = array<i64: 8, 8, 32>}]} {
    %c0 = arith.constant 0 : index
    %c0_0 = arith.constant 0 : index
    %c0_1 = arith.constant 0 : index
    %0 = vector.load %arg1[%c0, %c0_0, %c0_1] : memref<8x8x32xf32, #tpu.memory_space<vmem>>, vector<8x8x32xf32>
    %1 = vector.shape_cast %0 : vector<8x8x32xf32> to vector<64x32xf32>
    %2 = arith.truncf %1 : vector<64x32xf32> to vector<64x32xbf16>
    %c0_2 = arith.constant 0 : index
    %c0_3 = arith.constant 0 : index
    %c0_4 = arith.constant 0 : index
    %3 = vector.load %arg2[%c0_2, %c0_3, %c0_4] : memref<2x32x96xbf16, #tpu.memory_space<vmem>>, vector<1x32x96xbf16>
    %4 = vector.shape_cast %3 : vector<1x32x96xbf16> to vector<32x96xbf16>
    %cst = arith.constant dense<0.000000e+00> : vector<64x96xf32>
    %5 = tpu.matmul %2, %4, %cst {dimension_numbers = #tpu.dot_dimension_numbers<[1], [0], [0], [1], [0, 0, 1, 1], [], []>} : vector<64x32xbf16>, vector<32x96xbf16>, vector<64x96xf32> -> vector<64x96xf32>
    %c0_5 = arith.constant 0 : index
    %c0_6 = arith.constant 0 : index
    %c0_7 = arith.constant 0 : index
    %6 = vector.load %arg3[%c0_5, %c0_6, %c0_7] : memref<2x1x96xf32, #tpu.memory_space<vmem>>, vector<1x1x96xf32>
    %7 = vector.shape_cast %6 : vector<1x1x96xf32> to vector<1x96xf32>
    %8 = vector.broadcast %7 : vector<1x96xf32> to vector<64x96xf32>
    %9 = arith.addf %5, %8 : vector<64x96xf32>
    %10 = vector.shape_cast %9 : vector<64x96xf32> to vector<8x8x96xf32>
    %11 = vector.extract_strided_slice %10 {offsets = [0, 0, 0], sizes = [8, 8, 8], strides = [1, 1, 1]} : vector<8x8x96xf32> to vector<8x8x8xf32>
    %12 = vector.extract_strided_slice %10 {offsets = [0, 0, 8], sizes = [8, 8, 8], strides = [1, 1, 1]} : vector<8x8x96xf32> to vector<8x8x8xf32>
    %13 = vector.extract_strided_slice %10 {offsets = [0, 0, 16], sizes = [8, 8, 8], strides = [1, 1, 1]} : vector<8x8x96xf32> to vector<8x8x8xf32>
    %14 = vector.extract_strided_slice %10 {offsets = [0, 0, 24], sizes = [8, 8, 8], strides = [1, 1, 1]} : vector<8x8x96xf32> to vector<8x8x8xf32>
    %15 = tpu.concatenate %11, %12, %13, %14 in 0 : vector<8x8x8xf32>, vector<8x8x8xf32>, vector<8x8x8xf32>, vector<8x8x8xf32> -> vector<32x8x8xf32>
    %16 = vector.extract_strided_slice %10 {offsets = [0, 0, 32], sizes = [8, 8, 8], strides = [1, 1, 1]} : vector<8x8x96xf32> to vector<8x8x8xf32>
    %17 = vector.extract_strided_slice %10 {offsets = [0, 0, 40], sizes = [8, 8, 8], strides = [1, 1, 1]} : vector<8x8x96xf32> to vector<8x8x8xf32>
    %18 = vector.extract_strided_slice %10 {offsets = [0, 0, 48], sizes = [8, 8, 8], strides = [1, 1, 1]} : vector<8x8x96xf32> to vector<8x8x8xf32>
    %19 = vector.extract_strided_slice %10 {offsets = [0, 0, 56], sizes = [8, 8, 8], strides = [1, 1, 1]} : vector<8x8x96xf32> to vector<8x8x8xf32>
    %20 = tpu.concatenate %16, %17, %18, %19 in 0 : vector<8x8x8xf32>, vector<8x8x8xf32>, vector<8x8x8xf32>, vector<8x8x8xf32> -> vector<32x8x8xf32>
    %21 = vector.extract_strided_slice %10 {offsets = [0, 0, 64], sizes = [8, 8, 8], strides = [1, 1, 1]} : vector<8x8x96xf32> to vector<8x8x8xf32>
    %22 = vector.extract_strided_slice %10 {offsets = [0, 0, 72], sizes = [8, 8, 8], strides = [1, 1, 1]} : vector<8x8x96xf32> to vector<8x8x8xf32>
    %23 = vector.extract_strided_slice %10 {offsets = [0, 0, 80], sizes = [8, 8, 8], strides = [1, 1, 1]} : vector<8x8x96xf32> to vector<8x8x8xf32>
    %24 = vector.extract_strided_slice %10 {offsets = [0, 0, 88], sizes = [8, 8, 8], strides = [1, 1, 1]} : vector<8x8x96xf32> to vector<8x8x8xf32>
    %25 = tpu.concatenate %21, %22, %23, %24 in 0 : vector<8x8x8xf32>, vector<8x8x8xf32>, vector<8x8x8xf32>, vector<8x8x8xf32> -> vector<32x8x8xf32>
    %26 = arith.truncf %15 : vector<32x8x8xf32> to vector<32x8x8xbf16>
    %27 = arith.truncf %20 : vector<32x8x8xf32> to vector<32x8x8xbf16>
    "tpu.trace_start"() <{level = 10 : i32, message = "bqd,bkd->bqk"}> : () -> ()
    %cst_8 = arith.constant dense<0.000000e+00> : vector<32x8x8xf32>
    %28 = tpu.matmul %26, %27, %cst_8 {dimension_numbers = #tpu.dot_dimension_numbers<[2], [2], [1], [1], [0, 0, 0, 1, 1, 1], [0], [0]>} : vector<32x8x8xbf16>, vector<32x8x8xbf16>, vector<32x8x8xf32> -> vector<32x8x8xf32>
    "tpu.trace_stop"() : () -> ()
    %cst_9 = arith.constant dense<0xFF800000> : vector<32x8xf32>
    %29 = vector.multi_reduction <maximumf>, %28, %cst_9 [2] : vector<32x8x8xf32> to vector<32x8xf32>
    %30 = vector.shape_cast %29 : vector<32x8xf32> to vector<32x8x1xf32>
    %31 = vector.broadcast %30 : vector<32x8x1xf32> to vector<32x8x8xf32>
    %32 = arith.subf %28, %31 : vector<32x8x8xf32>
    %33 = math.exp %32 : vector<32x8x8xf32>
    %cst_10 = arith.constant dense<0.000000e+00> : vector<32x8xf32>
    %34 = vector.multi_reduction <add>, %33, %cst_10 [2] : vector<32x8x8xf32> to vector<32x8xf32>
    %35 = vector.shape_cast %34 : vector<32x8xf32> to vector<32x8x1xf32>
    %36 = tpu.reciprocal %35 {approx = true} : vector<32x8x1xf32> -> vector<32x8x1xf32>
    %37 = vector.broadcast %36 : vector<32x8x1xf32> to vector<32x8x8xf32>
    %38 = arith.mulf %33, %37 : vector<32x8x8xf32>
    %39 = arith.truncf %38 : vector<32x8x8xf32> to vector<32x8x8xbf16>
    %40 = arith.truncf %25 : vector<32x8x8xf32> to vector<32x8x8xbf16>
    "tpu.trace_start"() <{level = 10 : i32, message = "bqk,bkd->bqd"}> : () -> ()
    %cst_11 = arith.constant dense<0.000000e+00> : vector<32x8x8xf32>
    %41 = tpu.matmul %39, %40, %cst_11 {dimension_numbers = #tpu.dot_dimension_numbers<[2], [1], [1], [2], [0, 0, 0, 1, 1, 2], [0], [0]>} : vector<32x8x8xbf16>, vector<32x8x8xbf16>, vector<32x8x8xf32> -> vector<32x8x8xf32>
    "tpu.trace_stop"() : () -> ()
    %42 = vector.extract_strided_slice %41 {offsets = [0, 0, 0], sizes = [8, 8, 8], strides = [1, 1, 1]} : vector<32x8x8xf32> to vector<8x8x8xf32>
    %43 = vector.extract_strided_slice %41 {offsets = [8, 0, 0], sizes = [8, 8, 8], strides = [1, 1, 1]} : vector<32x8x8xf32> to vector<8x8x8xf32>
    %44 = vector.extract_strided_slice %41 {offsets = [16, 0, 0], sizes = [8, 8, 8], strides = [1, 1, 1]} : vector<32x8x8xf32> to vector<8x8x8xf32>
    %45 = vector.extract_strided_slice %41 {offsets = [24, 0, 0], sizes = [8, 8, 8], strides = [1, 1, 1]} : vector<32x8x8xf32> to vector<8x8x8xf32>
    %46 = tpu.concatenate %42, %43, %44, %45 in 2 : vector<8x8x8xf32>, vector<8x8x8xf32>, vector<8x8x8xf32>, vector<8x8x8xf32> -> vector<8x8x32xf32>
    %47 = vector.shape_cast %46 : vector<8x8x32xf32> to vector<64x32xf32>
    %48 = arith.truncf %47 : vector<64x32xf32> to vector<64x32xbf16>
    %c0_12 = arith.constant 0 : index
    %c0_13 = arith.constant 0 : index
    %c0_14 = arith.constant 0 : index
    %49 = vector.load %arg4[%c0_12, %c0_13, %c0_14] : memref<2x32x32xbf16, #tpu.memory_space<vmem>>, vector<1x32x32xbf16>
    %50 = vector.shape_cast %49 : vector<1x32x32xbf16> to vector<32x32xbf16>
    %cst_15 = arith.constant dense<0.000000e+00> : vector<64x32xf32>
    %51 = tpu.matmul %48, %50, %cst_15 {dimension_numbers = #tpu.dot_dimension_numbers<[1], [0], [0], [1], [0, 0, 1, 1], [], []>} : vector<64x32xbf16>, vector<32x32xbf16>, vector<64x32xf32> -> vector<64x32xf32>
    %c0_16 = arith.constant 0 : index
    %c0_17 = arith.constant 0 : index
    %c0_18 = arith.constant 0 : index
    %52 = vector.load %arg5[%c0_16, %c0_17, %c0_18] : memref<2x1x32xf32, #tpu.memory_space<vmem>>, vector<1x1x32xf32>
    %53 = vector.shape_cast %52 : vector<1x1x32xf32> to vector<1x32xf32>
    %54 = vector.broadcast %53 : vector<1x32xf32> to vector<64x32xf32>
    %55 = arith.addf %51, %54 : vector<64x32xf32>
    %56 = arith.addf %1, %55 : vector<64x32xf32>
    %c0_19 = arith.constant 0 : index
    %c0_20 = arith.constant 0 : index
    %c0_21 = arith.constant 0 : index
    %57 = vector.load %arg6[%c0_19, %c0_20, %c0_21] : memref<2x1x32xf32, #tpu.memory_space<vmem>>, vector<1x1x32xf32>
    %58 = vector.shape_cast %57 : vector<1x1x32xf32> to vector<1x32xf32>
    %c0_22 = arith.constant 0 : index
    %c0_23 = arith.constant 0 : index
    %c0_24 = arith.constant 0 : index
    %59 = vector.load %arg7[%c0_22, %c0_23, %c0_24] : memref<2x1x32xf32, #tpu.memory_space<vmem>>, vector<1x1x32xf32>
    %60 = vector.shape_cast %59 : vector<1x1x32xf32> to vector<1x32xf32>
    %cst_25 = arith.constant dense<0.000000e+00> : vector<64xf32>
    %61 = vector.multi_reduction <add>, %56, %cst_25 [1] : vector<64x32xf32> to vector<64xf32>
    %62 = vector.shape_cast %61 : vector<64xf32> to vector<64x1xf32>
    %cst_26 = arith.constant 3.200000e+01 : f32
    %63 = vector.broadcast %cst_26 : f32 to vector<64x1xf32>
    %64 = arith.divf %62, %63 : vector<64x1xf32>
    %65 = arith.mulf %56, %56 : vector<64x32xf32>
    %cst_27 = arith.constant dense<0.000000e+00> : vector<64xf32>
    %66 = vector.multi_reduction <add>, %65, %cst_27 [1] : vector<64x32xf32> to vector<64xf32>
    %67 = vector.shape_cast %66 : vector<64xf32> to vector<64x1xf32>
    %cst_28 = arith.constant 3.200000e+01 : f32
    %68 = vector.broadcast %cst_28 : f32 to vector<64x1xf32>
    %69 = arith.divf %67, %68 : vector<64x1xf32>
    %70 = arith.mulf %64, %64 : vector<64x1xf32>
    %71 = arith.subf %69, %70 : vector<64x1xf32>
    %72 = vector.broadcast %64 : vector<64x1xf32> to vector<64x32xf32>
    %73 = arith.subf %56, %72 : vector<64x32xf32>
    %cst_29 = arith.constant 9.99999974E-6 : f32
    %74 = vector.broadcast %cst_29 : f32 to vector<64x1xf32>
    %75 = arith.addf %71, %74 : vector<64x1xf32>
    %76 = math.rsqrt %75 : vector<64x1xf32>
    %77 = vector.broadcast %76 : vector<64x1xf32> to vector<64x32xf32>
    %78 = arith.mulf %73, %77 : vector<64x32xf32>
    %79 = vector.broadcast %58 : vector<1x32xf32> to vector<64x32xf32>
    %80 = arith.mulf %78, %79 : vector<64x32xf32>
    %81 = vector.broadcast %60 : vector<1x32xf32> to vector<64x32xf32>
    %82 = arith.addf %80, %81 : vector<64x32xf32>
    %83 = arith.truncf %82 : vector<64x32xf32> to vector<64x32xbf16>
    %c0_30 = arith.constant 0 : index
    %c0_31 = arith.constant 0 : index
    %c0_32 = arith.constant 0 : index
    %84 = vector.load %arg8[%c0_30, %c0_31, %c0_32] : memref<2x32x64xbf16, #tpu.memory_space<vmem>>, vector<1x32x64xbf16>
    %85 = vector.shape_cast %84 : vector<1x32x64xbf16> to vector<32x64xbf16>
    %cst_33 = arith.constant dense<0.000000e+00> : vector<64x64xf32>
    %86 = tpu.matmul %83, %85, %cst_33 {dimension_numbers = #tpu.dot_dimension_numbers<[1], [0], [0], [1], [0, 0, 1, 1], [], []>} : vector<64x32xbf16>, vector<32x64xbf16>, vector<64x64xf32> -> vector<64x64xf32>
    %c0_34 = arith.constant 0 : index
    %c0_35 = arith.constant 0 : index
    %c0_36 = arith.constant 0 : index
    %87 = vector.load %arg9[%c0_34, %c0_35, %c0_36] : memref<2x1x64xf32, #tpu.memory_space<vmem>>, vector<1x1x64xf32>
    %88 = vector.shape_cast %87 : vector<1x1x64xf32> to vector<1x64xf32>
    %89 = vector.broadcast %88 : vector<1x64xf32> to vector<64x64xf32>
    %90 = arith.addf %86, %89 : vector<64x64xf32>
    %cst_37 = arith.constant 0.000000e+00 : f32
    %91 = vector.broadcast %cst_37 : f32 to vector<64x64xf32>
    %92 = arith.maximumf %90, %91 : vector<64x64xf32>
    %93 = arith.truncf %92 : vector<64x64xf32> to vector<64x64xbf16>
    %c0_38 = arith.constant 0 : index
    %c0_39 = arith.constant 0 : index
    %c0_40 = arith.constant 0 : index
    %94 = vector.load %arg10[%c0_38, %c0_39, %c0_40] : memref<2x64x32xbf16, #tpu.memory_space<vmem>>, vector<1x64x32xbf16>
    %95 = vector.shape_cast %94 : vector<1x64x32xbf16> to vector<64x32xbf16>
    %cst_41 = arith.constant dense<0.000000e+00> : vector<64x32xf32>
    %96 = tpu.matmul %93, %95, %cst_41 {dimension_numbers = #tpu.dot_dimension_numbers<[1], [0], [0], [1], [0, 0, 1, 1], [], []>} : vector<64x64xbf16>, vector<64x32xbf16>, vector<64x32xf32> -> vector<64x32xf32>
    %c0_42 = arith.constant 0 : index
    %c0_43 = arith.constant 0 : index
    %c0_44 = arith.constant 0 : index
    %97 = vector.load %arg11[%c0_42, %c0_43, %c0_44] : memref<2x1x32xf32, #tpu.memory_space<vmem>>, vector<1x1x32xf32>
    %98 = vector.shape_cast %97 : vector<1x1x32xf32> to vector<1x32xf32>
    %99 = vector.broadcast %98 : vector<1x32xf32> to vector<64x32xf32>
    %100 = arith.addf %96, %99 : vector<64x32xf32>
    %101 = arith.addf %82, %100 : vector<64x32xf32>
    %c0_45 = arith.constant 0 : index
    %c0_46 = arith.constant 0 : index
    %c0_47 = arith.constant 0 : index
    %102 = vector.load %arg12[%c0_45, %c0_46, %c0_47] : memref<2x1x32xf32, #tpu.memory_space<vmem>>, vector<1x1x32xf32>
    %103 = vector.shape_cast %102 : vector<1x1x32xf32> to vector<1x32xf32>
    %c0_48 = arith.constant 0 : index
    %c0_49 = arith.constant 0 : index
    %c0_50 = arith.constant 0 : index
    %104 = vector.load %arg13[%c0_48, %c0_49, %c0_50] : memref<2x1x32xf32, #tpu.memory_space<vmem>>, vector<1x1x32xf32>
    %105 = vector.shape_cast %104 : vector<1x1x32xf32> to vector<1x32xf32>
    %cst_51 = arith.constant dense<0.000000e+00> : vector<64xf32>
    %106 = vector.multi_reduction <add>, %101, %cst_51 [1] : vector<64x32xf32> to vector<64xf32>
    %107 = vector.shape_cast %106 : vector<64xf32> to vector<64x1xf32>
    %cst_52 = arith.constant 3.200000e+01 : f32
    %108 = vector.broadcast %cst_52 : f32 to vector<64x1xf32>
    %109 = arith.divf %107, %108 : vector<64x1xf32>
    %110 = arith.mulf %101, %101 : vector<64x32xf32>
    %cst_53 = arith.constant dense<0.000000e+00> : vector<64xf32>
    %111 = vector.multi_reduction <add>, %110, %cst_53 [1] : vector<64x32xf32> to vector<64xf32>
    %112 = vector.shape_cast %111 : vector<64xf32> to vector<64x1xf32>
    %cst_54 = arith.constant 3.200000e+01 : f32
    %113 = vector.broadcast %cst_54 : f32 to vector<64x1xf32>
    %114 = arith.divf %112, %113 : vector<64x1xf32>
    %115 = arith.mulf %109, %109 : vector<64x1xf32>
    %116 = arith.subf %114, %115 : vector<64x1xf32>
    %117 = vector.broadcast %109 : vector<64x1xf32> to vector<64x32xf32>
    %118 = arith.subf %101, %117 : vector<64x32xf32>
    %cst_55 = arith.constant 9.99999974E-6 : f32
    %119 = vector.broadcast %cst_55 : f32 to vector<64x1xf32>
    %120 = arith.addf %116, %119 : vector<64x1xf32>
    %121 = math.rsqrt %120 : vector<64x1xf32>
    %122 = vector.broadcast %121 : vector<64x1xf32> to vector<64x32xf32>
    %123 = arith.mulf %118, %122 : vector<64x32xf32>
    %124 = vector.broadcast %103 : vector<1x32xf32> to vector<64x32xf32>
    %125 = arith.mulf %123, %124 : vector<64x32xf32>
    %126 = vector.broadcast %105 : vector<1x32xf32> to vector<64x32xf32>
    %127 = arith.addf %125, %126 : vector<64x32xf32>
    %128 = arith.truncf %127 : vector<64x32xf32> to vector<64x32xbf16>
    %c1 = arith.constant 1 : index
    %c0_56 = arith.constant 0 : index
    %c0_57 = arith.constant 0 : index
    %129 = vector.load %arg2[%c1, %c0_56, %c0_57] : memref<2x32x96xbf16, #tpu.memory_space<vmem>>, vector<1x32x96xbf16>
    %130 = vector.shape_cast %129 : vector<1x32x96xbf16> to vector<32x96xbf16>
    %cst_58 = arith.constant dense<0.000000e+00> : vector<64x96xf32>
    %131 = tpu.matmul %128, %130, %cst_58 {dimension_numbers = #tpu.dot_dimension_numbers<[1], [0], [0], [1], [0, 0, 1, 1], [], []>} : vector<64x32xbf16>, vector<32x96xbf16>, vector<64x96xf32> -> vector<64x96xf32>
    %c1_59 = arith.constant 1 : index
    %c0_60 = arith.constant 0 : index
    %c0_61 = arith.constant 0 : index
    %132 = vector.load %arg3[%c1_59, %c0_60, %c0_61] : memref<2x1x96xf32, #tpu.memory_space<vmem>>, vector<1x1x96xf32>
    %133 = vector.shape_cast %132 : vector<1x1x96xf32> to vector<1x96xf32>
    %134 = vector.broadcast %133 : vector<1x96xf32> to vector<64x96xf32>
    %135 = arith.addf %131, %134 : vector<64x96xf32>
    %136 = vector.shape_cast %135 : vector<64x96xf32> to vector<8x8x96xf32>
    %137 = vector.extract_strided_slice %136 {offsets = [0, 0, 0], sizes = [8, 8, 8], strides = [1, 1, 1]} : vector<8x8x96xf32> to vector<8x8x8xf32>
    %138 = vector.extract_strided_slice %136 {offsets = [0, 0, 8], sizes = [8, 8, 8], strides = [1, 1, 1]} : vector<8x8x96xf32> to vector<8x8x8xf32>
    %139 = vector.extract_strided_slice %136 {offsets = [0, 0, 16], sizes = [8, 8, 8], strides = [1, 1, 1]} : vector<8x8x96xf32> to vector<8x8x8xf32>
    %140 = vector.extract_strided_slice %136 {offsets = [0, 0, 24], sizes = [8, 8, 8], strides = [1, 1, 1]} : vector<8x8x96xf32> to vector<8x8x8xf32>
    %141 = tpu.concatenate %137, %138, %139, %140 in 0 : vector<8x8x8xf32>, vector<8x8x8xf32>, vector<8x8x8xf32>, vector<8x8x8xf32> -> vector<32x8x8xf32>
    %142 = vector.extract_strided_slice %136 {offsets = [0, 0, 32], sizes = [8, 8, 8], strides = [1, 1, 1]} : vector<8x8x96xf32> to vector<8x8x8xf32>
    %143 = vector.extract_strided_slice %136 {offsets = [0, 0, 40], sizes = [8, 8, 8], strides = [1, 1, 1]} : vector<8x8x96xf32> to vector<8x8x8xf32>
    %144 = vector.extract_strided_slice %136 {offsets = [0, 0, 48], sizes = [8, 8, 8], strides = [1, 1, 1]} : vector<8x8x96xf32> to vector<8x8x8xf32>
    %145 = vector.extract_strided_slice %136 {offsets = [0, 0, 56], sizes = [8, 8, 8], strides = [1, 1, 1]} : vector<8x8x96xf32> to vector<8x8x8xf32>
    %146 = tpu.concatenate %142, %143, %144, %145 in 0 : vector<8x8x8xf32>, vector<8x8x8xf32>, vector<8x8x8xf32>, vector<8x8x8xf32> -> vector<32x8x8xf32>
    %147 = vector.extract_strided_slice %136 {offsets = [0, 0, 64], sizes = [8, 8, 8], strides = [1, 1, 1]} : vector<8x8x96xf32> to vector<8x8x8xf32>
    %148 = vector.extract_strided_slice %136 {offsets = [0, 0, 72], sizes = [8, 8, 8], strides = [1, 1, 1]} : vector<8x8x96xf32> to vector<8x8x8xf32>
    %149 = vector.extract_strided_slice %136 {offsets = [0, 0, 80], sizes = [8, 8, 8], strides = [1, 1, 1]} : vector<8x8x96xf32> to vector<8x8x8xf32>
    %150 = vector.extract_strided_slice %136 {offsets = [0, 0, 88], sizes = [8, 8, 8], strides = [1, 1, 1]} : vector<8x8x96xf32> to vector<8x8x8xf32>
    %151 = tpu.concatenate %147, %148, %149, %150 in 0 : vector<8x8x8xf32>, vector<8x8x8xf32>, vector<8x8x8xf32>, vector<8x8x8xf32> -> vector<32x8x8xf32>
    %152 = arith.truncf %141 : vector<32x8x8xf32> to vector<32x8x8xbf16>
    %153 = arith.truncf %146 : vector<32x8x8xf32> to vector<32x8x8xbf16>
    "tpu.trace_start"() <{level = 10 : i32, message = "bqd,bkd->bqk"}> : () -> ()
    %cst_62 = arith.constant dense<0.000000e+00> : vector<32x8x8xf32>
    %154 = tpu.matmul %152, %153, %cst_62 {dimension_numbers = #tpu.dot_dimension_numbers<[2], [2], [1], [1], [0, 0, 0, 1, 1, 1], [0], [0]>} : vector<32x8x8xbf16>, vector<32x8x8xbf16>, vector<32x8x8xf32> -> vector<32x8x8xf32>
    "tpu.trace_stop"() : () -> ()
    %cst_63 = arith.constant dense<0xFF800000> : vector<32x8xf32>
    %155 = vector.multi_reduction <maximumf>, %154, %cst_63 [2] : vector<32x8x8xf32> to vector<32x8xf32>
    %156 = vector.shape_cast %155 : vector<32x8xf32> to vector<32x8x1xf32>
    %157 = vector.broadcast %156 : vector<32x8x1xf32> to vector<32x8x8xf32>
    %158 = arith.subf %154, %157 : vector<32x8x8xf32>
    %159 = math.exp %158 : vector<32x8x8xf32>
    %cst_64 = arith.constant dense<0.000000e+00> : vector<32x8xf32>
    %160 = vector.multi_reduction <add>, %159, %cst_64 [2] : vector<32x8x8xf32> to vector<32x8xf32>
    %161 = vector.shape_cast %160 : vector<32x8xf32> to vector<32x8x1xf32>
    %162 = tpu.reciprocal %161 {approx = true} : vector<32x8x1xf32> -> vector<32x8x1xf32>
    %163 = vector.broadcast %162 : vector<32x8x1xf32> to vector<32x8x8xf32>
    %164 = arith.mulf %159, %163 : vector<32x8x8xf32>
    %165 = arith.truncf %164 : vector<32x8x8xf32> to vector<32x8x8xbf16>
    %166 = arith.truncf %151 : vector<32x8x8xf32> to vector<32x8x8xbf16>
    "tpu.trace_start"() <{level = 10 : i32, message = "bqk,bkd->bqd"}> : () -> ()
    %cst_65 = arith.constant dense<0.000000e+00> : vector<32x8x8xf32>
    %167 = tpu.matmul %165, %166, %cst_65 {dimension_numbers = #tpu.dot_dimension_numbers<[2], [1], [1], [2], [0, 0, 0, 1, 1, 2], [0], [0]>} : vector<32x8x8xbf16>, vector<32x8x8xbf16>, vector<32x8x8xf32> -> vector<32x8x8xf32>
    "tpu.trace_stop"() : () -> ()
    %168 = vector.extract_strided_slice %167 {offsets = [0, 0, 0], sizes = [8, 8, 8], strides = [1, 1, 1]} : vector<32x8x8xf32> to vector<8x8x8xf32>
    %169 = vector.extract_strided_slice %167 {offsets = [8, 0, 0], sizes = [8, 8, 8], strides = [1, 1, 1]} : vector<32x8x8xf32> to vector<8x8x8xf32>
    %170 = vector.extract_strided_slice %167 {offsets = [16, 0, 0], sizes = [8, 8, 8], strides = [1, 1, 1]} : vector<32x8x8xf32> to vector<8x8x8xf32>
    %171 = vector.extract_strided_slice %167 {offsets = [24, 0, 0], sizes = [8, 8, 8], strides = [1, 1, 1]} : vector<32x8x8xf32> to vector<8x8x8xf32>
    %172 = tpu.concatenate %168, %169, %170, %171 in 2 : vector<8x8x8xf32>, vector<8x8x8xf32>, vector<8x8x8xf32>, vector<8x8x8xf32> -> vector<8x8x32xf32>
    %173 = vector.shape_cast %172 : vector<8x8x32xf32> to vector<64x32xf32>
    %174 = arith.truncf %173 : vector<64x32xf32> to vector<64x32xbf16>
    %c1_66 = arith.constant 1 : index
    %c0_67 = arith.constant 0 : index
    %c0_68 = arith.constant 0 : index
    %175 = vector.load %arg4[%c1_66, %c0_67, %c0_68] : memref<2x32x32xbf16, #tpu.memory_space<vmem>>, vector<1x32x32xbf16>
    %176 = vector.shape_cast %175 : vector<1x32x32xbf16> to vector<32x32xbf16>
    %cst_69 = arith.constant dense<0.000000e+00> : vector<64x32xf32>
    %177 = tpu.matmul %174, %176, %cst_69 {dimension_numbers = #tpu.dot_dimension_numbers<[1], [0], [0], [1], [0, 0, 1, 1], [], []>} : vector<64x32xbf16>, vector<32x32xbf16>, vector<64x32xf32> -> vector<64x32xf32>
    %c1_70 = arith.constant 1 : index
    %c0_71 = arith.constant 0 : index
    %c0_72 = arith.constant 0 : index
    %178 = vector.load %arg5[%c1_70, %c0_71, %c0_72] : memref<2x1x32xf32, #tpu.memory_space<vmem>>, vector<1x1x32xf32>
    %179 = vector.shape_cast %178 : vector<1x1x32xf32> to vector<1x32xf32>
    %180 = vector.broadcast %179 : vector<1x32xf32> to vector<64x32xf32>
    %181 = arith.addf %177, %180 : vector<64x32xf32>
    %182 = arith.addf %127, %181 : vector<64x32xf32>
    %c1_73 = arith.constant 1 : index
    %c0_74 = arith.constant 0 : index
    %c0_75 = arith.constant 0 : index
    %183 = vector.load %arg6[%c1_73, %c0_74, %c0_75] : memref<2x1x32xf32, #tpu.memory_space<vmem>>, vector<1x1x32xf32>
    %184 = vector.shape_cast %183 : vector<1x1x32xf32> to vector<1x32xf32>
    %c1_76 = arith.constant 1 : index
    %c0_77 = arith.constant 0 : index
    %c0_78 = arith.constant 0 : index
    %185 = vector.load %arg7[%c1_76, %c0_77, %c0_78] : memref<2x1x32xf32, #tpu.memory_space<vmem>>, vector<1x1x32xf32>
    %186 = vector.shape_cast %185 : vector<1x1x32xf32> to vector<1x32xf32>
    %cst_79 = arith.constant dense<0.000000e+00> : vector<64xf32>
    %187 = vector.multi_reduction <add>, %182, %cst_79 [1] : vector<64x32xf32> to vector<64xf32>
    %188 = vector.shape_cast %187 : vector<64xf32> to vector<64x1xf32>
    %cst_80 = arith.constant 3.200000e+01 : f32
    %189 = vector.broadcast %cst_80 : f32 to vector<64x1xf32>
    %190 = arith.divf %188, %189 : vector<64x1xf32>
    %191 = arith.mulf %182, %182 : vector<64x32xf32>
    %cst_81 = arith.constant dense<0.000000e+00> : vector<64xf32>
    %192 = vector.multi_reduction <add>, %191, %cst_81 [1] : vector<64x32xf32> to vector<64xf32>
    %193 = vector.shape_cast %192 : vector<64xf32> to vector<64x1xf32>
    %cst_82 = arith.constant 3.200000e+01 : f32
    %194 = vector.broadcast %cst_82 : f32 to vector<64x1xf32>
    %195 = arith.divf %193, %194 : vector<64x1xf32>
    %196 = arith.mulf %190, %190 : vector<64x1xf32>
    %197 = arith.subf %195, %196 : vector<64x1xf32>
    %198 = vector.broadcast %190 : vector<64x1xf32> to vector<64x32xf32>
    %199 = arith.subf %182, %198 : vector<64x32xf32>
    %cst_83 = arith.constant 9.99999974E-6 : f32
    %200 = vector.broadcast %cst_83 : f32 to vector<64x1xf32>
    %201 = arith.addf %197, %200 : vector<64x1xf32>
    %202 = math.rsqrt %201 : vector<64x1xf32>
    %203 = vector.broadcast %202 : vector<64x1xf32> to vector<64x32xf32>
    %204 = arith.mulf %199, %203 : vector<64x32xf32>
    %205 = vector.broadcast %184 : vector<1x32xf32> to vector<64x32xf32>
    %206 = arith.mulf %204, %205 : vector<64x32xf32>
    %207 = vector.broadcast %186 : vector<1x32xf32> to vector<64x32xf32>
    %208 = arith.addf %206, %207 : vector<64x32xf32>
    %209 = arith.truncf %208 : vector<64x32xf32> to vector<64x32xbf16>
    %c1_84 = arith.constant 1 : index
    %c0_85 = arith.constant 0 : index
    %c0_86 = arith.constant 0 : index
    %210 = vector.load %arg8[%c1_84, %c0_85, %c0_86] : memref<2x32x64xbf16, #tpu.memory_space<vmem>>, vector<1x32x64xbf16>
    %211 = vector.shape_cast %210 : vector<1x32x64xbf16> to vector<32x64xbf16>
    %cst_87 = arith.constant dense<0.000000e+00> : vector<64x64xf32>
    %212 = tpu.matmul %209, %211, %cst_87 {dimension_numbers = #tpu.dot_dimension_numbers<[1], [0], [0], [1], [0, 0, 1, 1], [], []>} : vector<64x32xbf16>, vector<32x64xbf16>, vector<64x64xf32> -> vector<64x64xf32>
    %c1_88 = arith.constant 1 : index
    %c0_89 = arith.constant 0 : index
    %c0_90 = arith.constant 0 : index
    %213 = vector.load %arg9[%c1_88, %c0_89, %c0_90] : memref<2x1x64xf32, #tpu.memory_space<vmem>>, vector<1x1x64xf32>
    %214 = vector.shape_cast %213 : vector<1x1x64xf32> to vector<1x64xf32>
    %215 = vector.broadcast %214 : vector<1x64xf32> to vector<64x64xf32>
    %216 = arith.addf %212, %215 : vector<64x64xf32>
    %cst_91 = arith.constant 0.000000e+00 : f32
    %217 = vector.broadcast %cst_91 : f32 to vector<64x64xf32>
    %218 = arith.maximumf %216, %217 : vector<64x64xf32>
    %219 = arith.truncf %218 : vector<64x64xf32> to vector<64x64xbf16>
    %c1_92 = arith.constant 1 : index
    %c0_93 = arith.constant 0 : index
    %c0_94 = arith.constant 0 : index
    %220 = vector.load %arg10[%c1_92, %c0_93, %c0_94] : memref<2x64x32xbf16, #tpu.memory_space<vmem>>, vector<1x64x32xbf16>
    %221 = vector.shape_cast %220 : vector<1x64x32xbf16> to vector<64x32xbf16>
    %cst_95 = arith.constant dense<0.000000e+00> : vector<64x32xf32>
    %222 = tpu.matmul %219, %221, %cst_95 {dimension_numbers = #tpu.dot_dimension_numbers<[1], [0], [0], [1], [0, 0, 1, 1], [], []>} : vector<64x64xbf16>, vector<64x32xbf16>, vector<64x32xf32> -> vector<64x32xf32>
    %c1_96 = arith.constant 1 : index
    %c0_97 = arith.constant 0 : index
    %c0_98 = arith.constant 0 : index
    %223 = vector.load %arg11[%c1_96, %c0_97, %c0_98] : memref<2x1x32xf32, #tpu.memory_space<vmem>>, vector<1x1x32xf32>
    %224 = vector.shape_cast %223 : vector<1x1x32xf32> to vector<1x32xf32>
    %225 = vector.broadcast %224 : vector<1x32xf32> to vector<64x32xf32>
    %226 = arith.addf %222, %225 : vector<64x32xf32>
    %227 = arith.addf %208, %226 : vector<64x32xf32>
    %c1_99 = arith.constant 1 : index
    %c0_100 = arith.constant 0 : index
    %c0_101 = arith.constant 0 : index
    %228 = vector.load %arg12[%c1_99, %c0_100, %c0_101] : memref<2x1x32xf32, #tpu.memory_space<vmem>>, vector<1x1x32xf32>
    %229 = vector.shape_cast %228 : vector<1x1x32xf32> to vector<1x32xf32>
    %c1_102 = arith.constant 1 : index
    %c0_103 = arith.constant 0 : index
    %c0_104 = arith.constant 0 : index
    %230 = vector.load %arg13[%c1_102, %c0_103, %c0_104] : memref<2x1x32xf32, #tpu.memory_space<vmem>>, vector<1x1x32xf32>
    %231 = vector.shape_cast %230 : vector<1x1x32xf32> to vector<1x32xf32>
    %cst_105 = arith.constant dense<0.000000e+00> : vector<64xf32>
    %232 = vector.multi_reduction <add>, %227, %cst_105 [1] : vector<64x32xf32> to vector<64xf32>
    %233 = vector.shape_cast %232 : vector<64xf32> to vector<64x1xf32>
    %cst_106 = arith.constant 3.200000e+01 : f32
    %234 = vector.broadcast %cst_106 : f32 to vector<64x1xf32>
    %235 = arith.divf %233, %234 : vector<64x1xf32>
    %236 = arith.mulf %227, %227 : vector<64x32xf32>
    %cst_107 = arith.constant dense<0.000000e+00> : vector<64xf32>
    %237 = vector.multi_reduction <add>, %236, %cst_107 [1] : vector<64x32xf32> to vector<64xf32>
    %238 = vector.shape_cast %237 : vector<64xf32> to vector<64x1xf32>
    %cst_108 = arith.constant 3.200000e+01 : f32
    %239 = vector.broadcast %cst_108 : f32 to vector<64x1xf32>
    %240 = arith.divf %238, %239 : vector<64x1xf32>
    %241 = arith.mulf %235, %235 : vector<64x1xf32>
    %242 = arith.subf %240, %241 : vector<64x1xf32>
    %243 = vector.broadcast %235 : vector<64x1xf32> to vector<64x32xf32>
    %244 = arith.subf %227, %243 : vector<64x32xf32>
    %cst_109 = arith.constant 9.99999974E-6 : f32
    %245 = vector.broadcast %cst_109 : f32 to vector<64x1xf32>
    %246 = arith.addf %242, %245 : vector<64x1xf32>
    %247 = math.rsqrt %246 : vector<64x1xf32>
    %248 = vector.broadcast %247 : vector<64x1xf32> to vector<64x32xf32>
    %249 = arith.mulf %244, %248 : vector<64x32xf32>
    %250 = vector.broadcast %229 : vector<1x32xf32> to vector<64x32xf32>
    %251 = arith.mulf %249, %250 : vector<64x32xf32>
    %252 = vector.broadcast %231 : vector<1x32xf32> to vector<64x32xf32>
    %253 = arith.addf %251, %252 : vector<64x32xf32>
    %254 = vector.shape_cast %253 : vector<64x32xf32> to vector<8x8x32xf32>
    %c0_110 = arith.constant 0 : index
    %c0_111 = arith.constant 0 : index
    %c0_112 = arith.constant 0 : index
    %255 = vector.load %arg14[%c0_110, %c0_111, %c0_112] : memref<8x8x32xf32, #tpu.memory_space<vmem>>, vector<8x8x32xf32>
    tpu.vector_store %arg14[%c0_110, %c0_111, %c0_112], %254 {strides = array<i32>} : memref<8x8x32xf32, #tpu.memory_space<vmem>>, vector<8x8x32xf32>,
    return
  }
  func.func @transform_0(%arg0: i32) -> (i32, i32, i32) {
    %c0_i32 = arith.constant 0 : i32
    %c0_i32_0 = arith.constant 0 : i32
    %c0_i32_1 = arith.constant 0 : i32
    return %arg0, %c0_i32, %c0_i32_0 : i32, i32, i32
  }
  func.func @transform_1(%arg0: i32) -> (i32, i32, i32) {
    %c0_i32 = arith.constant 0 : i32
    %c0_i32_0 = arith.constant 0 : i32
    %c0_i32_1 = arith.constant 0 : i32
    %c0_i32_2 = arith.constant 0 : i32
    return %c0_i32, %c0_i32_0, %c0_i32_1 : i32, i32, i32
  }
  func.func @transform_2(%arg0: i32) -> (i32, i32, i32) {
    %c0_i32 = arith.constant 0 : i32
    %c0_i32_0 = arith.constant 0 : i32
    %c0_i32_1 = arith.constant 0 : i32
    %c0_i32_2 = arith.constant 0 : i32
    return %c0_i32, %c0_i32_0, %c0_i32_1 : i32, i32, i32
  }
  func.func @transform_3(%arg0: i32) -> (i32, i32, i32) {
    %c0_i32 = arith.constant 0 : i32
    %c0_i32_0 = arith.constant 0 : i32
    %c0_i32_1 = arith.constant 0 : i32
    %c0_i32_2 = arith.constant 0 : i32
    return %c0_i32, %c0_i32_0, %c0_i32_1 : i32, i32, i32
  }
  func.func @transform_4(%arg0: i32) -> (i32, i32, i32) {
    %c0_i32 = arith.constant 0 : i32
    %c0_i32_0 = arith.constant 0 : i32
    %c0_i32_1 = arith.constant 0 : i32
    %c0_i32_2 = arith.constant 0 : i32
    return %c0_i32, %c0_i32_0, %c0_i32_1 : i32, i32, i32
  }
  func.func @transform_5(%arg0: i32) -> (i32, i32, i32) {
    %c0_i32 = arith.constant 0 : i32
    %c0_i32_0 = arith.constant 0 : i32
    %c0_i32_1 = arith.constant 0 : i32
    %c0_i32_2 = arith.constant 0 : i32
    return %c0_i32, %c0_i32_0, %c0_i32_1 : i32, i32, i32
  }
  func.func @transform_6(%arg0: i32) -> (i32, i32, i32) {
    %c0_i32 = arith.constant 0 : i32
    %c0_i32_0 = arith.constant 0 : i32
    %c0_i32_1 = arith.constant 0 : i32
    %c0_i32_2 = arith.constant 0 : i32
    return %c0_i32, %c0_i32_0, %c0_i32_1 : i32, i32, i32
  }
  func.func @transform_7(%arg0: i32) -> (i32, i32, i32) {
    %c0_i32 = arith.constant 0 : i32
    %c0_i32_0 = arith.constant 0 : i32
    %c0_i32_1 = arith.constant 0 : i32
    %c0_i32_2 = arith.constant 0 : i32
    return %c0_i32, %c0_i32_0, %c0_i32_1 : i32, i32, i32
  }
  func.func @transform_8(%arg0: i32) -> (i32, i32, i32) {
    %c0_i32 = arith.constant 0 : i32
    %c0_i32_0 = arith.constant 0 : i32
    %c0_i32_1 = arith.constant 0 : i32
    %c0_i32_2 = arith.constant 0 : i32
    return %c0_i32, %c0_i32_0, %c0_i32_1 : i32, i32, i32
  }
  func.func @transform_9(%arg0: i32) -> (i32, i32, i32) {
    %c0_i32 = arith.constant 0 : i32
    %c0_i32_0 = arith.constant 0 : i32
    %c0_i32_1 = arith.constant 0 : i32
    %c0_i32_2 = arith.constant 0 : i32
    return %c0_i32, %c0_i32_0, %c0_i32_1 : i32, i32, i32
  }
  func.func @transform_10(%arg0: i32) -> (i32, i32, i32) {
    %c0_i32 = arith.constant 0 : i32
    %c0_i32_0 = arith.constant 0 : i32
    %c0_i32_1 = arith.constant 0 : i32
    %c0_i32_2 = arith.constant 0 : i32
    return %c0_i32, %c0_i32_0, %c0_i32_1 : i32, i32, i32
  }
  func.func @transform_11(%arg0: i32) -> (i32, i32, i32) {
    %c0_i32 = arith.constant 0 : i32
    %c0_i32_0 = arith.constant 0 : i32
    %c0_i32_1 = arith.constant 0 : i32
    %c0_i32_2 = arith.constant 0 : i32
    return %c0_i32, %c0_i32_0, %c0_i32_1 : i32, i32, i32
  }
  func.func @transform_12(%arg0: i32) -> (i32, i32, i32) {
    %c0_i32 = arith.constant 0 : i32
    %c0_i32_0 = arith.constant 0 : i32
    %c0_i32_1 = arith.constant 0 : i32
    %c0_i32_2 = arith.constant 0 : i32
    return %c0_i32, %c0_i32_0, %c0_i32_1 : i32, i32, i32
  }
  func.func @transform_13(%arg0: i32) -> (i32, i32, i32) {
    %c0_i32 = arith.constant 0 : i32
    %c0_i32_0 = arith.constant 0 : i32
    %c0_i32_1 = arith.constant 0 : i32
    return %arg0, %c0_i32, %c0_i32_0 : i32, i32, i32
  }
}

</mosaic_0001>

<bundles_post_ra>
// kernel: temporal_transformer_forward.1
= control target key start
LH: loop header
LB: loop body
LE: loop exit
PB: predicated region body
PF: predicated region fallthrough
CT: control target
= control target key end

     0   :  { %vm80_vm0 = vcmask 261120   ;;  %v13850_v14 = vmov 0.0   ;;  %s11043_s30 = smov 120   ;;  %vm11044_vm1 = vmmov 0   ;;  %s11045_s14 = smov 96   ;;  %vm273_vm2 = vcmask 64512   ;;  %s13836_s1 = inlined_call_operand.vmem [shape: bf16[2,32,96], index: 1, kind: input, shape index: {}]   ;;  %s13837_s0 = inlined_call_operand.vmem [shape: f32[8,8,32], index: 0, kind: input, shape index: {}]   ;;  %s13838_s2 = inlined_call_operand.vmem [shape: f32[2,1,96], index: 2, kind: input, shape index: {}]   ;;  %s13839_s3 = inlined_call_operand.vmem [shape: bf16[2,32,32], index: 3, kind: input, shape index: {}]   ;;  %s13840_s4 = inlined_call_operand.vmem [shape: f32[2,1,32], index: 4, kind: input, shape index: {}]   ;;  %s13841_s7 = inlined_call_operand.vmem [shape: bf16[2,32,64], index: 7, kind: input, shape index: {}]   ;;  %s13842_s9 = inlined_call_operand.vmem [shape: bf16[2,64,32], index: 9, kind: input, shape index: {}]   ;;  %s13843_s5 = inlined_call_operand.vmem [shape: f32[2,1,32], index: 5, kind: input, shape index: {}]   ;;  %s13844_s6 = inlined_call_operand.vmem [shape: f32[2,1,32], index: 6, kind: input, shape index: {}]   ;;  %s13845_s8 = inlined_call_operand.vmem [shape: f32[2,1,64], index: 8, kind: input, shape index: {}]   ;;  %s13846_s10 = inlined_call_operand.vmem [shape: f32[2,1,32], index: 10, kind: input, shape index: {}]   ;;  %s13847_s11 = inlined_call_operand.vmem [shape: f32[2,1,32], index: 11, kind: input, shape index: {}]   ;;  %s13848_s12 = inlined_call_operand.vmem [shape: f32[2,1,32], index: 12, kind: input, shape index: {}]   ;;  %s13849_s13 = inlined_call_operand.vmem [shape: f32[8,8,32], index: 13, kind: output, shape index: {}]  }
   0x1   :  { %v10694_v0 = vld [vmem:[%s13836_s1] sm:$0xff]   ;;  %v10695_v1 = vld [vmem:[%s13836_s1 + $0x8] sm:$0xff]   ;;  %v47_v7 = vld [vmem:[%s13837_s0 + $0x10] sm:$0xff]  ;;  %s11046_s15 = smov 112   ;;  %s11047_s16 = smov 104   ;;  %vm2228_vm3 = vcmask 1043456  }
   0x2   :  { %9568 = vmatprep.subr.bf16.mxu0 %v10694_v0  ;;  %10440 = vmatprep.subr.bf16.mxu1 %v10694_v0  ;;  %v45_v2 = vld [vmem:[%s13837_s0] sm:$0xff]  ;;  %v46_v3 = vld [vmem:[%s13837_s0 + $0x8] sm:$0xff]  ;;  %v48_v8 = vld [vmem:[%s13837_s0 + $0x18] sm:$0xff]  ;;  %s11048_s17 = smov 64   ;;  %s11049_s18 = smov 8   ;;  %vm3864_vm4 = vcmask 130048  }
   0x3   :  { %v49_v4 = vld [vmem:[%s13837_s0 + $0x20] sm:$0xff]  ;;  %9569 = vmatpush3.bf16.msra.mxu0 %v10694_v0  ;;  %10442 = vmatpush3.bf16.msra.mxu1 %v10694_v0  ;;  %v53_v5 = vpack.c.bf16 %v46_v3, %v45_v2  ;;  %v50_v6 = vld [vmem:[%s13837_s0 + $0x28] sm:$0xff]  ;;  %v51_v10 = vld [vmem:[%s13837_s0 + $0x30] sm:$0xff]  ;;  %v54_v12 = vpack.c.bf16 %v48_v8, %v47_v7  ;;  %s11050_s19 = smov 16   ;;  %s11051_s24 = smov 24   ;;  %vm3873_vm5 = vcmask 195584  }
   0x4   :  { %9570 = vmatprep.subr.bf16.mxu0 %v10695_v1  ;;  %10441 = vmatprep.subr.bf16.mxu1 %v10695_v1  ;;  %v55_v9 = vpack.c.bf16 %v50_v6, %v49_v4  ;;  %v52_v11 = vld [vmem:[%s13837_s0 + $0x38] sm:$0xff]  ;;  %v9036_v16 = vld [vmem:[%s13838_s2] ss:$0 sm:$0xff]  ;;  %vm4300_vm6 = vcmask 523264  }
   0x5   :  { %9572 = vmatprep.mubr.msk.bf16.mxu0 %vm80_vm0, %v53_v5  ;;  %v56_v13 = vpack.c.bf16 %v52_v11, %v51_v10 }
   0x6   :  { %9576 = vmatprep.mubr.msk.bf16.mxu1 %vm80_vm0, %v55_v9 }
   0x7   :  { %9571 = vmatpush3.bf16.msra.mxu0 %v10695_v1  ;;  %10443 = vmatpush3.bf16.msra.mxu1 %v10695_v1 }
   0x8   :  { %9580 = vmatprep.subr.bf16.mxu1 %v13850_v14  ;;  %9592 = vmatprep.subr.bf16.mxu0 %v13850_v14 }
   0xa   :  { %9573 = vmatmul.mubr.msk.bf16.vlgmr.msra.gmra.mrb[0].mxu0 %vm80_vm0, %v54_v12  ;;  %9577 = vmatmul.mubr.msk.bf16.vlgmr.msra.gmra.mrb[0].mxu1 %vm80_vm0, %v56_v13 }
   0xb   :  { %9582 = vmatprep.mubr.msk.bf16.mxu1 %vm11044_vm1, %v13850_v14  ;;  %9594 = vmatprep.mubr.msk.bf16.mxu0 %vm11044_vm1, %v13850_v14 }
  0xdd   :  { %v9574_v15 = vpop.f32.mrb[0].mxu0  ;;  %v9578_v17 = vpop.f32.mrb[0].mxu1 }
  0xde   :  { %v152_v18 = vadd.f32 %v9578_v17, %v9036_v16  ;;  %v127_v19 = vpop.f32.mrb[1].mxu0  ;;  %v143_v20 = vpop.f32.mrb[1].mxu1  ;;  %v136_v24 = vadd.f32 %v9574_v15, %v9036_v16 }
  0xdf   :  { %v144_v21 = vadd.f32 %v9036_v16, %v143_v20  ;;  %v9575_v22 = vpop.f32.mrb[2].mxu0  ;;  %v9579_v23 = vpop.f32.mrb[2].mxu1  ;;  %v128_v29 = vadd.f32 %v9036_v16, %v127_v19 }
  0xe0   :  { %v139_v25 = vadd.f32 %v9575_v22, %v9036_v16  ;;  %v155_v26 = vadd.f32 %v9579_v23, %v9036_v16  ;;  %v130_v27 = vpop.f32.mrb[3].mxu0  ;;  %v146_v28 = vpop.f32.mrb[3].mxu1  ;;  %v11186_v38 = vpack.c.bf16 %v136_v24, %v136_v24  ;;  %v11205_v42 = vpack.c.bf16 %v152_v18, %v152_v18 }
  0xe1   :  { %v131_v30 = vadd.f32 %v9036_v16, %v130_v27  ;;  %v147_v31 = vadd.f32 %v9036_v16, %v146_v28  ;;  %v11174_v36 = vpack.c.bf16 %v128_v29, %v128_v29  ;;  %v11197_v40 = vpack.c.bf16 %v144_v21, %v144_v21 }
  0xe2   :  { %v11161_v32 = vpack.i.bf16 %v139_v25, %v136_v24  ;;  %v11163_v33 = vpack.i.bf16 %v155_v26, %v152_v18  ;;  %v11191_v39 = vpack.c.bf16 %v139_v25, %v139_v25  ;;  %v11211_v43 = vpack.c.bf16 %v155_v26, %v155_v26 }
  0xe3   :  { %v11165_v34 = vpack.i.bf16 %v147_v31, %v144_v21  ;;  %v10454_v35 = vpack.i.bf16 %v131_v30, %v128_v29  ;;  %v11180_v37 = vpack.c.bf16 %v131_v30, %v131_v30  ;;  %v11199_v41 = vpack.c.bf16 %v147_v31, %v147_v31 }
  0xe5   :  { %10465 = vrot.lane.b32.xlu1 %v11165_v34, %s11043_s30  ;;  %10455 = vrot.lane.b32.xlu0 %v10454_v35, %s11043_s30 }
  0xe9   :  { %10460 = vrot.lane.b32.xlu0 %v11161_v32, %s11043_s30  ;;  %271 = vrot.lane.b32.xlu1 %v11174_v36, %s11045_s14 }
  0xed   :  { %10470 = vrot.lane.b32.xlu0 %v11163_v33, %s11043_s30  ;;  %321 = vrot.lane.b32.xlu1 %v11180_v37, %s11045_s14 }
  0xf1   :  { %10475 = vrot.lane.b32.xlu0 %v10454_v35, %s11046_s15  ;;  %370 = vrot.lane.b32.xlu1 %v11186_v38, %s11045_s14 }
  0xf5   :  { %419 = vrot.lane.b32.xlu0 %v11191_v39, %s11045_s14  ;;  %10480 = vrot.lane.b32.xlu1 %v11161_v32, %s11046_s15 }
  0xf9   :  { %468 = vrot.lane.b32.xlu0 %v11197_v40, %s11045_s14  ;;  %517 = vrot.lane.b32.xlu1 %v11199_v41, %s11045_s14 }
  0xfd   :  { %10485 = vrot.lane.b32.xlu0 %v11165_v34, %s11046_s15  ;;  %566 = vrot.lane.b32.xlu1 %v11205_v42, %s11045_s14 }
 0x101   :  { %615 = vrot.lane.b32.xlu0 %v11211_v43, %s11045_s14  ;;  %10490 = vrot.lane.b32.xlu1 %v11163_v33, %s11046_s15 }
 0x157   :  { %v10466_v44 = vpop.permute.xlu1 %10465  ;;  %v10456_v45 = vpop.permute.xlu0 %10455 }
 0x158   :  { %v10458_v46 = vunpack.i.h.bf16 %v10456_v45  ;;  %v10457_v47 = vunpack.i.l.bf16 %v10456_v45  ;;  %v10468_v58 = vunpack.i.h.bf16 %v10466_v44  ;;  %v10467_v59 = vunpack.i.l.bf16 %v10466_v44 }
 0x15a   :  { %v11217_v48 = vpack.c.bf16 %v10457_v47, %v10457_v47  ;;  %v11219_v49 = vpack.c.bf16 %v10458_v46, %v10458_v46  ;;  %v11239_v1 = vpack.c.bf16 %v10467_v59, %v10467_v59  ;;  %v11241_v2 = vpack.c.bf16 %v10468_v58, %v10468_v58 }
 0x15b   :  { %v10461_v50 = vpop.permute.xlu0 %10460  ;;  %v272_v51 = vpop.permute.xlu1 %271 }
 0x15c   :  { %v10462_v52 = vunpack.i.l.bf16 %v10461_v50  ;;  %v278_v53 = vsel %vm273_vm2, %v272_v51, 0  ;;  %664 = vrot.lane.b32.xlu0 %v11217_v48, %s11045_s14  ;;  %713 = vrot.lane.b32.xlu1 %v11219_v49, %s11045_s14  ;;  %v10463_v54 = vunpack.i.h.bf16 %v10461_v50 }
 0x15d   :  { %9581 = vmatpush3.bf16.xpose.msra.mxu1 %v278_v53 }
 0x15e   :  { %v11226_v55 = vpack.c.bf16 %v10462_v52, %v10462_v52  ;;  %9586 = vmatprep.subr.bf16.mxu1 %v13850_v14  ;;  %v11232_v60 = vpack.c.bf16 %v10463_v54, %v10463_v54 }
 0x15f   :  { %v10471_v56 = vpop.permute.xlu0 %10470  ;;  %v322_v57 = vpop.permute.xlu1 %321 }
 0x160   :  { %10495 = vrot.lane.b32.xlu0 %v10454_v35, %s11047_s16  ;;  %762 = vrot.lane.b32.xlu1 %v11226_v55, %s11045_s14  ;;  %v10472_v63 = vunpack.i.l.bf16 %v10471_v56  ;;  %v327_v3 = vsel %vm273_vm2, %v322_v57, 0  ;;  %v10473_v6 = vunpack.i.h.bf16 %v10471_v56 }
 0x162   :  { %v11254_v7 = vpack.c.bf16 %v10472_v63, %v10472_v63  ;;  %v11261_v11 = vpack.c.bf16 %v10473_v6, %v10473_v6 }
 0x163   :  { %v10476_v61 = vpop.permute.xlu0 %10475  ;;  %v371_v62 = vpop.permute.xlu1 %370 }
 0x164   :  { %v376_v0 = vsel %vm273_vm2, %v371_v62, 0  ;;  %811 = vrot.lane.b32.xlu0 %v11232_v60, %s11045_s14  ;;  %10500 = vrot.lane.b32.xlu1 %v11161_v32, %s11047_s16  ;;  %v10478_v13 = vunpack.i.h.bf16 %v10476_v61  ;;  %v10477_v15 = vunpack.i.l.bf16 %v10476_v61 }
 0x165   :  { %9583 = vmatmul.mubr.msk.bf16.vlgmr.msra.gmra.mrb[4].mxu1 %vm273_vm2, %v11174_v36  ;;  %9593 = vmatpush3.bf16.xpose.msra.mxu0 %v376_v0 }
 0x166   :  { %9587 = vmatpush3.bf16.xpose.msra.mxu1 %v327_v3  ;;  %9588 = vmatprep.mubr.msk.bf16.mxu1 %vm11044_vm1, %v13850_v14  ;;  %v11278_v19 = vpack.c.bf16 %v10477_v15, %v10477_v15  ;;  %v11280_v20 = vpack.c.bf16 %v10478_v13, %v10478_v13 }
 0x167   :  { %v420_v4 = vpop.permute.xlu0 %419  ;;  %v10481_v5 = vpop.permute.xlu1 %10480  ;;  %9598 = vmatprep.subr.bf16.mxu1 %v13850_v14  ;;  %9604 = vmatprep.subr.bf16.mxu0 %v13850_v14 }
 0x168   :  { %860 = vrot.lane.b32.xlu0 %v11239_v1, %s11045_s14  ;;  %909 = vrot.lane.b32.xlu1 %v11241_v2, %s11045_s14  ;;  %v425_v12 = vsel %vm273_vm2, %v420_v4, 0  ;;  %v10483_v17 = vunpack.i.h.bf16 %v10481_v5  ;;  %v10482_v18 = vunpack.i.l.bf16 %v10481_v5 }
 0x16a   :  { %v11292_v26 = vpack.c.bf16 %v10483_v17, %v10483_v17  ;;  %v11294_v27 = vpack.c.bf16 %v10482_v18, %v10482_v18 }
 0x16b   :  { %v469_v8 = vpop.permute.xlu0 %468  ;;  %v518_v9 = vpop.permute.xlu1 %517 }
 0x16c   :  { %v474_v10 = vsel %vm273_vm2, %v469_v8, 0  ;;  %10505 = vrot.lane.b32.xlu0 %v11165_v34, %s11047_s16  ;;  %958 = vrot.lane.b32.xlu1 %v11254_v7, %s11045_s14  ;;  %v523_v21 = vsel %vm273_vm2, %v518_v9, 0 }
 0x16d   :  { %9589 = vmatmul.mubr.msk.bf16.vlgmr.msra.gmra.mrb[8].mxu1 %vm273_vm2, %v11180_v37  ;;  %9595 = vmatmul.mubr.msk.bf16.vlgmr.msra.gmra.mrb[4].mxu0 %vm273_vm2, %v11186_v38 }
 0x16e   :  { %9599 = vmatpush3.bf16.xpose.msra.mxu1 %v425_v12  ;;  %9605 = vmatpush3.bf16.xpose.msra.mxu0 %v474_v10 }
 0x16f   :  { %9600 = vmatprep.mubr.msk.bf16.mxu1 %vm11044_vm1, %v13850_v14  ;;  %9606 = vmatprep.mubr.msk.bf16.mxu0 %vm11044_vm1, %v13850_v14  ;;  %v567_v16 = vpop.permute.xlu1 %566  ;;  %v10486_v23 = vpop.permute.xlu0 %10485 }
 0x170   :  { %1007 = vrot.lane.b32.xlu0 %v11261_v11, %s11045_s14  ;;  %10510 = vrot.lane.b32.xlu1 %v11163_v33, %s11047_s16  ;;  %v572_v22 = vsel %vm273_vm2, %v567_v16, 0  ;;  %v10488_v24 = vunpack.i.h.bf16 %v10486_v23  ;;  %v10487_v25 = vunpack.i.l.bf16 %v10486_v23 }
 0x171   :  { %9610 = vmatprep.subr.bf16.mxu1 %v13850_v14  ;;  %9616 = vmatprep.subr.bf16.mxu0 %v13850_v14 }
 0x172   :  { %v11306_v32 = vpack.c.bf16 %v10488_v24, %v10488_v24  ;;  %v11308_v33 = vpack.c.bf16 %v10487_v25, %v10487_v25 }
 0x173   :  { %v10491_v28 = vpop.permute.xlu1 %10490  ;;  %v616_v29 = vpop.permute.xlu0 %615 }
 0x174   :  { %1056 = vrot.lane.b32.xlu0 %v11278_v19, %s11045_s14  ;;  %1105 = vrot.lane.b32.xlu1 %v11280_v20, %s11045_s14  ;;  %v10493_v30 = vunpack.i.h.bf16 %v10491_v28  ;;  %v10492_v31 = vunpack.i.l.bf16 %v10491_v28  ;;  %v621_v34 = vsel %vm273_vm2, %v616_v29, 0 }
 0x175   :  { %9601 = vmatmul.mubr.msk.bf16.vlgmr.msra.gmra.mrb[12].mxu1 %vm273_vm2, %v11191_v39  ;;  %9607 = vmatmul.mubr.msk.bf16.vlgmr.msra.gmra.mrb[8].mxu0 %vm273_vm2, %v11197_v40 }
 0x176   :  { %9611 = vmatpush3.bf16.xpose.msra.mxu1 %v523_v21  ;;  %9617 = vmatpush3.bf16.xpose.msra.mxu0 %v572_v22  ;;  %v11319_v35 = vpack.c.bf16 %v10493_v30, %v10493_v30  ;;  %v11321_v44 = vpack.c.bf16 %v10492_v31, %v10492_v31 }
 0x177   :  { %9612 = vmatprep.mubr.msk.bf16.mxu1 %vm11044_vm1, %v13850_v14  ;;  %9618 = vmatprep.mubr.msk.bf16.mxu0 %vm11044_vm1, %v13850_v14 }
 0x178   :  { %1203 = vrot.lane.b32.xlu1 %v11292_v26, %s11045_s14  ;;  %1154 = vrot.lane.b32.xlu0 %v11294_v27, %s11045_s14 }
 0x179   :  { %9622 = vmatprep.subr.bf16.mxu1 %v13850_v14  ;;  %9628 = vmatprep.subr.bf16.mxu0 %v13850_v14 }
 0x17c   :  { %1301 = vrot.lane.b32.xlu1 %v11306_v32, %s11045_s14  ;;  %1252 = vrot.lane.b32.xlu0 %v11308_v33, %s11045_s14 }
 0x17d   :  { %9613 = vmatmul.mubr.msk.bf16.vlgmr.msra.gmra.mrb[16].mxu1 %vm273_vm2, %v11199_v41  ;;  %9619 = vmatmul.mubr.msk.bf16.vlgmr.msra.gmra.mrb[12].mxu0 %vm273_vm2, %v11205_v42 }
 0x17e   :  { %9623 = vmatpush3.bf16.xpose.msra.mxu1 %v621_v34  ;;  %9624 = vmatprep.mubr.msk.bf16.mxu1 %vm11044_vm1, %v13850_v14 }
 0x17f   :  { %9634 = vmatprep.subr.bf16.mxu1 %v13850_v14  ;;  %9630 = vmatprep.mubr.msk.bf16.mxu0 %vm11044_vm1, %v13850_v14 }
 0x180   :  { %1399 = vrot.lane.b32.xlu1 %v11319_v35, %s11045_s14  ;;  %1350 = vrot.lane.b32.xlu0 %v11321_v44, %s11045_s14 }
 0x185   :  { %9625 = vmatmul.mubr.msk.bf16.vlgmr.msra.gmra.mrb[20].mxu1 %vm273_vm2, %v11211_v43 }
 0x186   :  { %9636 = vmatprep.mubr.msk.bf16.mxu1 %vm11044_vm1, %v13850_v14 }
 0x1ce   :  { %v665_v45 = vpop.permute.xlu0 %664  ;;  %v714_v46 = vpop.permute.xlu1 %713 }
 0x1cf   :  { %v670_v47 = vsel %vm273_vm2, %v665_v45, 0  ;;  %v719_v50 = vsel %vm273_vm2, %v714_v46, 0 }
 0x1d0   :  { %9629 = vmatpush3.bf16.xpose.msra.mxu0 %v670_v47  ;;  %9635 = vmatpush3.bf16.xpose.msra.mxu1 %v719_v50 }
 0x1d1   :  { %9640 = vmatprep.subr.bf16.mxu0 %v13850_v14  ;;  %9646 = vmatprep.subr.bf16.mxu1 %v13850_v14 }
 0x1d2   :  { %v10496_v51 = vpop.permute.xlu0 %10495  ;;  %v763_v52 = vpop.permute.xlu1 %762 }
 0x1d3   :  { %v10498_v53 = vunpack.i.h.bf16 %v10496_v51  ;;  %v10497_v54 = vunpack.i.l.bf16 %v10496_v51  ;;  %v768_v0 = vsel %vm273_vm2, %v763_v52, 0 }
 0x1d5   :  { %v11340_v56 = vpack.c.bf16 %v10498_v53, %v10498_v53  ;;  %v11342_v57 = vpack.c.bf16 %v10497_v54, %v10497_v54 }
 0x1d6   :  { %v812_v58 = vpop.permute.xlu0 %811  ;;  %v10501_v59 = vpop.permute.xlu1 %10500 }
 0x1d7   :  { %v817_v61 = vsel %vm273_vm2, %v812_v58, 0  ;;  %v10503_v62 = vunpack.i.h.bf16 %v10501_v59  ;;  %v10502_v63 = vunpack.i.l.bf16 %v10501_v59  ;;  %9631 = vmatmul.mubr.msk.bf16.vlgmr.msra.gmra.mrb[16].mxu0 %vm273_vm2, %v11217_v48  ;;  %9637 = vmatmul.mubr.msk.bf16.vlgmr.msra.gmra.mrb[24].mxu1 %vm273_vm2, %v11219_v49 }
 0x1d8   :  { %1497 = vrot.lane.b32.xlu1 %v11340_v56, %s11045_s14  ;;  %1448 = vrot.lane.b32.xlu0 %v11342_v57, %s11045_s14 }
 0x1d9   :  { %9641 = vmatpush3.bf16.xpose.msra.mxu0 %v768_v0  ;;  %9647 = vmatpush3.bf16.xpose.msra.mxu1 %v817_v61  ;;  %v11354_v3 = vpack.c.bf16 %v10503_v62, %v10503_v62  ;;  %v11356_v4 = vpack.c.bf16 %v10502_v63, %v10502_v63 }
 0x1da   :  { %v861_v5 = vpop.permute.xlu0 %860  ;;  %v910_v6 = vpop.permute.xlu1 %909  ;;  %9642 = vmatprep.mubr.msk.bf16.mxu0 %vm11044_vm1, %v13850_v14  ;;  %9648 = vmatprep.mubr.msk.bf16.mxu1 %vm11044_vm1, %v13850_v14 }
 0x1db   :  { %9652 = vmatprep.subr.bf16.mxu0 %v13850_v14  ;;  %9658 = vmatprep.subr.bf16.mxu1 %v13850_v14  ;;  %v866_v8 = vsel %vm273_vm2, %v861_v5, 0  ;;  %v915_v9 = vsel %vm273_vm2, %v910_v6, 0 }
 0x1dc   :  { %1595 = vrot.lane.b32.xlu1 %v11354_v3, %s11045_s14  ;;  %1546 = vrot.lane.b32.xlu0 %v11356_v4, %s11045_s14 }
 0x1de   :  { %v10506_v10 = vpop.permute.xlu0 %10505  ;;  %v959_v12 = vpop.permute.xlu1 %958 }
 0x1df   :  { %v10508_v13 = vunpack.i.h.bf16 %v10506_v10  ;;  %v10507_v15 = vunpack.i.l.bf16 %v10506_v10  ;;  %v964_v28 = vsel %vm273_vm2, %v959_v12, 0 }
 0x1e0   :  { %9643 = vmatmul.mubr.msk.bf16.vlgmr.msra.gmra.mrb[20].mxu0 %vm273_vm2, %v11226_v55  ;;  %9649 = vmatmul.mubr.msk.bf16.vlgmr.msra.gmra.mrb[28].mxu1 %vm273_vm2, %v11232_v60 }
 0x1e1   :  { %9653 = vmatpush3.bf16.xpose.msra.mxu0 %v866_v8  ;;  %9659 = vmatpush3.bf16.xpose.msra.mxu1 %v915_v9  ;;  %v11374_v16 = vpack.c.bf16 %v10508_v13, %v10508_v13  ;;  %v11376_v17 = vpack.c.bf16 %v10507_v15, %v10507_v15 }
 0x1e2   :  { %v10511_v18 = vpop.permute.xlu1 %10510  ;;  %9654 = vmatprep.mubr.msk.bf16.mxu0 %vm11044_vm1, %v13850_v14  ;;  %9660 = vmatprep.mubr.msk.bf16.mxu1 %vm11044_vm1, %v13850_v14  ;;  %v1008_v23 = vpop.permute.xlu0 %1007 }
 0x1e3   :  { %v10513_v21 = vunpack.i.h.bf16 %v10511_v18  ;;  %v10512_v22 = vunpack.i.l.bf16 %v10511_v18  ;;  %1693 = vrot.lane.b32.xlu1 %v11374_v16, %s11045_s14  ;;  %1644 = vrot.lane.b32.xlu0 %v11376_v17, %s11045_s14  ;;  %v1013_v29 = vsel %vm273_vm2, %v1008_v23, 0 }
 0x1e4   :  { %9664 = vmatprep.subr.bf16.mxu0 %v13850_v14  ;;  %9670 = vmatprep.subr.bf16.mxu1 %v13850_v14 }
 0x1e5   :  { %v11388_v24 = vpack.c.bf16 %v10513_v21, %v10513_v21  ;;  %v11390_v25 = vpack.c.bf16 %v10512_v22, %v10512_v22 }
 0x1e6   :  { %v1057_v30 = vpop.permute.xlu0 %1056  ;;  %v1106_v31 = vpop.permute.xlu1 %1105 }
 0x1e7   :  { %13864 = vst [vmem:[#allocation2_spill] sm:$0xff] %v11388_v24  ;;  %13865 = vst [vmem:[#allocation3_spill] sm:$0xff] %v11390_v25  ;;  %1791 = vrot.lane.b32.xlu1 %v11388_v24, %s11045_s14  ;;  %1742 = vrot.lane.b32.xlu0 %v11390_v25, %s11045_s14  ;;  %v1062_v34 = vsel %vm273_vm2, %v1057_v30, 0  ;;  %v1111_v45 = vsel %vm273_vm2, %v1106_v31, 0 }
 0x1e8   :  { %9655 = vmatmul.mubr.msk.bf16.vlgmr.msra.gmra.mrb[24].mxu0 %vm273_vm2, %v11239_v1  ;;  %9661 = vmatmul.mubr.msk.bf16.vlgmr.msra.gmra.mrb[32].mxu1 %vm273_vm2, %v11241_v2 }
 0x1e9   :  { %9665 = vmatpush3.bf16.xpose.msra.mxu0 %v964_v28  ;;  %9671 = vmatpush3.bf16.xpose.msra.mxu1 %v1013_v29 }
 0x1ea   :  { %9666 = vmatprep.mubr.msk.bf16.mxu0 %vm11044_vm1, %v13850_v14  ;;  %9672 = vmatprep.mubr.msk.bf16.mxu1 %vm11044_vm1, %v13850_v14 }
 0x1eb   :  { %2223 = vrot.lane.b32.xlu1 %v11174_v36, %s11048_s17  ;;  %2272 = vrot.lane.b32.xlu0 %v11180_v37, %s11048_s17  ;;  %v1204_v36 = vpop.permute.xlu1 %1203  ;;  %v1155_v37 = vpop.permute.xlu0 %1154 }
 0x1ec   :  { %9676 = vmatprep.subr.bf16.mxu0 %v13850_v14  ;;  %9682 = vmatprep.subr.bf16.mxu1 %v13850_v14 }
 0x1ef   :  { %2320 = vrot.lane.b32.xlu1 %v11186_v38, %s11048_s17  ;;  %2368 = vrot.lane.b32.xlu0 %v11191_v39, %s11048_s17  ;;  %v1209_v38 = vsel %vm273_vm2, %v1204_v36, 0  ;;  %v1160_v39 = vsel %vm273_vm2, %v1155_v37, 0 }
 0x1f0   :  { %9667 = vmatmul.mubr.msk.bf16.vlgmr.msra.gmra.mrb[28].mxu0 %vm273_vm2, %v11254_v7  ;;  %9673 = vmatmul.mubr.msk.bf16.vlgmr.msra.gmra.mrb[36].mxu1 %vm273_vm2, %v11261_v11 }
 0x1f1   :  { %9677 = vmatpush3.bf16.xpose.msra.mxu0 %v1062_v34  ;;  %9683 = vmatpush3.bf16.xpose.msra.mxu1 %v1111_v45 }
 0x1f2   :  { %9678 = vmatprep.mubr.msk.bf16.mxu0 %vm11044_vm1, %v13850_v14  ;;  %9684 = vmatprep.mubr.msk.bf16.mxu1 %vm11044_vm1, %v13850_v14 }
 0x1f3   :  { %2416 = vrot.lane.b32.xlu1 %v11197_v40, %s11048_s17  ;;  %2464 = vrot.lane.b32.xlu0 %v11199_v41, %s11048_s17  ;;  %v1302_v40 = vpop.permute.xlu1 %1301  ;;  %v1253_v41 = vpop.permute.xlu0 %1252 }
 0x1f4   :  { %9688 = vmatprep.subr.bf16.mxu0 %v13850_v14  ;;  %9694 = vmatprep.subr.bf16.mxu1 %v13850_v14 }
 0x1f7   :  { %2512 = vrot.lane.b32.xlu1 %v11205_v42, %s11048_s17  ;;  %2560 = vrot.lane.b32.xlu0 %v11211_v43, %s11048_s17  ;;  %v1307_v42 = vsel %vm273_vm2, %v1302_v40, 0  ;;  %v1258_v43 = vsel %vm273_vm2, %v1253_v41, 0 }
 0x1f8   :  { %9679 = vmatmul.mubr.msk.bf16.vlgmr.msra.gmra.mrb[32].mxu0 %vm273_vm2, %v11278_v19  ;;  %9685 = vmatmul.mubr.msk.bf16.vlgmr.msra.gmra.mrb[40].mxu1 %vm273_vm2, %v11280_v20 }
 0x1f9   :  { %9689 = vmatpush3.bf16.xpose.msra.mxu0 %v1160_v39  ;;  %9695 = vmatpush3.bf16.xpose.msra.mxu1 %v1209_v38 }
 0x1fa   :  { %9690 = vmatprep.mubr.msk.bf16.mxu0 %vm11044_vm1, %v13850_v14  ;;  %9696 = vmatprep.mubr.msk.bf16.mxu1 %vm11044_vm1, %v13850_v14 }
 0x1fb   :  { %2608 = vrot.lane.b32.xlu1 %v11217_v48, %s11048_s17  ;;  %2752 = vrot.lane.b32.xlu0 %v11232_v60, %s11048_s17  ;;  %v1400_v48 = vpop.permute.xlu1 %1399 }
 0x1fc   :  { %9706 = vmatprep.subr.bf16.mxu1 %v13850_v14  ;;  %9700 = vmatprep.subr.bf16.mxu0 %v13850_v14  ;;  %v1405_v60 = vsel %vm273_vm2, %v1400_v48, 0 }
 0x1ff   :  { %2704 = vrot.lane.b32.xlu1 %v11226_v55, %s11048_s17  ;;  %2944 = vrot.lane.b32.xlu0 %v11261_v11, %s11048_s17  ;;  %v1351_v55 = vpop.permute.xlu0 %1350 }
 0x200   :  { %9697 = vmatmul.mubr.msk.bf16.vlgmr.msra.gmra.mrb[44].mxu1 %vm273_vm2, %v11292_v26  ;;  %9691 = vmatmul.mubr.msk.bf16.vlgmr.msra.gmra.mrb[36].mxu0 %vm273_vm2, %v11294_v27  ;;  %v1356_v11 = vsel %vm273_vm2, %v1351_v55, 0 }
 0x201   :  { %9701 = vmatpush3.bf16.xpose.msra.mxu0 %v1258_v43  ;;  %9707 = vmatpush3.bf16.xpose.msra.mxu1 %v1307_v42 }
 0x202   :  { %9702 = vmatprep.mubr.msk.bf16.mxu0 %vm11044_vm1, %v13850_v14  ;;  %9708 = vmatprep.mubr.msk.bf16.mxu1 %vm11044_vm1, %v13850_v14 }
 0x203   :  { %2800 = vrot.lane.b32.xlu1 %v11239_v1, %s11048_s17  ;;  %3136 = vrot.lane.b32.xlu0 %v11292_v26, %s11048_s17 }
 0x204   :  { %9718 = vmatprep.subr.bf16.mxu1 %v13850_v14  ;;  %9712 = vmatprep.subr.bf16.mxu0 %v13850_v14 }
 0x207   :  { %2896 = vrot.lane.b32.xlu1 %v11254_v7, %s11048_s17  ;;  %2656 = vrot.lane.b32.xlu0 %v11219_v49, %s11048_s17 }
 0x208   :  { %9709 = vmatmul.mubr.msk.bf16.vlgmr.msra.gmra.mrb[48].mxu1 %vm273_vm2, %v11306_v32  ;;  %9703 = vmatmul.mubr.msk.bf16.vlgmr.msra.gmra.mrb[40].mxu0 %vm273_vm2, %v11308_v33 }
 0x209   :  { %9713 = vmatpush3.bf16.xpose.msra.mxu0 %v1356_v11  ;;  %9719 = vmatpush3.bf16.xpose.msra.mxu1 %v1405_v60 }
 0x20a   :  { %9714 = vmatprep.mubr.msk.bf16.mxu0 %vm11044_vm1, %v13850_v14  ;;  %9720 = vmatprep.mubr.msk.bf16.mxu1 %vm11044_vm1, %v13850_v14 }
 0x20b   :  { %2992 = vrot.lane.b32.xlu1 %v11278_v19, %s11048_s17  ;;  %2848 = vrot.lane.b32.xlu0 %v11241_v2, %s11048_s17 }
 0x20c   :  { %9724 = vmatprep.subr.bf16.mxu0 %v13850_v14  ;;  %9730 = vmatprep.subr.bf16.mxu1 %v13850_v14 }
 0x20f   :  { %3088 = vrot.lane.b32.xlu1 %v11294_v27, %s11048_s17  ;;  %3040 = vrot.lane.b32.xlu0 %v11280_v20, %s11048_s17 }
 0x210   :  { %9721 = vmatmul.mubr.msk.bf16.vlgmr.msra.gmra.mrb[52].mxu1 %vm273_vm2, %v11319_v35  ;;  %9715 = vmatmul.mubr.msk.bf16.vlgmr.msra.gmra.mrb[44].mxu0 %vm273_vm2, %v11321_v44 }
 0x211   :  { %9732 = vmatprep.mubr.msk.bf16.mxu1 %vm11044_vm1, %v13850_v14  ;;  %9726 = vmatprep.mubr.msk.bf16.mxu0 %vm11044_vm1, %v13850_v14 }
 0x213   :  { %3184 = vrot.lane.b32.xlu1 %v11308_v33, %s11048_s17  ;;  %3232 = vrot.lane.b32.xlu0 %v11306_v32, %s11048_s17 }
 0x217   :  { %3280 = vrot.lane.b32.xlu1 %v11321_v44, %s11048_s17  ;;  %3328 = vrot.lane.b32.xlu0 %v11319_v35, %s11048_s17 }
 0x21b   :  { %3376 = vrot.lane.b32.xlu1 %v11342_v57, %s11048_s17 }
 0x238   :  { %v11514_v49 = vpop.f32.mrb[4].mxu1 }
 0x239   :  { %v9584_v1 = vpop.f32.mrb[5].mxu1  ;;  %v1839_v47 = vsel %vm273_vm2, %v11514_v49, -inf }
 0x23a   :  { %v317_v2 = vpop.f32.mrb[6].mxu1 }
 0x23b   :  { %v9585_v7 = vpop.f32.mrb[7].mxu1 }
 0x240   :  { %v11516_v19 = vpop.f32.mrb[8].mxu1  ;;  %v11518_v20 = vpop.f32.mrb[4].mxu0 }
 0x241   :  { %v9590_v26 = vpop.f32.mrb[9].mxu1  ;;  %v9596_v27 = vpop.f32.mrb[5].mxu0  ;;  %v1845_v32 = vsel %vm273_vm2, %v11518_v20, -inf  ;;  %v1842_v9 = vsel %vm273_vm2, %v11516_v19, -inf }
 0x242   :  { %v366_v33 = vpop.f32.mrb[10].mxu1  ;;  %v415_v44 = vpop.f32.mrb[6].mxu0  ;;  %1846 = vmax.xlane.f32.xlu0 %v1845_v32 }
 0x243   :  { %v9591_v35 = vpop.f32.mrb[11].mxu1  ;;  %v9597_v46 = vpop.f32.mrb[7].mxu0 }
 0x246   :  { %1840 = vmax.xlane.f32.xlu0 %v1839_v47 }
 0x248   :  { %v11524_v50 = vpop.f32.mrb[12].mxu1  ;;  %v11526_v51 = vpop.f32.mrb[8].mxu0 }
 0x249   :  { %v9602_v52 = vpop.f32.mrb[13].mxu1  ;;  %v9608_v53 = vpop.f32.mrb[9].mxu0  ;;  %v1851_v54 = vsel %vm273_vm2, %v11526_v51, -inf  ;;  %v1848_v58 = vsel %vm273_vm2, %v11524_v50, -inf }
 0x24a   :  { %v464_v59 = vpop.f32.mrb[14].mxu1  ;;  %v513_v61 = vpop.f32.mrb[10].mxu0  ;;  %1852 = vmax.xlane.f32.xlu1 %v1851_v54  ;;  %1849 = vmax.xlane.f32.xlu0 %v1848_v58 }
 0x24b   :  { %v1498_v62 = vpop.permute.xlu1 %1497  ;;  %v1449_v63 = vpop.permute.xlu0 %1448 }
 0x24c   :  { %v1503_v0 = vsel %vm273_vm2, %v1498_v62, 0  ;;  %v1454_v5 = vsel %vm273_vm2, %v1449_v63, 0  ;;  %v9603_v6 = vpop.f32.mrb[15].mxu1  ;;  %v9609_v8 = vpop.f32.mrb[11].mxu0 }
 0x24d   :  { %9725 = vmatpush3.bf16.xpose.msra.mxu0 %v1454_v5  ;;  %9731 = vmatpush3.bf16.xpose.msra.mxu1 %v1503_v0 }
 0x24e   :  { %1843 = vmax.xlane.f32.xlu1 %v1842_v9  ;;  %9736 = vmatprep.subr.bf16.mxu0 %v13850_v14 }
 0x24f   :  { %v1596_v10 = vpop.permute.xlu1 %1595  ;;  %v1547_v12 = vpop.permute.xlu0 %1546  ;;  %9742 = vmatprep.subr.bf16.mxu1 %v13850_v14 }
 0x250   :  { %v11538_v13 = vpop.f32.mrb[16].mxu1  ;;  %v11540_v15 = vpop.f32.mrb[12].mxu0  ;;  %v1601_v34 = vsel %vm273_vm2, %v1596_v10, 0  ;;  %v1552_v45 = vsel %vm273_vm2, %v1547_v12, 0 }
 0x251   :  { %v9614_v18 = vpop.f32.mrb[17].mxu1  ;;  %v9620_v21 = vpop.f32.mrb[13].mxu0  ;;  %v1857_v22 = vsel %vm273_vm2, %v11540_v15, -inf  ;;  %v1854_v23 = vsel %vm273_vm2, %v11538_v13, -inf }
 0x252   :  { %v562_v28 = vpop.f32.mrb[18].mxu1  ;;  %v611_v29 = vpop.f32.mrb[14].mxu0  ;;  %1858 = vmax.xlane.f32.xlu1 %v1857_v22  ;;  %1855 = vmax.xlane.f32.xlu0 %v1854_v23 }
 0x253   :  { %v9615_v30 = vpop.f32.mrb[19].mxu1  ;;  %v9621_v31 = vpop.f32.mrb[15].mxu0 }
 0x254   :  { %9727 = vmatmul.mubr.msk.bf16.vlgmr.msra.gmra.mrb[48].mxu0 %vm273_vm2, %v11342_v57  ;;  %9733 = vmatmul.mubr.msk.bf16.vlgmr.msra.gmra.mrb[56].mxu1 %vm273_vm2, %v11340_v56 }
 0x255   :  { %9737 = vmatpush3.bf16.xpose.msra.mxu0 %v1552_v45  ;;  %9743 = vmatpush3.bf16.xpose.msra.mxu1 %v1601_v34  ;;  %v1694_v36 = vpop.permute.xlu1 %1693  ;;  %v1645_v38 = vpop.permute.xlu0 %1644 }
 0x256   :  { %9744 = vmatprep.mubr.msk.bf16.mxu1 %vm11044_vm1, %v13850_v14  ;;  %9738 = vmatprep.mubr.msk.bf16.mxu0 %vm11044_vm1, %v13850_v14  ;;  %v1699_v42 = vsel %vm273_vm2, %v1694_v36, 0  ;;  %v1650_v43 = vsel %vm273_vm2, %v1645_v38, 0 }
 0x257   :  { %9748 = vmatprep.subr.bf16.mxu0 %v13850_v14  ;;  %9754 = vmatprep.subr.bf16.mxu1 %v13850_v14 }
 0x258   :  { %v11558_v37 = vpop.f32.mrb[20].mxu1 }
 0x259   :  { %v9626_v57 = vpop.f32.mrb[21].mxu1  ;;  %v1860_v39 = vsel %vm273_vm2, %v11558_v37, -inf  ;;  %v1792_v48 = vpop.permute.xlu1 %1791 }
 0x25a   :  { %v660_v40 = vpop.f32.mrb[22].mxu1  ;;  %1861 = vmax.xlane.f32.xlu0 %v1860_v39  ;;  %v1743_v55 = vpop.permute.xlu0 %1742  ;;  %v1797_v60 = vsel %vm273_vm2, %v1792_v48, 0 }
 0x25b   :  { %v9627_v41 = vpop.f32.mrb[23].mxu1  ;;  %v1748_v11 = vsel %vm273_vm2, %v1743_v55, 0 }
 0x25c   :  { %9739 = vmatmul.mubr.msk.bf16.vlgmr.msra.gmra.mrb[52].mxu0 %vm273_vm2, %v11356_v4  ;;  %9745 = vmatmul.mubr.msk.bf16.vlgmr.msra.gmra.mrb[60].mxu1 %vm273_vm2, %v11354_v3 }
 0x25d   :  { %9749 = vmatpush3.bf16.xpose.msra.mxu0 %v1650_v43  ;;  %9755 = vmatpush3.bf16.xpose.msra.mxu1 %v1699_v42  ;;  %v2224_v1 = vpop.permute.xlu1 %2223 }
 0x25e   :  { %9756 = vmatprep.mubr.msk.bf16.mxu1 %vm11044_vm1, %v13850_v14  ;;  %9750 = vmatprep.mubr.msk.bf16.mxu0 %vm11044_vm1, %v13850_v14  ;;  %v2273_v2 = vpop.permute.xlu0 %2272  ;;  %v2230_v7 = vsel %vm2228_vm3, %v2224_v1, 0 }
 0x25f   :  { %9760 = vmatprep.subr.bf16.mxu0 %v13850_v14  ;;  %9766 = vmatprep.subr.bf16.mxu1 %v13850_v14  ;;  %v2278_v26 = vsel %vm2228_vm3, %v2273_v2, 0 }
 0x261   :  { %v11598_v27 = vpop.permute.xlu1 %2320 }
 0x262   :  { %v11600_v32 = vpop.permute.xlu0 %2368 }
 0x264   :  { %9751 = vmatmul.mubr.msk.bf16.vlgmr.msra.gmra.mrb[56].mxu0 %vm273_vm2, %v11376_v17  ;;  %9757 = vmatmul.mubr.msk.bf16.vlgmr.msra.gmra.mrb[64].mxu1 %vm273_vm2, %v11374_v16 }
 0x265   :  { %9761 = vmatpush3.bf16.xpose.msra.mxu0 %v1748_v11  ;;  %9767 = vmatpush3.bf16.xpose.msra.mxu1 %v1797_v60  ;;  %v11602_v33 = vpop.permute.xlu1 %2416 }
 0x266   :  { %9768 = vmatprep.mubr.msk.bf16.mxu1 %vm11044_vm1, %v13850_v14  ;;  %9762 = vmatprep.mubr.msk.bf16.mxu0 %vm11044_vm1, %v13850_v14  ;;  %v11604_v44 = vpop.permute.xlu0 %2464 }
 0x267   :  { %9772 = vmatprep.subr.bf16.mxu0 %v13850_v14  ;;  %9778 = vmatprep.subr.bf16.mxu1 %v13850_v14 }
 0x269   :  { %v11606_v35 = vpop.permute.xlu1 %2512 }
 0x26a   :  { %v11608_v46 = vpop.permute.xlu0 %2560 }
 0x26c   :  { %9763 = vmatmul.mubr.msk.bf16.vlgmr.msra.gmra.mrb[60].mxu0 %vm273_vm2, %v11390_v25  ;;  %9769 = vmatmul.mubr.msk.bf16.vlgmr.msra.gmra.mrb[68].mxu1 %vm273_vm2, %v11388_v24 }
 0x26d   :  { %9773 = vmatpush3.bf16.msra.mxu0 %v2230_v7  ;;  %9779 = vmatpush3.bf16.msra.mxu1 %v2278_v26  ;;  %v11610_v47 = vpop.permute.xlu1 %2608 }
 0x26e   :  { %9780 = vmatprep.mubr.msk.bf16.mxu1 %vm11044_vm1, %v13850_v14  ;;  %9790 = vmatprep.subr.bf16.mxu1 %v13850_v14  ;;  %v11612_v52 = vpop.permute.xlu0 %2752 }
 0x26f   :  { %9774 = vmatprep.mubr.msk.bf16.mxu0 %vm11044_vm1, %v13850_v14  ;;  %9784 = vmatprep.subr.bf16.mxu0 %v13850_v14 }
 0x271   :  { %v11614_v53 = vpop.permute.xlu1 %2704 }
 0x272   :  { %v11624_v9 = vpop.permute.xlu0 %2944 }
 0x275   :  { %v11626_v10 = vpop.permute.xlu1 %2800 }
 0x276   :  { %v11636_v45 = vpop.permute.xlu0 %3136 }
 0x277   :  { %13866 = vst [vmem:[#allocation4_spill] sm:$0xff] %v11636_v45 }
 0x279   :  { %v11638_v36 = vpop.permute.xlu1 %2896 }
 0x27a   :  { %v11648_v11 = vpop.permute.xlu0 %2656 }
 0x27d   :  { %v11650_v1 = vpop.permute.xlu1 %2992 }
 0x2aa   :  { %v11616_v54 = vpop.f32.mrb[16].mxu0  ;;  %v11618_v58 = vpop.f32.mrb[24].mxu1 }
 0x2ab   :  { %v9632_v59 = vpop.f32.mrb[17].mxu0  ;;  %v9638_v61 = vpop.f32.mrb[25].mxu1  ;;  %v1863_v62 = vsel %vm273_vm2, %v11616_v54, -inf  ;;  %v1866_v63 = vsel %vm273_vm2, %v11618_v58, -inf }
 0x2ac   :  { %v709_v0 = vpop.f32.mrb[18].mxu0  ;;  %v758_v5 = vpop.f32.mrb[26].mxu1  ;;  %1864 = vmax.xlane.f32.xlu1 %v1863_v62  ;;  %1867 = vmax.xlane.f32.xlu0 %v1866_v63 }
 0x2ad   :  { %v9633_v6 = vpop.f32.mrb[19].mxu0  ;;  %v9639_v8 = vpop.f32.mrb[27].mxu1 }
 0x2ae   :  { %v11660_v8 = vpop.permute.xlu0 %2848 }
 0x2b3   :  { %v11628_v12 = vpop.f32.mrb[20].mxu0  ;;  %v11630_v18 = vpop.f32.mrb[28].mxu1 }
 0x2b4   :  { %v9644_v21 = vpop.f32.mrb[21].mxu0  ;;  %v9650_v22 = vpop.f32.mrb[29].mxu1  ;;  %v1869_v23 = vsel %vm273_vm2, %v11628_v12, -inf  ;;  %v1872_v28 = vsel %vm273_vm2, %v11630_v18, -inf }
 0x2b5   :  { %v807_v29 = vpop.f32.mrb[22].mxu0  ;;  %v856_v30 = vpop.f32.mrb[30].mxu1  ;;  %1870 = vmax.xlane.f32.xlu1 %v1869_v23  ;;  %1873 = vmax.xlane.f32.xlu0 %v1872_v28 }
 0x2b6   :  { %v9645_v31 = vpop.f32.mrb[23].mxu0  ;;  %v9651_v34 = vpop.f32.mrb[31].mxu1 }
 0x2b7   :  { %v11662_v21 = vpop.permute.xlu1 %3088 }
 0x2b8   :  { %13867 = vst [vmem:[#allocation5_spill] sm:$0xff] %v11662_v21 }
 0x2bb   :  { %v11640_v38 = vpop.f32.mrb[24].mxu0  ;;  %v11642_v57 = vpop.f32.mrb[32].mxu1 }
 0x2bc   :  { %v9656_v39 = vpop.f32.mrb[25].mxu0  ;;  %v9662_v40 = vpop.f32.mrb[33].mxu1  ;;  %v1875_v41 = vsel %vm273_vm2, %v11640_v38, -inf  ;;  %v1878_v42 = vsel %vm273_vm2, %v11642_v57, -inf }
 0x2bd   :  { %v905_v43 = vpop.f32.mrb[26].mxu0  ;;  %v954_v48 = vpop.f32.mrb[34].mxu1  ;;  %1876 = vmax.xlane.f32.xlu1 %v1875_v41  ;;  %1879 = vmax.xlane.f32.xlu0 %v1878_v42 }
 0x2be   :  { %v9657_v55 = vpop.f32.mrb[27].mxu0  ;;  %v9663_v60 = vpop.f32.mrb[35].mxu1 }
 0x2bf   :  { %v11668_v40 = vpop.permute.xlu0 %3040  ;;  %v11674_v43 = vpop.permute.xlu1 %3184 }
 0x2c0   :  { %13868 = vst [vmem:[#allocation6_spill] sm:$0xff] %v11674_v43 }
 0x2c3   :  { %v11652_v2 = vpop.f32.mrb[28].mxu0  ;;  %v11654_v7 = vpop.f32.mrb[36].mxu1 }
 0x2c4   :  { %v9668_v26 = vpop.f32.mrb[29].mxu0  ;;  %v9674_v59 = vpop.f32.mrb[37].mxu1  ;;  %v1881_v61 = vsel %vm273_vm2, %v11652_v2, -inf  ;;  %v1884_v62 = vsel %vm273_vm2, %v11654_v7, -inf }
 0x2c5   :  { %v1003_v63 = vpop.f32.mrb[30].mxu0  ;;  %v1052_v0 = vpop.f32.mrb[38].mxu1  ;;  %1882 = vmax.xlane.f32.xlu1 %v1881_v61  ;;  %1885 = vmax.xlane.f32.xlu0 %v1884_v62 }
 0x2c6   :  { %v9669_v5 = vpop.f32.mrb[31].mxu0  ;;  %v9675_v6 = vpop.f32.mrb[39].mxu1 }
 0x2c7   :  { %v11678_v62 = vpop.permute.xlu0 %3232  ;;  %v11682_v63 = vpop.permute.xlu1 %3280 }
 0x2c8   :  { %13869 = vst [vmem:[#allocation7_spill] sm:$0xff] %v11678_v62  ;;  %13870 = vst [vmem:[#allocation8_spill] sm:$0xff] %v11682_v63 }
 0x2cb   :  { %v11664_v22 = vpop.f32.mrb[32].mxu0  ;;  %v11666_v23 = vpop.f32.mrb[40].mxu1 }
 0x2cc   :  { %v9680_v28 = vpop.f32.mrb[33].mxu0  ;;  %v9686_v29 = vpop.f32.mrb[41].mxu1 }
 0x2cd   :  { %v1101_v30 = vpop.f32.mrb[34].mxu0  ;;  %v1150_v31 = vpop.f32.mrb[42].mxu1 }
 0x2ce   :  { %v9681_v34 = vpop.f32.mrb[35].mxu0  ;;  %v9687_v39 = vpop.f32.mrb[43].mxu1 }
 0x2cf   :  { %v11690_v34 = vpop.permute.xlu0 %3328  ;;  %v11692_v39 = vpop.permute.xlu1 %3376 }
 0x2d0   :  { %13871 = vst [vmem:[#allocation9_spill] sm:$0xff] %v11690_v34  ;;  %13872 = vst [vmem:[#allocation10_spill] sm:$0xff] %v11692_v39 }
 0x2d3   :  { %v11670_v41 = vpop.f32.mrb[36].mxu0  ;;  %v11672_v42 = vpop.f32.mrb[44].mxu1 }
 0x2d4   :  { %v9692_v48 = vpop.f32.mrb[37].mxu0  ;;  %v9698_v55 = vpop.f32.mrb[45].mxu1 }
 0x2d5   :  { %v1199_v60 = vpop.f32.mrb[38].mxu0  ;;  %v1248_v26 = vpop.f32.mrb[46].mxu1 }
 0x2d6   :  { %3472 = vrot.lane.b32.xlu1 %v11356_v4, %s11048_s17  ;;  %v9693_v59 = vpop.f32.mrb[39].mxu0  ;;  %v9699_v61 = vpop.f32.mrb[47].mxu1 }
 0x2da   :  { %3520 = vrot.lane.b32.xlu1 %v11354_v3, %s11048_s17 }
 0x2db   :  { %v11684_v0 = vpop.f32.mrb[48].mxu1  ;;  %3424 = vrot.lane.b32.xlu0 %v11340_v56, %s11048_s17  ;;  %v11688_v5 = vpop.f32.mrb[40].mxu0 }
 0x2dc   :  { %v9710_v6 = vpop.f32.mrb[49].mxu1  ;;  %v9704_v28 = vpop.f32.mrb[41].mxu0 }
 0x2dd   :  { %v1346_v29 = vpop.f32.mrb[50].mxu1  ;;  %v1297_v4 = vpop.f32.mrb[42].mxu0 }
 0x2de   :  { %v9711_v30 = vpop.f32.mrb[51].mxu1  ;;  %v9705_v31 = vpop.f32.mrb[43].mxu0 }
 0x2df   :  { %v1853_v6 = vpop.xlane.xlu1 %1852  ;;  %v1847_v28 = vpop.xlane.xlu0 %1846 }
 0x2e0   :  { %v1937_v4 = vsub.f32 %v11518_v20, %v1847_v28  ;;  %v1939_v20 = vsub.f32 %v11526_v51, %v1853_v6  ;;  %v1893_v51 = vsel %vm273_vm2, %v11670_v41, -inf }
 0x2e2   :  { %v1971_v14 = vmul.f32 1.442695, %v1937_v4 }
 0x2e3   :  { %v11694_v3 = vpop.f32.mrb[44].mxu0  ;;  %v11696_v48 = vpop.f32.mrb[52].mxu1 }
 0x2e4   :  { %v9716_v55 = vpop.f32.mrb[45].mxu0  ;;  %v9722_v60 = vpop.f32.mrb[53].mxu1  ;;  %10714 = vpow2.f32 %v1971_v14  ;;  %v1975_v14 = vmul.f32 1.442695, %v1939_v20  ;;  %v1908_v4 = vsel %vm273_vm2, %v11696_v48, -inf }
 0x2e5   :  { %v1395_v26 = vpop.f32.mrb[46].mxu0  ;;  %v1444_v56 = vpop.f32.mrb[54].mxu1 }
 0x2e6   :  { %v9717_v59 = vpop.f32.mrb[47].mxu0  ;;  %v9723_v61 = vpop.f32.mrb[55].mxu1  ;;  %v1890_v26 = vsel %vm273_vm2, %v11666_v23, -inf }
 0x2e7   :  { %v1844_v29 = vpop.xlane.xlu1 %1843  ;;  %v1841_v30 = vpop.xlane.xlu0 %1840 }
 0x2e8   :  { %v1936_v31 = vsub.f32 %v11516_v19, %v1844_v29  ;;  %v1935_v39 = vsub.f32 %v11514_v49, %v1841_v30  ;;  %v1887_v19 = vsel %vm273_vm2, %v11664_v22, -inf  ;;  %v1896_v49 = vsel %vm273_vm2, %v11672_v42, -inf }
 0x2ea   :  { %v1969_v63 = vmul.f32 1.442695, %v1936_v31  ;;  %v1967_v55 = vmul.f32 1.442695, %v1935_v39 }
 0x2eb   :  { %v1850_v34 = vpop.xlane.xlu0 %1849 }
 0x2ec   :  { %v1938_v60 = vsub.f32 %v11524_v50, %v1850_v34  ;;  %10716 = vpow2.f32 %v1969_v63  ;;  %v1859_v63 = vpop.xlane.xlu1 %1858  ;;  %v1902_v34 = vsel %vm273_vm2, %v11684_v0, -inf }
 0x2ed   :  { %10718 = vpow2.f32 %v1967_v55  ;;  %v1941_v59 = vsub.f32 %v11540_v15, %v1859_v63  ;;  %v1899_v15 = vsel %vm273_vm2, %v11688_v5, -inf }
 0x2ee   :  { %v1973_v56 = vmul.f32 1.442695, %v1938_v60  ;;  %v11709_v50 = vpop.eup %10714 }
 0x2ef   :  { %v2037_v6 = vsel %vm273_vm2, %v11709_v50, 0.0  ;;  %v1979_v29 = vmul.f32 1.442695, %v1941_v59  ;;  %v1856_v20 = vpop.xlane.xlu0 %1855 }
 0x2f0   :  { %10720 = vpow2.f32 %v1973_v56  ;;  %v1905_v56 = vsel %vm273_vm2, %v11694_v3, -inf }
 0x2f1   :  { %10722 = vpow2.f32 %v1975_v14 }
 0x2f2   :  { %10724 = vpow2.f32 %v1979_v29 }
 0x2f6   :  { %v11715_v39 = vpop.eup %10716 }
 0x2f7   :  { %v2034_v61 = vsel %vm273_vm2, %v11715_v39, 0.0  ;;  %v11722_v28 = vpop.eup %10718 }
 0x2f8   :  { %v2031_v30 = vsel %vm273_vm2, %v11722_v28, 0.0 }
 0x2fa   :  { %1891 = vmax.xlane.f32.xlu0 %v1890_v26  ;;  %v11728_v31 = vpop.eup %10720 }
 0x2fb   :  { %v2040_v55 = vsel %vm273_vm2, %v11728_v31, 0.0  ;;  %v11734_v60 = vpop.eup %10722 }
 0x2fc   :  { %v2043_v26 = vsel %vm273_vm2, %v11734_v60, 0.0 }
 0x2fe   :  { %1888 = vmax.xlane.f32.xlu1 %v1887_v19  ;;  %1897 = vmax.xlane.f32.xlu0 %v1896_v49  ;;  %v11740_v19 = vpop.eup %10724  ;;  %v1940_v49 = vsub.f32 %v11538_v13, %v1856_v20 }
 0x2ff   :  { %v2049_v14 = vsel %vm273_vm2, %v11740_v19, 0.0 }
 0x300   :  { %v1977_v63 = vmul.f32 1.442695, %v1940_v49 }
 0x302   :  { %1903 = vmax.xlane.f32.xlu0 %v1902_v34  ;;  %1894 = vmax.xlane.f32.xlu1 %v1893_v51  ;;  %v1862_v34 = vpop.xlane.xlu0 %1861  ;;  %10726 = vpow2.f32 %v1977_v63 }
 0x303   :  { %v1942_v51 = vsub.f32 %v11558_v37, %v1862_v34 }
 0x305   :  { %v1981_v59 = vmul.f32 1.442695, %v1942_v51 }
 0x306   :  { %2035 = vadd.xlane.f32.xlu0 %v2034_v61  ;;  %2038 = vadd.xlane.f32.xlu1 %v2037_v6 }
 0x307   :  { %10728 = vpow2.f32 %v1981_v59 }
 0x30a   :  { %1909 = vmax.xlane.f32.xlu0 %v1908_v4  ;;  %2032 = vadd.xlane.f32.xlu1 %v2031_v30 }
 0x30e   :  { %1900 = vmax.xlane.f32.xlu1 %v1899_v15  ;;  %2041 = vadd.xlane.f32.xlu0 %v2040_v55  ;;  %v11754_v15 = vpop.eup %10726 }
 0x312   :  { %2044 = vadd.xlane.f32.xlu1 %v2043_v26 }
 0x316   :  { %1906 = vmax.xlane.f32.xlu1 %v1905_v56  ;;  %v2046_v56 = vsel %vm273_vm2, %v11754_v15, 0.0 }
 0x31a   :  { %2050 = vadd.xlane.f32.xlu1 %v2049_v14 }
 0x327   :  { %v11746_v61 = vpop.f32.mrb[48].mxu0  ;;  %v11748_v6 = vpop.f32.mrb[56].mxu1 }
 0x328   :  { %v9728_v29 = vpop.f32.mrb[49].mxu0  ;;  %v9734_v4 = vpop.f32.mrb[57].mxu1  ;;  %v1911_v13 = vsel %vm273_vm2, %v11746_v61, -inf  ;;  %v1914_v30 = vsel %vm273_vm2, %v11748_v6, -inf }
 0x329   :  { %v1493_v55 = vpop.f32.mrb[50].mxu0  ;;  %v1542_v26 = vpop.f32.mrb[58].mxu1  ;;  %1912 = vmax.xlane.f32.xlu1 %v1911_v13  ;;  %1915 = vmax.xlane.f32.xlu0 %v1914_v30 }
 0x32a   :  { %v9729_v37 = vpop.f32.mrb[51].mxu0  ;;  %v9735_v20 = vpop.f32.mrb[59].mxu1 }
 0x32b   :  { %v11766_v29 = vpop.eup %10728 }
 0x32c   :  { %v2052_v26 = vsel %vm273_vm2, %v11766_v29, 0.0 }
 0x32d   :  { %2047 = vadd.xlane.f32.xlu0 %v2046_v56 }
 0x32f   :  { %v11758_v49 = vpop.f32.mrb[52].mxu0  ;;  %v11760_v14 = vpop.f32.mrb[60].mxu1 }
 0x330   :  { %v9740_v63 = vpop.f32.mrb[53].mxu0  ;;  %v9746_v34 = vpop.f32.mrb[61].mxu1  ;;  %v1917_v51 = vsel %vm273_vm2, %v11758_v49, -inf  ;;  %v1920_v59 = vsel %vm273_vm2, %v11760_v14, -inf }
 0x331   :  { %v1591_v4 = vpop.f32.mrb[54].mxu0  ;;  %v1640_v13 = vpop.f32.mrb[62].mxu1  ;;  %1918 = vmax.xlane.f32.xlu1 %v1917_v51  ;;  %1921 = vmax.xlane.f32.xlu0 %v1920_v59 }
 0x332   :  { %v9741_v30 = vpop.f32.mrb[55].mxu0  ;;  %v9747_v55 = vpop.f32.mrb[63].mxu1 }
 0x335   :  { %2053 = vadd.xlane.f32.xlu0 %v2052_v26 }
 0x337   :  { %v11770_v37 = vpop.f32.mrb[56].mxu0  ;;  %v11772_v20 = vpop.f32.mrb[64].mxu1 }
 0x338   :  { %v9752_v56 = vpop.f32.mrb[57].mxu0  ;;  %v9758_v63 = vpop.f32.mrb[65].mxu1  ;;  %v1923_v34 = vsel %vm273_vm2, %v11770_v37, -inf  ;;  %v1926_v4 = vsel %vm273_vm2, %v11772_v20, -inf }
 0x339   :  { %v1689_v51 = vpop.f32.mrb[58].mxu0  ;;  %v1738_v59 = vpop.f32.mrb[66].mxu1  ;;  %1924 = vmax.xlane.f32.xlu1 %v1923_v34  ;;  %1927 = vmax.xlane.f32.xlu0 %v1926_v4 }
 0x33a   :  { %v9753_v13 = vpop.f32.mrb[59].mxu0  ;;  %v9759_v30 = vpop.f32.mrb[67].mxu1 }
 0x33b   :  { %v1865_v55 = vpop.xlane.xlu1 %1864  ;;  %v1868_v26 = vpop.xlane.xlu0 %1867 }
 0x33c   :  { %v1943_v43 = vsub.f32 %v11616_v54, %v1865_v55  ;;  %v1944_v62 = vsub.f32 %v11618_v58, %v1868_v26 }
 0x33e   :  { %v1983_v56 = vmul.f32 1.442695, %v1943_v43  ;;  %v1985_v63 = vmul.f32 1.442695, %v1944_v62 }
 0x33f   :  { %v11780_v21 = vpop.f32.mrb[60].mxu0  ;;  %v11782_v45 = vpop.f32.mrb[68].mxu1 }
 0x340   :  { %10730 = vpow2.f32 %v1983_v56  ;;  %v9764_v25 = vpop.f32.mrb[61].mxu0  ;;  %v9770_v51 = vpop.f32.mrb[69].mxu1  ;;  %v1929_v34 = vsel %vm273_vm2, %v11780_v21, -inf  ;;  %v1932_v4 = vsel %vm273_vm2, %v11782_v45, -inf }
 0x341   :  { %10732 = vpow2.f32 %v1985_v63  ;;  %v1787_v59 = vpop.f32.mrb[62].mxu0  ;;  %v1836_v54 = vpop.f32.mrb[70].mxu1  ;;  %1930 = vmax.xlane.f32.xlu1 %v1929_v34  ;;  %1933 = vmax.xlane.f32.xlu0 %v1932_v4 }
 0x342   :  { %v9765_v58 = vpop.f32.mrb[63].mxu0  ;;  %v9771_v43 = vpop.f32.mrb[71].mxu1 }
 0x343   :  { %v1871_v62 = vpop.xlane.xlu1 %1870  ;;  %v1874_v13 = vpop.xlane.xlu0 %1873 }
 0x344   :  { %v1945_v30 = vsub.f32 %v11628_v12, %v1871_v62  ;;  %v1946_v25 = vsub.f32 %v11630_v18, %v1874_v13 }
 0x346   :  { %v1987_v55 = vmul.f32 1.442695, %v1945_v30  ;;  %v1989_v26 = vmul.f32 1.442695, %v1946_v25 }
 0x348   :  { %10734 = vpow2.f32 %v1987_v55 }
 0x349   :  { %10736 = vpow2.f32 %v1989_v26 }
 0x34a   :  { %v11790_v56 = vpop.eup %10730  ;;  %v1877_v51 = vpop.xlane.xlu1 %1876 }
 0x34b   :  { %v1880_v63 = vpop.xlane.xlu0 %1879  ;;  %v11792_v59 = vpop.eup %10732  ;;  %v1947_v34 = vsub.f32 %v11640_v38, %v1877_v51  ;;  %v2055_v54 = vsel %vm273_vm2, %v11790_v56, 0.0 }
 0x34c   :  { %v1948_v4 = vsub.f32 %v11642_v57, %v1880_v63  ;;  %2056 = vadd.xlane.f32.xlu1 %v2055_v54  ;;  %v2058_v12 = vsel %vm273_vm2, %v11792_v59, 0.0 }
 0x34d   :  { %v1991_v18 = vmul.f32 1.442695, %v1947_v34  ;;  %2059 = vadd.xlane.f32.xlu0 %v2058_v12 }
 0x34e   :  { %v1993_v58 = vmul.f32 1.442695, %v1948_v4 }
 0x34f   :  { %10738 = vpow2.f32 %v1991_v18 }
 0x350   :  { %10740 = vpow2.f32 %v1993_v58 }
 0x352   :  { %v11800_v43 = vpop.eup %10734  ;;  %v1883_v62 = vpop.xlane.xlu1 %1882 }
 0x353   :  { %v1886_v13 = vpop.xlane.xlu0 %1885  ;;  %v11802_v30 = vpop.eup %10736  ;;  %v1949_v38 = vsub.f32 %v11652_v2, %v1883_v62  ;;  %v2061_v25 = vsel %vm273_vm2, %v11800_v43, 0.0 }
 0x354   :  { %v1950_v57 = vsub.f32 %v11654_v7, %v1886_v13  ;;  %2062 = vadd.xlane.f32.xlu1 %v2061_v25  ;;  %v2064_v55 = vsel %vm273_vm2, %v11802_v30, 0.0 }
 0x355   :  { %v1995_v26 = vmul.f32 1.442695, %v1949_v38  ;;  %2065 = vadd.xlane.f32.xlu0 %v2064_v55 }
 0x356   :  { %v1997_v51 = vmul.f32 1.442695, %v1950_v57  ;;  %v11826_v58 = vpop.permute.xlu1 %3472 }
 0x357   :  { %10742 = vpow2.f32 %v1995_v26  ;;  %13873 = vst [vmem:[#allocation11_spill] sm:$0xff] %v11826_v58  ;;  %v11828_v62 = vpop.permute.xlu0 %3424 }
 0x358   :  { %10744 = vpow2.f32 %v1997_v51  ;;  %13874 = vst [vmem:[#allocation12_spill] sm:$0xff] %v11828_v62 }
 0x359   :  { %v11810_v63 = vpop.eup %10738 }
 0x35a   :  { %v11812_v34 = vpop.eup %10740  ;;  %v2067_v2 = vsel %vm273_vm2, %v11810_v63, 0.0  ;;  %v11830_v13 = vpop.permute.xlu1 %3520 }
 0x35b   :  { %2068 = vadd.xlane.f32.xlu1 %v2067_v2  ;;  %v2070_v7 = vsel %vm273_vm2, %v11812_v34, 0.0  ;;  %13875 = vst [vmem:[#allocation13_spill] sm:$0xff] %v11830_v13 }
 0x35c   :  { %2071 = vadd.xlane.f32.xlu0 %v2070_v7 }
 0x361   :  { %v11818_v4 = vpop.eup %10742 }
 0x362   :  { %v11820_v54 = vpop.eup %10744  ;;  %v2073_v12 = vsel %vm273_vm2, %v11818_v4, 0.0 }
 0x363   :  { %2074 = vadd.xlane.f32.xlu1 %v2073_v12  ;;  %v2076_v18 = vsel %vm273_vm2, %v11820_v54, 0.0 }
 0x364   :  { %2077 = vadd.xlane.f32.xlu0 %v2076_v18 }
 0x387   :  { %v1892_v38 = vpop.xlane.xlu0 %1891 }
 0x388   :  { %v1952_v57 = vsub.f32 %v11666_v23, %v1892_v38 }
 0x38a   :  { %v2001_v25 = vmul.f32 1.442695, %v1952_v57 }
 0x38b   :  { %v1889_v55 = vpop.xlane.xlu1 %1888  ;;  %v1898_v26 = vpop.xlane.xlu0 %1897 }
 0x38c   :  { %10746 = vpow2.f32 %v2001_v25  ;;  %v1951_v51 = vsub.f32 %v11664_v22, %v1889_v55  ;;  %v1954_v2 = vsub.f32 %v11672_v42, %v1898_v26 }
 0x38e   :  { %v1999_v7 = vmul.f32 1.442695, %v1951_v51  ;;  %v2005_v12 = vmul.f32 1.442695, %v1954_v2 }
 0x38f   :  { %v1895_v18 = vpop.xlane.xlu1 %1894  ;;  %v1904_v24 = vpop.xlane.xlu0 %1903 }
 0x390   :  { %10748 = vpow2.f32 %v1999_v7  ;;  %v1953_v58 = vsub.f32 %v11670_v41, %v1895_v18  ;;  %v1956_v13 = vsub.f32 %v11684_v0, %v1904_v24 }
 0x391   :  { %10750 = vpow2.f32 %v2005_v12 }
 0x392   :  { %v2003_v62 = vmul.f32 1.442695, %v1953_v58  ;;  %v2009_v23 = vmul.f32 1.442695, %v1956_v13 }
 0x393   :  { %v2039_v38 = vpop.xlane.xlu1 %2038  ;;  %v2036_v57 = vpop.xlane.xlu0 %2035 }
 0x394   :  { %10752 = vpow2.f32 %v2003_v62 }
 0x395   :  { %10754 = vpow2.f32 %v2009_v23 }
 0x396   :  { %v11837_v25 = vpop.eup %10746  ;;  %10756 = vrcp.f32 %v2036_v57 }
 0x397   :  { %v2033_v22 = vpop.xlane.xlu1 %2032  ;;  %v1910_v42 = vpop.xlane.xlu0 %1909  ;;  %v2082_v55 = vsel %vm273_vm2, %v11837_v25, 0.0 }
 0x398   :  { %10758 = vrcp.f32 %v2033_v22  ;;  %v1958_v41 = vsub.f32 %v11696_v48, %v1910_v42  ;;  %2083 = vadd.xlane.f32.xlu0 %v2082_v55 }
 0x399   :  { %10760 = vrcp.f32 %v2039_v38 }
 0x39a   :  { %v11842_v24 = vpop.eup %10748  ;;  %v2013_v0 = vmul.f32 1.442695, %v1958_v41 }
 0x39b   :  { %v11844_v58 = vpop.eup %10750  ;;  %v1901_v62 = vpop.xlane.xlu1 %1900  ;;  %v2079_v26 = vsel %vm273_vm2, %v11842_v24, 0.0 }
 0x39c   :  { %v2042_v13 = vpop.xlane.xlu0 %2041  ;;  %10762 = vpow2.f32 %v2013_v0  ;;  %v1955_v51 = vsub.f32 %v11688_v5, %v1901_v62  ;;  %2080 = vadd.xlane.f32.xlu1 %v2079_v26  ;;  %v2088_v2 = vsel %vm273_vm2, %v11844_v58, 0.0 }
 0x39d   :  { %10764 = vrcp.f32 %v2042_v13  ;;  %2089 = vadd.xlane.f32.xlu0 %v2088_v2 }
 0x39e   :  { %v11851_v48 = vpop.eup %10752  ;;  %v2007_v7 = vmul.f32 1.442695, %v1955_v51  ;;  %v2374_v51 = vsel %vm2228_vm3, %v11600_v32, 0  ;;  %v13876_v32 = vmov 0.0  }
 0x39f   :  { %v11853_v12 = vpop.eup %10754  ;;  %v2045_v18 = vpop.xlane.xlu1 %2044  ;;  %v2085_v23 = vsel %vm273_vm2, %v11851_v48, 0.0 }
 0x3a0   :  { %10766 = vpow2.f32 %v2007_v7  ;;  %2086 = vadd.xlane.f32.xlu1 %v2085_v23  ;;  %v2094_v5 = vsel %vm273_vm2, %v11853_v12, 0.0  ;;  %v10757_v38 = vpop.eup %10756 }
 0x3a1   :  { %2095 = vadd.xlane.f32.xlu0 %v2094_v5  ;;  %v2160_v22 = vmul.f32 %v10757_v38, %v11715_v39  ;;  %10768 = vrcp.f32 %v2045_v18  ;;  %v2326_v39 = vsel %vm2228_vm3, %v11598_v27, 0 }
 0x3a2   :  { %v10759_v57 = vpop.eup %10758 }
 0x3a3   :  { %v1907_v42 = vpop.xlane.xlu1 %1906  ;;  %v2159_v55 = vmul.f32 %v10759_v57, %v11722_v28  ;;  %v2192_v0 = vpack.c.bf16 %v2160_v22, %v2160_v22  ;;  %v10761_v62 = vpop.eup %10760  ;;  %v2470_v22 = vsel %vm2228_vm3, %v11604_v44, 0 }
 0x3a4   :  { %v1957_v41 = vsub.f32 %v11694_v3, %v1907_v42  ;;  %v2161_v23 = vmul.f32 %v10761_v62, %v11709_v50  ;;  %v2422_v50 = vsel %vm2228_vm3, %v11602_v33, 0 }
 0x3a5   :  { %v2191_v13 = vpack.c.bf16 %v2159_v55, %v2159_v55  ;;  %9781 = vmatmul.mubr.msk.bf16.vlgmr.msra.gmra.mrb[72].mxu1 %vm273_vm2, %v2192_v0 }
 0x3a6   :  { %v11862_v26 = vpop.eup %10762  ;;  %v2011_v2 = vmul.f32 1.442695, %v1957_v41  ;;  %9791 = vmatpush3.bf16.msra.mxu1 %v2374_v51  ;;  %9792 = vmatprep.mubr.msk.bf16.mxu1 %vm11044_vm1, %v13876_v32 }
 0x3a7   :  { %v10765_v7 = vpop.eup %10764  ;;  %9775 = vmatmul.mubr.msk.bf16.vlgmr.msra.gmra.mrb[64].mxu0 %vm273_vm2, %v2191_v13  ;;  %v2100_v3 = vsel %vm273_vm2, %v11862_v26, 0.0  ;;  %v2051_v18 = vpop.xlane.xlu1 %2050  ;;  %9802 = vmatprep.subr.bf16.mxu1 %v13876_v32  ;;  %v2518_v13 = vsel %vm2228_vm3, %v11606_v35, 0 }
 0x3a8   :  { %10770 = vpow2.f32 %v2011_v2  ;;  %9785 = vmatpush3.bf16.msra.mxu0 %v2326_v39  ;;  %2101 = vadd.xlane.f32.xlu0 %v2100_v3  ;;  %v2162_v28 = vmul.f32 %v10765_v7, %v11728_v31  ;;  %v2193_v31 = vpack.c.bf16 %v2161_v23, %v2161_v23 }
 0x3a9   :  { %9786 = vmatprep.mubr.msk.bf16.mxu0 %vm11044_vm1, %v13876_v32  ;;  %9796 = vmatprep.subr.bf16.mxu0 %v13876_v32  ;;  %10772 = vrcp.f32 %v2051_v18 }
 0x3aa   :  { %v11877_v27 = vpop.eup %10766  ;;  %v2194_v5 = vpack.c.bf16 %v2162_v28, %v2162_v28 }
 0x3ab   :  { %v2091_v38 = vsel %vm273_vm2, %v11877_v27, 0.0  ;;  %v10769_v57 = vpop.eup %10768 }
 0x3ac   :  { %2092 = vadd.xlane.f32.xlu1 %v2091_v38  ;;  %v2163_v42 = vmul.f32 %v10769_v57, %v11734_v60 }
 0x3ad   :  { %9793 = vmatmul.mubr.msk.bf16.vlgmr.msra.gmra.mrb[76].mxu1 %vm273_vm2, %v2194_v5 }
 0x3ae   :  { %9803 = vmatpush3.bf16.msra.mxu1 %v2470_v22  ;;  %9804 = vmatprep.mubr.msk.bf16.mxu1 %vm11044_vm1, %v13876_v32  ;;  %v2195_v55 = vpack.c.bf16 %v2163_v42, %v2163_v42  ;;  %v2566_v42 = vsel %vm2228_vm3, %v11608_v46, 0 }
 0x3af   :  { %9787 = vmatmul.mubr.msk.bf16.vlgmr.msra.gmra.mrb[68].mxu0 %vm273_vm2, %v2193_v31  ;;  %9814 = vmatprep.subr.bf16.mxu1 %v13876_v32 }
 0x3b0   :  { %9797 = vmatpush3.bf16.msra.mxu0 %v2422_v50  ;;  %9798 = vmatprep.mubr.msk.bf16.mxu0 %vm11044_vm1, %v13876_v32 }
 0x3b1   :  { %9808 = vmatprep.subr.bf16.mxu0 %v13876_v32 }
 0x3b2   :  { %v11896_v44 = vpop.eup %10770 }
 0x3b3   :  { %v2097_v33 = vsel %vm273_vm2, %v11896_v44, 0.0  ;;  %v10773_v41 = vpop.eup %10772 }
 0x3b4   :  { %2098 = vadd.xlane.f32.xlu1 %v2097_v33  ;;  %v2165_v39 = vmul.f32 %v10773_v41, %v11740_v19 }
 0x3b6   :  { %v1913_v0 = vpop.xlane.xlu1 %1912  ;;  %v1916_v62 = vpop.xlane.xlu0 %1915  ;;  %v2197_v35 = vpack.c.bf16 %v2165_v39, %v2165_v39 }
 0x3b7   :  { %v1959_v60 = vsub.f32 %v11746_v61, %v1913_v0  ;;  %v1960_v51 = vsub.f32 %v11748_v6, %v1916_v62  ;;  %9799 = vmatmul.mubr.msk.bf16.vlgmr.msra.gmra.mrb[72].mxu0 %vm273_vm2, %v2195_v55  ;;  %v2614_v6 = vsel %vm2228_vm3, %v11610_v47, 0 }
 0x3b8   :  { %9809 = vmatpush3.bf16.msra.mxu0 %v2518_v13  ;;  %9810 = vmatprep.mubr.msk.bf16.mxu0 %vm11044_vm1, %v13876_v32 }
 0x3b9   :  { %v2015_v2 = vmul.f32 1.442695, %v1959_v60  ;;  %v2017_v7 = vmul.f32 1.442695, %v1960_v51  ;;  %9820 = vmatprep.subr.bf16.mxu0 %v13876_v32  ;;  %v2662_v51 = vsel %vm2228_vm3, %v11648_v11, 0 }
 0x3ba   :  { %v2048_v3 = vpop.xlane.xlu0 %2047 }
 0x3bb   :  { %10774 = vpow2.f32 %v2015_v2 }
 0x3bc   :  { %10776 = vpow2.f32 %v2017_v7 }
 0x3bd   :  { %10778 = vrcp.f32 %v2048_v3 }
 0x3be   :  { %v1919_v61 = vpop.xlane.xlu1 %1918  ;;  %v1922_v28 = vpop.xlane.xlu0 %1921 }
 0x3bf   :  { %v1961_v18 = vsub.f32 %v11758_v49, %v1919_v61  ;;  %v1962_v23 = vsub.f32 %v11760_v14, %v1922_v28  ;;  %9811 = vmatmul.mubr.msk.bf16.vlgmr.msra.gmra.mrb[76].mxu0 %vm273_vm2, %v2197_v35 }
 0x3c0   :  { %9821 = vmatpush3.bf16.msra.mxu0 %v2614_v6  ;;  %9822 = vmatprep.mubr.msk.bf16.mxu0 %vm11044_vm1, %v13876_v32 }
 0x3c1   :  { %v2019_v19 = vmul.f32 1.442695, %v1961_v18  ;;  %v2021_v5 = vmul.f32 1.442695, %v1962_v23  ;;  %9832 = vmatprep.subr.bf16.mxu0 %v13876_v32 }
 0x3c2   :  { %v2054_v38 = vpop.xlane.xlu0 %2053 }
 0x3c3   :  { %10780 = vpow2.f32 %v2019_v19 }
 0x3c4   :  { %10782 = vpow2.f32 %v2021_v5  ;;  %v2710_v5 = vsel %vm2228_vm3, %v11614_v53, 0 }
 0x3c5   :  { %v11918_v31 = vpop.eup %10774  ;;  %10784 = vrcp.f32 %v2054_v38  ;;  %v2758_v38 = vsel %vm2228_vm3, %v11612_v52, 0 }
 0x3c6   :  { %v11920_v47 = vpop.eup %10776  ;;  %v2103_v49 = vsel %vm273_vm2, %v11918_v31, 0.0  ;;  %v1925_v62 = vpop.xlane.xlu1 %1924 }
 0x3c7   :  { %v10779_v14 = vpop.eup %10778  ;;  %2104 = vadd.xlane.f32.xlu1 %v2103_v49  ;;  %v2106_v57 = vsel %vm273_vm2, %v11920_v47, 0.0  ;;  %v1928_v13 = vpop.xlane.xlu0 %1927  ;;  %v1963_v52 = vsub.f32 %v11770_v37, %v1925_v62 }
 0x3c8   :  { %2107 = vadd.xlane.f32.xlu0 %v2106_v57  ;;  %v2164_v22 = vmul.f32 %v10779_v14, %v11754_v15  ;;  %v1964_v49 = vsub.f32 %v11772_v20, %v1928_v13  ;;  %v2902_v13 = vsel %vm2228_vm3, %v11638_v36, 0 }
 0x3ca   :  { %v2196_v50 = vpack.c.bf16 %v2164_v22, %v2164_v22 }
 0x3cc   :  { %9805 = vmatmul.mubr.msk.bf16.vlgmr.msra.gmra.mrb[80].mxu1 %vm273_vm2, %v2196_v50  ;;  %v2806_v50 = vsel %vm2228_vm3, %v11626_v10, 0 }
 0x3cd   :  { %v11930_v33 = vpop.eup %10780  ;;  %9815 = vmatpush3.bf16.msra.mxu1 %v2566_v42  ;;  %9816 = vmatprep.mubr.msk.bf16.mxu1 %vm11044_vm1, %v13876_v32 }
 0x3ce   :  { %v11934_v55 = vpop.eup %10782  ;;  %v2109_v41 = vsel %vm273_vm2, %v11930_v33, 0.0  ;;  %9826 = vmatprep.subr.bf16.mxu1 %v13876_v32  ;;  %v11945_v2 = vpop.xlane.xlu1 %1930 }
 0x3cf   :  { %v10785_v15 = vpop.eup %10784  ;;  %2110 = vadd.xlane.f32.xlu1 %v2109_v41  ;;  %v2112_v46 = vsel %vm273_vm2, %v11934_v55, 0.0  ;;  %v11949_v7 = vpop.xlane.xlu0 %1933  ;;  %v2854_v41 = vsel %vm2228_vm3, %v11660_v8, 0  ;;  %v1965_v37 = vsub.f32 %v11780_v21, %v11945_v2 }
 0x3d0   :  { %2113 = vadd.xlane.f32.xlu0 %v2112_v46  ;;  %v2166_v0 = vmul.f32 %v10785_v15, %v11766_v29  ;;  %v1966_v10 = vsub.f32 %v11782_v45, %v11949_v7 }
 0x3d1   :  { %v2027_v46 = vmul.f32 1.442695, %v1965_v37 }
 0x3d2   :  { %v2198_v60 = vpack.c.bf16 %v2166_v0, %v2166_v0  ;;  %v2029_v45 = vmul.f32 1.442695, %v1966_v10 }
 0x3d4   :  { %9817 = vmatmul.mubr.msk.bf16.vlgmr.msra.gmra.mrb[84].mxu1 %vm273_vm2, %v2198_v60  ;;  %v2950_v60 = vsel %vm2228_vm3, %v11624_v9, 0 }
 0x3d5   :  { %9827 = vmatpush3.bf16.msra.mxu1 %v2662_v51  ;;  %9828 = vmatprep.mubr.msk.bf16.mxu1 %vm11044_vm1, %v13876_v32 }
 0x3d6   :  { %9838 = vmatprep.subr.bf16.mxu1 %v13876_v32 }
 0x3d9   :  { %v2057_v39 = vpop.xlane.xlu1 %2056 }
 0x3da   :  { %10786 = vrcp.f32 %v2057_v39  ;;  %v2060_v29 = vpop.xlane.xlu0 %2059 }
 0x3db   :  { %10788 = vrcp.f32 %v2060_v29  ;;  %v2998_v29 = vsel %vm2228_vm3, %v11650_v1, 0 }
 0x3e0   :  { %3616 = vrot.lane.b32.xlu1 %v11374_v16, %s11048_s17 }
 0x3e1   :  { %v2063_v11 = vpop.xlane.xlu1 %2062 }
 0x3e2   :  { %10790 = vrcp.f32 %v2063_v11  ;;  %v2066_v3 = vpop.xlane.xlu0 %2065  ;;  %v3046_v11 = vsel %vm2228_vm3, %v11668_v40, 0 }
 0x3e3   :  { %10792 = vrcp.f32 %v2066_v3 }
 0x3e4   :  { %v10787_v35 = vpop.eup %10786 }
 0x3e5   :  { %v10789_v61 = vpop.eup %10788  ;;  %v2167_v28 = vmul.f32 %v10787_v35, %v11790_v56 }
 0x3e6   :  { %3568 = vrot.lane.b32.xlu0 %v11376_v17, %s11048_s17  ;;  %v2168_v6 = vmul.f32 %v10789_v61, %v11792_v59  ;;  %v13877_v61 = vld [vmem:[#allocation2_spill] sm:$0xff] }
 0x3e7   :  { %v2199_v18 = vpack.c.bf16 %v2167_v28, %v2167_v28  ;;  %v13878_v28 = vld [vmem:[#allocation3_spill] sm:$0xff] }
 0x3e8   :  { %v2069_v23 = vpop.xlane.xlu1 %2068  ;;  %v2200_v19 = vpack.c.bf16 %v2168_v6, %v2168_v6 }
 0x3e9   :  { %9823 = vmatmul.mubr.msk.bf16.vlgmr.msra.gmra.mrb[80].mxu0 %vm273_vm2, %v2199_v18  ;;  %10794 = vrcp.f32 %v2069_v23  ;;  %v2072_v16 = vpop.xlane.xlu0 %2071 }
 0x3ea   :  { %9833 = vmatpush3.bf16.msra.mxu0 %v2710_v5  ;;  %9829 = vmatmul.mubr.msk.bf16.vlgmr.msra.gmra.mrb[88].mxu1 %vm273_vm2, %v2200_v19  ;;  %10796 = vrcp.f32 %v2072_v16 }
 0x3eb   :  { %9839 = vmatpush3.bf16.msra.mxu1 %v2758_v38  ;;  %9834 = vmatprep.mubr.msk.bf16.mxu0 %vm11044_vm1, %v13876_v32 }
 0x3ec   :  { %v10791_v17 = vpop.eup %10790  ;;  %9840 = vmatprep.mubr.msk.bf16.mxu1 %vm11044_vm1, %v13876_v32  ;;  %9844 = vmatprep.subr.bf16.mxu0 %v13876_v32 }
 0x3ed   :  { %v10793_v53 = vpop.eup %10792  ;;  %9850 = vmatprep.subr.bf16.mxu1 %v13876_v32  ;;  %v2169_v56 = vmul.f32 %v10791_v17, %v11800_v43  ;;  %v2023_v43 = vmul.f32 1.442695, %v1963_v52  ;;  %v13879_v52 = vld [vmem:[#allocation4_spill] sm:$0xff] }
 0x3ee   :  { %v2170_v59 = vmul.f32 %v10793_v53, %v11802_v30  ;;  %v2025_v30 = vmul.f32 1.442695, %v1964_v49 }
 0x3ef   :  { %v2201_v14 = vpack.c.bf16 %v2169_v56, %v2169_v56 }
 0x3f0   :  { %v2075_v57 = vpop.xlane.xlu1 %2074  ;;  %v2202_v22 = vpack.c.bf16 %v2170_v59, %v2170_v59  ;;  %v3142_v59 = vsel %vm2228_vm3, %v13879_v52, 0 }
 0x3f1   :  { %9835 = vmatmul.mubr.msk.bf16.vlgmr.msra.gmra.mrb[84].mxu0 %vm273_vm2, %v2201_v14  ;;  %10798 = vrcp.f32 %v2075_v57  ;;  %v2078_v42 = vpop.xlane.xlu0 %2077 }
 0x3f2   :  { %9845 = vmatpush3.bf16.msra.mxu0 %v2806_v50  ;;  %9841 = vmatmul.mubr.msk.bf16.vlgmr.msra.gmra.mrb[92].mxu1 %vm273_vm2, %v2202_v22  ;;  %10800 = vrcp.f32 %v2078_v42  ;;  %v13880_v50 = vld [vmem:[#allocation5_spill] sm:$0xff] }
 0x3f3   :  { %v10795_v20 = vpop.eup %10794  ;;  %9851 = vmatpush3.bf16.msra.mxu1 %v2854_v41  ;;  %9846 = vmatprep.mubr.msk.bf16.mxu0 %vm11044_vm1, %v13876_v32  ;;  %10802 = vpow2.f32 %v2023_v43  ;;  %v3094_v42 = vsel %vm2228_vm3, %v13880_v50, 0 }
 0x3f4   :  { %v10797_v15 = vpop.eup %10796  ;;  %9852 = vmatprep.mubr.msk.bf16.mxu1 %vm11044_vm1, %v13876_v32  ;;  %9856 = vmatprep.subr.bf16.mxu0 %v13876_v32  ;;  %v2171_v8 = vmul.f32 %v10795_v20, %v11810_v63  ;;  %10804 = vpow2.f32 %v2025_v30 }
 0x3f5   :  { %9862 = vmatprep.subr.bf16.mxu1 %v13876_v32  ;;  %v2172_v21 = vmul.f32 %v10797_v15, %v11812_v34  ;;  %10806 = vpow2.f32 %v2027_v46  ;;  %v13882_v15 = vld [vmem:[#allocation6_spill] sm:$0xff] }
 0x3f6   :  { %v2203_v0 = vpack.c.bf16 %v2171_v8, %v2171_v8  ;;  %10808 = vpow2.f32 %v2029_v45  ;;  %v3190_v8 = vsel %vm2228_vm3, %v13882_v15, 0  ;;  %v13883_v45 = vld [vmem:[#allocation9_spill] sm:$0xff] }
 0x3f7   :  { %v2204_v62 = vpack.c.bf16 %v2172_v21, %v2172_v21 }
 0x3f9   :  { %9847 = vmatmul.mubr.msk.bf16.vlgmr.msra.gmra.mrb[88].mxu0 %vm273_vm2, %v2203_v0 }
 0x3fa   :  { %9853 = vmatmul.mubr.msk.bf16.vlgmr.msra.gmra.mrb[96].mxu1 %vm273_vm2, %v2204_v62  ;;  %9857 = vmatpush3.bf16.msra.mxu0 %v2902_v13  ;;  %v3334_v62 = vsel %vm2228_vm3, %v13883_v45, 0 }
 0x3fb   :  { %v10799_v63 = vpop.eup %10798  ;;  %9863 = vmatpush3.bf16.msra.mxu1 %v2950_v60  ;;  %9858 = vmatprep.mubr.msk.bf16.mxu0 %vm11044_vm1, %v13876_v32 }
 0x3fc   :  { %v10801_v34 = vpop.eup %10800  ;;  %9864 = vmatprep.mubr.msk.bf16.mxu1 %vm11044_vm1, %v13876_v32  ;;  %9868 = vmatprep.subr.bf16.mxu0 %v13876_v32  ;;  %v2173_v36 = vmul.f32 %v10799_v63, %v11818_v4  ;;  %v13884_v63 = vld [vmem:[#allocation8_spill] sm:$0xff] }
 0x3fd   :  { %9874 = vmatprep.subr.bf16.mxu1 %v13876_v32  ;;  %v2174_v9 = vmul.f32 %v10801_v34, %v11820_v54  ;;  %v12006_v7 = vpop.eup %10802  ;;  %v3286_v34 = vsel %vm2228_vm3, %v13884_v63, 0 }
 0x3fe   :  { %v2205_v51 = vpack.c.bf16 %v2173_v36, %v2173_v36  ;;  %v12008_v39 = vpop.eup %10804  ;;  %v2115_v4 = vsel %vm273_vm2, %v12006_v7, 0.0 }
 0x3ff   :  { %v2206_v2 = vpack.c.bf16 %v2174_v9, %v2174_v9  ;;  %v12020_v54 = vpop.eup %10806  ;;  %v2118_v1 = vsel %vm273_vm2, %v12008_v39, 0.0  ;;  %v13885_v9 = vld [vmem:[#allocation12_spill] sm:$0xff] }
 0x400   :  { %v12025_v3 = vpop.eup %10808  ;;  %v2121_v40 = vsel %vm273_vm2, %v12020_v54, 0.0 }
 0x401   :  { %9859 = vmatmul.mubr.msk.bf16.vlgmr.msra.gmra.mrb[92].mxu0 %vm273_vm2, %v2205_v51  ;;  %v2124_v35 = vsel %vm273_vm2, %v12025_v3, 0.0  ;;  %v3430_v51 = vsel %vm2228_vm3, %v13885_v9, 0 }
 0x402   :  { %9865 = vmatmul.mubr.msk.bf16.vlgmr.msra.gmra.mrb[100].mxu1 %vm273_vm2, %v2206_v2  ;;  %9869 = vmatpush3.bf16.msra.mxu0 %v2998_v29  ;;  %v13886_v29 = vld [vmem:[#allocation10_spill] sm:$0xff] }
 0x403   :  { %9875 = vmatpush3.bf16.msra.mxu1 %v3046_v11  ;;  %9876 = vmatprep.mubr.msk.bf16.mxu1 %vm11044_vm1, %v13876_v32  ;;  %v3382_v11 = vsel %vm2228_vm3, %v13886_v29, 0 }
 0x404   :  { %2116 = vadd.xlane.f32.xlu1 %v2115_v4  ;;  %9886 = vmatprep.subr.bf16.mxu1 %v13876_v32 }
 0x405   :  { %2119 = vadd.xlane.f32.xlu0 %v2118_v1  ;;  %9870 = vmatprep.mubr.msk.bf16.mxu0 %vm11044_vm1, %v13876_v32 }
 0x406   :  { %9880 = vmatprep.subr.bf16.mxu0 %v13876_v32 }
 0x408   :  { %2122 = vadd.xlane.f32.xlu1 %v2121_v40 }
 0x409   :  { %2125 = vadd.xlane.f32.xlu0 %v2124_v35 }
 0x419   :  { %3712 = vrot.lane.b32.xlu1 %v13877_v61, %s11048_s17 }
 0x41f   :  { %3664 = vrot.lane.b32.xlu0 %v13878_v28, %s11048_s17 }
 0x425   :  { %v2084_v6 = vpop.xlane.xlu0 %2083 }
 0x426   :  { %10810 = vrcp.f32 %v2084_v6 }
 0x429   :  { %v2081_v18 = vpop.xlane.xlu1 %2080 }
 0x42a   :  { %10812 = vrcp.f32 %v2081_v18  ;;  %v2090_v23 = vpop.xlane.xlu0 %2089 }
 0x42b   :  { %10814 = vrcp.f32 %v2090_v23 }
 0x42d   :  { %v2087_v19 = vpop.xlane.xlu1 %2086 }
 0x42e   :  { %10816 = vrcp.f32 %v2087_v19  ;;  %v2096_v5 = vpop.xlane.xlu0 %2095  ;;  %v13887_v19 = vld [vmem:[#allocation11_spill] sm:$0xff] }
 0x42f   :  { %10818 = vrcp.f32 %v2096_v5  ;;  %v3478_v5 = vsel %vm2228_vm3, %v13887_v19, 0 }
 0x430   :  { %v10811_v16 = vpop.eup %10810 }
 0x431   :  { %v2176_v38 = vmul.f32 %v10811_v16, %v11837_v25  ;;  %v13888_v16 = vld [vmem:[#allocation13_spill] sm:$0xff] }
 0x433   :  { %v2208_v17 = vpack.c.bf16 %v2176_v38, %v2176_v38  ;;  %v3526_v38 = vsel %vm2228_vm3, %v13888_v16, 0 }
 0x434   :  { %v10813_v53 = vpop.eup %10812 }
 0x435   :  { %v10815_v56 = vpop.eup %10814  ;;  %9877 = vmatmul.mubr.msk.bf16.vlgmr.msra.gmra.mrb[104].mxu1 %vm273_vm2, %v2208_v17  ;;  %v2175_v49 = vmul.f32 %v10813_v53, %v11842_v24  ;;  %v2102_v14 = vpop.xlane.xlu0 %2101 }
 0x436   :  { %9887 = vmatpush3.bf16.msra.mxu1 %v3142_v59  ;;  %9888 = vmatprep.mubr.msk.bf16.mxu1 %vm11044_vm1, %v13876_v32  ;;  %v2178_v25 = vmul.f32 %v10815_v56, %v11844_v58  ;;  %10820 = vrcp.f32 %v2102_v14  ;;  %v13881_v58 = vld [vmem:[#allocation7_spill] sm:$0xff] }
 0x437   :  { %v2207_v57 = vpack.c.bf16 %v2175_v49, %v2175_v49  ;;  %9898 = vmatprep.subr.bf16.mxu1 %v13876_v32  ;;  %v3238_v20 = vsel %vm2228_vm3, %v13881_v58, 0 }
 0x438   :  { %v10817_v22 = vpop.eup %10816  ;;  %v2210_v24 = vpack.c.bf16 %v2178_v25, %v2178_v25 }
 0x439   :  { %9871 = vmatmul.mubr.msk.bf16.vlgmr.msra.gmra.mrb[96].mxu0 %vm273_vm2, %v2207_v57  ;;  %v2093_v41 = vpop.xlane.xlu1 %2092  ;;  %v2177_v43 = vmul.f32 %v10817_v22, %v11851_v48  ;;  %v10819_v37 = vpop.eup %10818 }
 0x43a   :  { %9881 = vmatpush3.bf16.msra.mxu0 %v3094_v42  ;;  %10822 = vrcp.f32 %v2093_v41  ;;  %9882 = vmatprep.mubr.msk.bf16.mxu0 %vm11044_vm1, %v13876_v32  ;;  %v2180_v10 = vmul.f32 %v10819_v37, %v11853_v12 }
 0x43b   :  { %9892 = vmatprep.subr.bf16.mxu0 %v13876_v32  ;;  %v2209_v30 = vpack.c.bf16 %v2177_v43, %v2177_v43 }
 0x43c   :  { %v2212_v46 = vpack.c.bf16 %v2180_v10, %v2180_v10 }
 0x43d   :  { %9889 = vmatmul.mubr.msk.bf16.vlgmr.msra.gmra.mrb[108].mxu1 %vm273_vm2, %v2210_v24 }
 0x43e   :  { %9899 = vmatpush3.bf16.msra.mxu1 %v3238_v20  ;;  %9900 = vmatprep.mubr.msk.bf16.mxu1 %vm11044_vm1, %v13876_v32 }
 0x43f   :  { %9910 = vmatprep.subr.bf16.mxu1 %v13876_v32 }
 0x440   :  { %v10821_v21 = vpop.eup %10820 }
 0x441   :  { %9883 = vmatmul.mubr.msk.bf16.vlgmr.msra.gmra.mrb[100].mxu0 %vm273_vm2, %v2209_v30  ;;  %v2099_v48 = vpop.xlane.xlu1 %2098  ;;  %v2182_v60 = vmul.f32 %v10821_v21, %v11862_v26 }
 0x442   :  { %9893 = vmatpush3.bf16.msra.mxu0 %v3190_v8  ;;  %10824 = vrcp.f32 %v2099_v48  ;;  %9894 = vmatprep.mubr.msk.bf16.mxu0 %vm11044_vm1, %v13876_v32 }
 0x443   :  { %9904 = vmatprep.subr.bf16.mxu0 %v13876_v32  ;;  %v2214_v36 = vpack.c.bf16 %v2182_v60, %v2182_v60 }
 0x444   :  { %v10823_v0 = vpop.eup %10822 }
 0x445   :  { %9901 = vmatmul.mubr.msk.bf16.vlgmr.msra.gmra.mrb[112].mxu1 %vm273_vm2, %v2212_v46  ;;  %v2179_v12 = vmul.f32 %v10823_v0, %v11877_v27 }
 0x446   :  { %9911 = vmatpush3.bf16.msra.mxu1 %v3334_v62  ;;  %9912 = vmatprep.mubr.msk.bf16.mxu1 %vm11044_vm1, %v13876_v32 }
 0x447   :  { %v2211_v13 = vpack.c.bf16 %v2179_v12, %v2179_v12  ;;  %9922 = vmatprep.subr.bf16.mxu1 %v13876_v32 }
 0x449   :  { %9895 = vmatmul.mubr.msk.bf16.vlgmr.msra.gmra.mrb[104].mxu0 %vm273_vm2, %v2211_v13 }
 0x44a   :  { %9905 = vmatpush3.bf16.msra.mxu0 %v3286_v34  ;;  %9906 = vmatprep.mubr.msk.bf16.mxu0 %vm11044_vm1, %v13876_v32 }
 0x44b   :  { %9916 = vmatprep.subr.bf16.mxu0 %v13876_v32 }
 0x44c   :  { %v10825_v27 = vpop.eup %10824 }
 0x44d   :  { %9913 = vmatmul.mubr.msk.bf16.vlgmr.msra.gmra.mrb[116].mxu1 %vm273_vm2, %v2214_v36  ;;  %v2181_v26 = vmul.f32 %v10825_v27, %v11896_v44 }
 0x44e   :  { %9923 = vmatpush3.bf16.msra.mxu1 %v3430_v51  ;;  %9924 = vmatprep.mubr.msk.bf16.mxu1 %vm11044_vm1, %v13876_v32 }
 0x44f   :  { %v2213_v2 = vpack.c.bf16 %v2181_v26, %v2181_v26  ;;  %9934 = vmatprep.subr.bf16.mxu1 %v13876_v32 }
 0x451   :  { %9907 = vmatmul.mubr.msk.bf16.vlgmr.msra.gmra.mrb[108].mxu0 %vm273_vm2, %v2213_v2 }
 0x452   :  { %9917 = vmatpush3.bf16.msra.mxu0 %v3382_v11  ;;  %9918 = vmatprep.mubr.msk.bf16.mxu0 %vm11044_vm1, %v13876_v32 }
 0x453   :  { %9928 = vmatprep.subr.bf16.mxu0 %v13876_v32 }
 0x454   :  { %v2105_v4 = vpop.xlane.xlu1 %2104 }
 0x455   :  { %10826 = vrcp.f32 %v2105_v4  ;;  %v2108_v44 = vpop.xlane.xlu0 %2107 }
 0x456   :  { %10828 = vrcp.f32 %v2108_v44 }
 0x45c   :  { %v2111_v1 = vpop.xlane.xlu1 %2110 }
 0x45d   :  { %10830 = vrcp.f32 %v2111_v1  ;;  %v2114_v40 = vpop.xlane.xlu0 %2113 }
 0x45e   :  { %10832 = vrcp.f32 %v2114_v40 }
 0x45f   :  { %v10827_v35 = vpop.eup %10826 }
 0x460   :  { %v10829_v61 = vpop.eup %10828  ;;  %v2183_v28 = vmul.f32 %v10827_v35, %v11918_v31  ;;  %v3617_v52 = vpop.permute.xlu1 %3616 }
 0x461   :  { %v2184_v6 = vmul.f32 %v10829_v61, %v11920_v47  ;;  %v3569_v53 = vpop.permute.xlu0 %3568  ;;  %v3622_v57 = vsel %vm2228_vm3, %v3617_v52, 0 }
 0x462   :  { %v2215_v18 = vpack.c.bf16 %v2183_v28, %v2183_v28  ;;  %v3574_v14 = vsel %vm2228_vm3, %v3569_v53, 0 }
 0x463   :  { %v2216_v23 = vpack.c.bf16 %v2184_v6, %v2184_v6 }
 0x464   :  { %9919 = vmatmul.mubr.msk.bf16.vlgmr.msra.gmra.mrb[112].mxu0 %vm273_vm2, %v2215_v18 }
 0x465   :  { %9925 = vmatmul.mubr.msk.bf16.vlgmr.msra.gmra.mrb[120].mxu1 %vm273_vm2, %v2216_v23  ;;  %9929 = vmatpush3.bf16.msra.mxu0 %v3478_v5 }
 0x466   :  { %9935 = vmatpush3.bf16.msra.mxu1 %v3526_v38  ;;  %9930 = vmatprep.mubr.msk.bf16.mxu0 %vm11044_vm1, %v13876_v32 }
 0x467   :  { %v10831_v31 = vpop.eup %10830  ;;  %9936 = vmatprep.mubr.msk.bf16.mxu1 %vm11044_vm1, %v13876_v32  ;;  %9940 = vmatprep.subr.bf16.mxu0 %v13876_v32 }
 0x468   :  { %v10833_v47 = vpop.eup %10832  ;;  %9946 = vmatprep.subr.bf16.mxu1 %v13876_v32  ;;  %v2185_v17 = vmul.f32 %v10831_v31, %v11930_v33 }
 0x469   :  { %v2186_v56 = vmul.f32 %v10833_v47, %v11934_v55 }
 0x46a   :  { %v2217_v59 = vpack.c.bf16 %v2185_v17, %v2185_v17 }
 0x46b   :  { %v2218_v49 = vpack.c.bf16 %v2186_v56, %v2186_v56 }
 0x46c   :  { %9931 = vmatmul.mubr.msk.bf16.vlgmr.msra.gmra.mrb[116].mxu0 %vm273_vm2, %v2217_v59 }
 0x46d   :  { %9937 = vmatmul.mubr.msk.bf16.vlgmr.msra.gmra.mrb[124].mxu1 %vm273_vm2, %v2218_v49  ;;  %9941 = vmatpush3.bf16.msra.mxu0 %v3574_v14 }
 0x46e   :  { %9947 = vmatpush3.bf16.msra.mxu1 %v3622_v57  ;;  %9942 = vmatprep.mubr.msk.bf16.mxu0 %vm11044_vm1, %v13876_v32 }
 0x46f   :  { %9948 = vmatprep.mubr.msk.bf16.mxu1 %vm11044_vm1, %v13876_v32  ;;  %9952 = vmatprep.subr.bf16.mxu0 %v13876_v32 }
 0x470   :  { %9958 = vmatprep.subr.bf16.mxu1 %v13876_v32 }
 0x478   :  { %v12120_v33 = vpop.f32.mrb[72].mxu1 }
 0x479   :  { %v9782_v55 = vpop.f32.mrb[73].mxu1 }
 0x47a   :  { %v12122_v25 = vpop.f32.mrb[64].mxu0  ;;  %v2317_v22 = vpop.f32.mrb[74].mxu1 }
 0x47b   :  { %v9776_v50 = vpop.f32.mrb[65].mxu0  ;;  %v9783_v42 = vpop.f32.mrb[75].mxu1 }
 0x47c   :  { %v2269_v41 = vpop.f32.mrb[66].mxu0 }
 0x47d   :  { %v9777_v24 = vpop.f32.mrb[67].mxu0 }
 0x480   :  { %v12124_v43 = vpop.f32.mrb[76].mxu1 }
 0x481   :  { %v9794_v37 = vpop.f32.mrb[77].mxu1 }
 0x482   :  { %v12126_v58 = vpop.f32.mrb[68].mxu0  ;;  %v2413_v20 = vpop.f32.mrb[78].mxu1 }
 0x483   :  { %v9788_v30 = vpop.f32.mrb[69].mxu0  ;;  %v9795_v10 = vpop.f32.mrb[79].mxu1 }
 0x484   :  { %v2365_v15 = vpop.f32.mrb[70].mxu0 }
 0x485   :  { %v9789_v8 = vpop.f32.mrb[71].mxu0 }
 0x48a   :  { %v12128_v48 = vpop.f32.mrb[72].mxu0 }
 0x48b   :  { %v9800_v21 = vpop.f32.mrb[73].mxu0 }
 0x48c   :  { %v2461_v46 = vpop.f32.mrb[74].mxu0 }
 0x48d   :  { %v9801_v0 = vpop.f32.mrb[75].mxu0 }
 0x491   :  { %v2117_v45 = vpop.xlane.xlu1 %2116 }
 0x492   :  { %10834 = vrcp.f32 %v2117_v45  ;;  %v2120_v62 = vpop.xlane.xlu0 %2119  ;;  %v12130_v12 = vpop.f32.mrb[76].mxu0 }
 0x493   :  { %10836 = vrcp.f32 %v2120_v62  ;;  %v9812_v13 = vpop.f32.mrb[77].mxu0 }
 0x494   :  { %v2557_v60 = vpop.f32.mrb[78].mxu0 }
 0x495   :  { %v2123_v63 = vpop.xlane.xlu1 %2122  ;;  %v9813_v34 = vpop.f32.mrb[79].mxu0 }
 0x496   :  { %10838 = vrcp.f32 %v2123_v63  ;;  %v2126_v36 = vpop.xlane.xlu0 %2125 }
 0x497   :  { %10840 = vrcp.f32 %v2126_v36 }
 0x499   :  { %v3713_v29 = vpop.permute.xlu1 %3712 }
 0x49a   :  { %v3665_v26 = vpop.permute.xlu0 %3664  ;;  %v3718_v6 = vsel %vm2228_vm3, %v3713_v29, 0 }
 0x49b   :  { %v3670_v61 = vsel %vm2228_vm3, %v3665_v26, 0 }
 0x49c   :  { %v10835_v27 = vpop.eup %10834 }
 0x49d   :  { %v10837_v9 = vpop.eup %10836  ;;  %v2187_v51 = vmul.f32 %v10835_v27, %v12006_v7 }
 0x49e   :  { %v2188_v2 = vmul.f32 %v10837_v9, %v12008_v39 }
 0x49f   :  { %v12134_v11 = vpop.f32.mrb[80].mxu1  ;;  %v2219_v4 = vpack.c.bf16 %v2187_v51, %v2187_v51 }
 0x4a0   :  { %v10839_v44 = vpop.eup %10838  ;;  %v9806_v1 = vpop.f32.mrb[81].mxu1  ;;  %v2220_v40 = vpack.c.bf16 %v2188_v2, %v2188_v2 }
 0x4a1   :  { %v10841_v35 = vpop.eup %10840  ;;  %v2509_v28 = vpop.f32.mrb[82].mxu1  ;;  %9943 = vmatmul.mubr.msk.bf16.vlgmr.msra.gmra.mrb[120].mxu0 %vm273_vm2, %v2219_v4  ;;  %v2189_v7 = vmul.f32 %v10839_v44, %v12020_v54 }
 0x4a2   :  { %v9807_v18 = vpop.f32.mrb[83].mxu1  ;;  %9949 = vmatmul.mubr.msk.bf16.vlgmr.msra.gmra.mrb[128].mxu1 %vm273_vm2, %v2220_v40  ;;  %9953 = vmatpush3.bf16.msra.mxu0 %v3670_v61  ;;  %v2190_v39 = vmul.f32 %v10841_v35, %v12025_v3 }
 0x4a3   :  { %9959 = vmatpush3.bf16.msra.mxu1 %v3718_v6  ;;  %9954 = vmatprep.mubr.msk.bf16.mxu0 %vm11044_vm1, %v13876_v32  ;;  %v2221_v19 = vpack.c.bf16 %v2189_v7, %v2189_v7 }
 0x4a4   :  { %9960 = vmatprep.mubr.msk.bf16.mxu1 %vm11044_vm1, %v13876_v32  ;;  %v2222_v16 = vpack.c.bf16 %v2190_v39, %v2190_v39 }
 0x4a7   :  { %v12146_v23 = vpop.f32.mrb[84].mxu1 }
 0x4a8   :  { %v9818_v5 = vpop.f32.mrb[85].mxu1 }
 0x4a9   :  { %v2605_v38 = vpop.f32.mrb[86].mxu1  ;;  %9955 = vmatmul.mubr.msk.bf16.vlgmr.msra.gmra.mrb[124].mxu0 %vm273_vm2, %v2221_v19 }
 0x4aa   :  { %v9819_v31 = vpop.f32.mrb[87].mxu1  ;;  %9961 = vmatmul.mubr.msk.bf16.vlgmr.msra.gmra.mrb[132].mxu1 %vm273_vm2, %v2222_v16 }
 0x4bc   :  { %v2650_v47 = vpop.f32.mrb[80].mxu0 }
 0x4bd   :  { %v2698_v17 = vpop.f32.mrb[88].mxu1  ;;  %v9824_v53 = vpop.f32.mrb[81].mxu0 }
 0x4be   :  { %v10514_v54 = vpack.i.bf16 %v2698_v17, %v2650_v47  ;;  %v9830_v56 = vpop.f32.mrb[89].mxu1  ;;  %v2653_v52 = vpop.f32.mrb[82].mxu0 }
 0x4bf   :  { %v2701_v59 = vpop.f32.mrb[90].mxu1  ;;  %v9825_v49 = vpop.f32.mrb[83].mxu0 }
 0x4c0   :  { %10515 = vrot.lane.b32.xlu0 %v10514_v54, %s11049_s18  ;;  %v9831_v3 = vpop.f32.mrb[91].mxu1 }
 0x4c4   :  { %v2746_v14 = vpop.f32.mrb[84].mxu0 }
 0x4c5   :  { %v2794_v57 = vpop.f32.mrb[92].mxu1  ;;  %v9836_v55 = vpop.f32.mrb[85].mxu0 }
 0x4c6   :  { %v10519_v22 = vpack.i.bf16 %v2794_v57, %v2746_v14  ;;  %v9842_v50 = vpop.f32.mrb[93].mxu1  ;;  %v2749_v42 = vpop.f32.mrb[86].mxu0 }
 0x4c7   :  { %v2797_v41 = vpop.f32.mrb[94].mxu1  ;;  %v9837_v24 = vpop.f32.mrb[87].mxu0 }
 0x4c8   :  { %10520 = vrot.lane.b32.xlu1 %v10519_v22, %s11049_s18  ;;  %v9843_v37 = vpop.f32.mrb[95].mxu1 }
 0x4c9   :  { %v10696_v37 = vld [vmem:[%s13839_s3] sm:$0xff]  }
 0x4ca   :  { %9964 = vmatprep.subr.bf16.mxu0 %v10696_v37 }
 0x4cb   :  { %9965 = vmatpush3.bf16.msra.mxu0 %v10696_v37 }
 0x4cc   :  { %v12152_v20 = vpop.f32.mrb[88].mxu0 }
 0x4cd   :  { %v12154_v30 = vpop.f32.mrb[96].mxu1  ;;  %v9848_v10 = vpop.f32.mrb[89].mxu0 }
 0x4ce   :  { %v10544_v15 = vpack.i.bf16 %v12154_v30, %v12152_v20  ;;  %v9854_v8 = vpop.f32.mrb[97].mxu1  ;;  %v2845_v21 = vpop.f32.mrb[90].mxu0 }
 0x4cf   :  { %v2893_v46 = vpop.f32.mrb[98].mxu1  ;;  %v9849_v0 = vpop.f32.mrb[91].mxu0  ;;  %v10697_v8 = vld [vmem:[%s13839_s3 + $0x8] sm:$0xff]  }
 0x4d0   :  { %v9855_v45 = vpop.f32.mrb[99].mxu1  ;;  %9966 = vmatprep.subr.bf16.mxu0 %v10697_v8 }
 0x4d1   :  { %9967 = vmatpush3.bf16.msra.mxu0 %v10697_v8 }
 0x4d4   :  { %v12158_v62 = vpop.f32.mrb[92].mxu0 }
 0x4d5   :  { %v12160_v13 = vpop.f32.mrb[100].mxu1  ;;  %v9860_v60 = vpop.f32.mrb[93].mxu0 }
 0x4d6   :  { %v10549_v63 = vpack.i.bf16 %v12160_v13, %v12158_v62  ;;  %v9866_v34 = vpop.f32.mrb[101].mxu1  ;;  %v2941_v36 = vpop.f32.mrb[94].mxu0 }
 0x4d7   :  { %v2989_v27 = vpop.f32.mrb[102].mxu1  ;;  %v9861_v9 = vpop.f32.mrb[95].mxu0 }
 0x4d8   :  { %v9867_v51 = vpop.f32.mrb[103].mxu1 }
 0x508   :  { %v3082_v26 = vpop.f32.mrb[104].mxu1 }
 0x509   :  { %v9878_v2 = vpop.f32.mrb[105].mxu1 }
 0x50a   :  { %v3085_v29 = vpop.f32.mrb[106].mxu1 }
 0x50b   :  { %v9879_v4 = vpop.f32.mrb[107].mxu1 }
 0x50c   :  { %v3034_v44 = vpop.f32.mrb[96].mxu0 }
 0x50d   :  { %v10524_v1 = vpack.i.bf16 %v3082_v26, %v3034_v44  ;;  %v9872_v40 = vpop.f32.mrb[97].mxu0 }
 0x50e   :  { %v3037_v35 = vpop.f32.mrb[98].mxu0 }
 0x50f   :  { %v9873_v61 = vpop.f32.mrb[99].mxu0  ;;  %10525 = vrot.lane.b32.xlu0 %v10524_v1, %s11050_s19 }
 0x510   :  { %v3178_v28 = vpop.f32.mrb[108].mxu1 }
 0x511   :  { %v9890_v6 = vpop.f32.mrb[109].mxu1 }
 0x512   :  { %v3181_v18 = vpop.f32.mrb[110].mxu1 }
 0x513   :  { %v9891_v7 = vpop.f32.mrb[111].mxu1 }
 0x514   :  { %v3130_v39 = vpop.f32.mrb[100].mxu0 }
 0x515   :  { %v10529_v19 = vpack.i.bf16 %v3178_v28, %v3130_v39  ;;  %v9884_v5 = vpop.f32.mrb[101].mxu0 }
 0x516   :  { %v3133_v16 = vpop.f32.mrb[102].mxu0 }
 0x517   :  { %v9885_v38 = vpop.f32.mrb[103].mxu0  ;;  %10530 = vrot.lane.b32.xlu1 %v10529_v19, %s11050_s19 }
 0x518   :  { %v3274_v31 = vpop.f32.mrb[112].mxu1 }
 0x519   :  { %v9902_v47 = vpop.f32.mrb[113].mxu1 }
 0x51a   :  { %v3277_v17 = vpop.f32.mrb[114].mxu1 }
 0x51b   :  { %v9903_v53 = vpop.f32.mrb[115].mxu1 }
 0x51c   :  { %v3226_v54 = vpop.f32.mrb[104].mxu0 }
 0x51d   :  { %v10554_v56 = vpack.i.bf16 %v3274_v31, %v3226_v54  ;;  %v9896_v52 = vpop.f32.mrb[105].mxu0 }
 0x51e   :  { %v3229_v59 = vpop.f32.mrb[106].mxu0 }
 0x51f   :  { %v9897_v49 = vpop.f32.mrb[107].mxu0 }
 0x520   :  { %v3370_v3 = vpop.f32.mrb[116].mxu1 }
 0x521   :  { %v9914_v14 = vpop.f32.mrb[117].mxu1 }
 0x522   :  { %v3373_v57 = vpop.f32.mrb[118].mxu1 }
 0x523   :  { %v9915_v55 = vpop.f32.mrb[119].mxu1 }
 0x524   :  { %v3322_v22 = vpop.f32.mrb[108].mxu0 }
 0x525   :  { %v10559_v50 = vpack.i.bf16 %v3370_v3, %v3322_v22  ;;  %v9908_v42 = vpop.f32.mrb[109].mxu0 }
 0x526   :  { %v3325_v41 = vpop.f32.mrb[110].mxu0 }
 0x527   :  { %v9909_v24 = vpop.f32.mrb[111].mxu0 }
 0x532   :  { %v10516_v47 = vpop.permute.xlu0 %10515 }
 0x533   :  { %v10518_v53 = vunpack.i.h.bf16 %v10516_v47  ;;  %v10517_v54 = vunpack.i.l.bf16 %v10516_v47 }
 0x535   :  { %v3857_v3 = vsel %vm273_vm2, %v12120_v33, %v10518_v53  ;;  %v3856_v14 = vsel %vm273_vm2, %v12122_v25, %v10517_v54 }
 0x537   :  { %v3418_v10 = vpop.f32.mrb[112].mxu0 }
 0x538   :  { %v3466_v21 = vpop.f32.mrb[120].mxu1  ;;  %v9920_v46 = vpop.f32.mrb[113].mxu0 }
 0x539   :  { %v10534_v0 = vpack.i.bf16 %v3466_v21, %v3418_v10  ;;  %v9926_v45 = vpop.f32.mrb[121].mxu1  ;;  %v3421_v60 = vpop.f32.mrb[114].mxu0 }
 0x53a   :  { %v3469_v34 = vpop.f32.mrb[122].mxu1  ;;  %v9921_v36 = vpop.f32.mrb[115].mxu0 }
 0x53b   :  { %10535 = vrot.lane.b32.xlu0 %v10534_v0, %s11051_s24  ;;  %v9927_v27 = vpop.f32.mrb[123].mxu1  ;;  %v10521_v59 = vpop.permute.xlu1 %10520 }
 0x53c   :  { %v10523_v10 = vunpack.i.h.bf16 %v10521_v59  ;;  %v10522_v8 = vunpack.i.l.bf16 %v10521_v59 }
 0x53e   :  { %v3859_v25 = vsel %vm273_vm2, %v12124_v43, %v10523_v10  ;;  %v3858_v0 = vsel %vm273_vm2, %v12126_v58, %v10522_v8  ;;  %v11037_v8 = vld [vmem:[%s13837_s0 + $0x18] sm:$0xff] }
 0x53f   :  { %10545 = vrot.lane.b32.xlu0 %v10544_v15, %s11049_s18  ;;  %v3514_v9 = vpop.f32.mrb[116].mxu0 }
 0x540   :  { %v3562_v51 = vpop.f32.mrb[124].mxu1  ;;  %v9932_v26 = vpop.f32.mrb[117].mxu0 }
 0x541   :  { %v10539_v2 = vpack.i.bf16 %v3562_v51, %v3514_v9  ;;  %v9938_v29 = vpop.f32.mrb[125].mxu1  ;;  %v3517_v4 = vpop.f32.mrb[118].mxu0 }
 0x542   :  { %v3565_v44 = vpop.f32.mrb[126].mxu1  ;;  %v9933_v1 = vpop.f32.mrb[119].mxu0 }
 0x543   :  { %10555 = vrot.lane.b32.xlu0 %v10554_v56, %s11050_s19  ;;  %10540 = vrot.lane.b32.xlu1 %v10539_v2, %s11051_s24  ;;  %v9939_v40 = vpop.f32.mrb[127].mxu1 }
 0x547   :  { %10550 = vrot.lane.b32.xlu1 %v10549_v63, %s11049_s18 }
 0x54b   :  { %10560 = vrot.lane.b32.xlu1 %v10559_v50, %s11050_s19 }
 0x574   :  { %v3610_v20 = vpop.f32.mrb[120].mxu0 }
 0x575   :  { %v3658_v30 = vpop.f32.mrb[128].mxu1  ;;  %v9944_v15 = vpop.f32.mrb[121].mxu0 }
 0x576   :  { %v10564_v35 = vpack.i.bf16 %v3658_v30, %v3610_v20  ;;  %v9950_v61 = vpop.f32.mrb[129].mxu1  ;;  %v3613_v28 = vpop.f32.mrb[122].mxu0 }
 0x577   :  { %v3661_v6 = vpop.f32.mrb[130].mxu1  ;;  %v9945_v18 = vpop.f32.mrb[123].mxu0 }
 0x578   :  { %10565 = vrot.lane.b32.xlu0 %v10564_v35, %s11051_s24  ;;  %v9951_v7 = vpop.f32.mrb[131].mxu1 }
 0x57c   :  { %v3706_v39 = vpop.f32.mrb[124].mxu0 }
 0x57d   :  { %v3754_v19 = vpop.f32.mrb[132].mxu1  ;;  %v9956_v5 = vpop.f32.mrb[125].mxu0 }
 0x57e   :  { %v10569_v16 = vpack.i.bf16 %v3754_v19, %v3706_v39  ;;  %v9962_v38 = vpop.f32.mrb[133].mxu1  ;;  %v3709_v62 = vpop.f32.mrb[126].mxu0 }
 0x57f   :  { %v3757_v13 = vpop.f32.mrb[134].mxu1  ;;  %v9957_v63 = vpop.f32.mrb[127].mxu0 }
 0x580   :  { %v9963_v31 = vpop.f32.mrb[135].mxu1  ;;  %10570 = vrot.lane.b32.xlu1 %v10569_v16, %s11051_s24 }
 0x581   :  { %v10526_v17 = vpop.permute.xlu0 %10525 }
 0x582   :  { %v10528_v56 = vunpack.i.h.bf16 %v10526_v17  ;;  %v10527_v52 = vunpack.i.l.bf16 %v10526_v17 }
 0x584   :  { %v3865_v22 = vsel %vm3864_vm4, %v3856_v14, %v10527_v52  ;;  %v3866_v50 = vsel %vm3864_vm4, %v3857_v3, %v10528_v56 }
 0x589   :  { %v10531_v42 = vpop.permute.xlu1 %10530 }
 0x58a   :  { %v10533_v21 = vunpack.i.h.bf16 %v10531_v42  ;;  %v10532_v46 = vunpack.i.l.bf16 %v10531_v42 }
 0x58c   :  { %v3868_v34 = vsel %vm3864_vm4, %v3859_v25, %v10533_v21  ;;  %v3867_v36 = vsel %vm3864_vm4, %v3858_v0, %v10532_v46 }
 0x5ad   :  { %v10536_v49 = vpop.permute.xlu0 %10535 }
 0x5ae   :  { %v10538_v57 = vunpack.i.h.bf16 %v10536_v49  ;;  %v10537_v55 = vunpack.i.l.bf16 %v10536_v49  ;;  %v11034_v49 = vld [vmem:[%s13837_s0 + $0x10] sm:$0xff] }
 0x5b0   :  { %v3874_v41 = vsel %vm3873_vm5, %v3865_v22, %v10537_v55  ;;  %v3875_v24 = vsel %vm3873_vm5, %v3866_v50, %v10538_v57  ;;  %v11035_v57 = vld [vmem:[%s13837_s0] sm:$0xff] }
 0x5b1   :  { %v3882_v37 = vpack.c.bf16 %v3875_v24, %v3874_v41  ;;  %v10546_v26 = vpop.permute.xlu0 %10545  ;;  %v11036_v41 = vld [vmem:[%s13837_s0 + $0x8] sm:$0xff] }
 0x5b2   :  { %v10548_v29 = vunpack.i.h.bf16 %v10546_v26  ;;  %v10547_v43 = vunpack.i.l.bf16 %v10546_v26 }
 0x5b3   :  { %9968 = vmatprep.mubr.msk.bf16.mxu0 %vm80_vm0, %v3882_v37 }
 0x5b4   :  { %v3861_v40 = vsel %vm273_vm2, %v12134_v11, %v10548_v29  ;;  %v3860_v20 = vsel %vm273_vm2, %v12128_v48, %v10547_v43 }
 0x5b5   :  { %v10541_v33 = vpop.permute.xlu1 %10540  ;;  %v10556_v2 = vpop.permute.xlu0 %10555 }
 0x5b6   :  { %v10543_v45 = vunpack.i.h.bf16 %v10541_v33  ;;  %v10542_v60 = vunpack.i.l.bf16 %v10541_v33  ;;  %v10558_v44 = vunpack.i.h.bf16 %v10556_v2  ;;  %v10557_v58 = vunpack.i.l.bf16 %v10556_v2 }
 0x5b8   :  { %v3877_v27 = vsel %vm3873_vm5, %v3868_v34, %v10543_v45  ;;  %v3876_v9 = vsel %vm3873_vm5, %v3867_v36, %v10542_v60  ;;  %v3869_v35 = vsel %vm3864_vm4, %v3860_v20, %v10557_v58  ;;  %v3870_v61 = vsel %vm3864_vm4, %v3861_v40, %v10558_v44  ;;  %v11038_v44 = vld [vmem:[%s13837_s0 + $0x30] sm:$0xff] }
 0x5b9   :  { %v3883_v51 = vpack.c.bf16 %v3877_v27, %v3876_v9  ;;  %v10551_v4 = vpop.permute.xlu1 %10550  ;;  %v10698_v9 = vld [vmem:[%s13841_s7] sm:$0xff]  }
 0x5ba   :  { %v10553_v39 = vunpack.i.h.bf16 %v10551_v4  ;;  %v10552_v19 = vunpack.i.l.bf16 %v10551_v4  ;;  %9976 = vmatprep.subr.bf16.mxu1 %v10698_v9 }
 0x5bb   :  { %9969 = vmatmul.mubr.msk.bf16.vlgmr.msra.gmra.mrb[128].mxu0 %vm80_vm0, %v3883_v51  ;;  %v10699_v51 = vld [vmem:[%s13841_s7 + $0x8] sm:$0xff]   ;;  %9977 = vmatpush3.bf16.msra.mxu1 %v10698_v9 }
 0x5bc   :  { %v3863_v48 = vsel %vm273_vm2, %v12146_v23, %v10553_v39  ;;  %v3862_v38 = vsel %vm273_vm2, %v12130_v12, %v10552_v19  ;;  %v9107_v23 = vld [vmem:[%s13840_s4] ss:$0 sm:$0xff]  ;;  %9978 = vmatprep.subr.bf16.mxu1 %v10699_v51 }
 0x5bd   :  { %v10561_v28 = vpop.permute.xlu1 %10560 }
 0x5be   :  { %v10563_v5 = vunpack.i.h.bf16 %v10561_v28  ;;  %v10562_v16 = vunpack.i.l.bf16 %v10561_v28 }
 0x5bf   :  { %9979 = vmatpush3.bf16.msra.mxu1 %v10699_v51 }
 0x5c0   :  { %v3871_v63 = vsel %vm3864_vm4, %v3862_v38, %v10562_v16  ;;  %v3872_v31 = vsel %vm3864_vm4, %v3863_v48, %v10563_v5 }
 0x5ea   :  { %v10566_v1 = vpop.permute.xlu0 %10565 }
 0x5eb   :  { %v10568_v30 = vunpack.i.h.bf16 %v10566_v1  ;;  %v10567_v15 = vunpack.i.l.bf16 %v10566_v1 }
 0x5ed   :  { %v3878_v6 = vsel %vm3873_vm5, %v3869_v35, %v10567_v15  ;;  %v3879_v18 = vsel %vm3873_vm5, %v3870_v61, %v10568_v30  ;;  %v11039_v30 = vld [vmem:[%s13837_s0 + $0x20] sm:$0xff]  ;;  %v11040_v35 = vld [vmem:[%s13837_s0 + $0x38] sm:$0xff] }
 0x5ee   :  { %v3884_v7 = vpack.c.bf16 %v3879_v18, %v3878_v6  ;;  %v11041_v6 = vld [vmem:[%s13837_s0 + $0x28] sm:$0xff] }
 0x5f0   :  { %9972 = vmatprep.mubr.msk.bf16.mxu0 %vm80_vm0, %v3884_v7 }
 0x5f2   :  { %v10571_v11 = vpop.permute.xlu1 %10570 }
 0x5f3   :  { %v10573_v62 = vunpack.i.h.bf16 %v10571_v11  ;;  %v10572_v13 = vunpack.i.l.bf16 %v10571_v11 }
 0x5f5   :  { %v3881_v47 = vsel %vm3873_vm5, %v3872_v31, %v10573_v62  ;;  %v3880_v17 = vsel %vm3873_vm5, %v3871_v63, %v10572_v13  ;;  %v10700_v31 = vld [vmem:[%s13842_s9] sm:$0xff]  }
 0x5f6   :  { %v3885_v53 = vpack.c.bf16 %v3881_v47, %v3880_v17  ;;  %v10701_v47 = vld [vmem:[%s13842_s9 + $0x8] sm:$0xff]   ;;  %9988 = vmatprep.subr.bf16.mxu0 %v10700_v31 }
 0x5f7   :  { %9989 = vmatpush3.bf16.msra.mxu0 %v10700_v31 }
 0x5f8   :  { %9973 = vmatmul.mubr.msk.bf16.gmra.mrb[132].mxu0 %vm80_vm0, %v3885_v53  ;;  %9990 = vmatprep.subr.bf16.mxu0 %v10701_v47 }
 0x5fb   :  { %9991 = vmatpush3.bf16.msra.mxu0 %v10701_v47 }
 0x68e   :  { %v9970_v54 = vpop.f32.mrb[128].mxu0 }
 0x68f   :  { %v3964_v56 = vadd.f32 %v9970_v54, %v9107_v23  ;;  %v3955_v12 = vpop.f32.mrb[129].mxu0 }
 0x690   :  { %v3956_v52 = vadd.f32 %v9107_v23, %v3955_v12  ;;  %v9971_v59 = vpop.f32.mrb[130].mxu0 }
 0x691   :  { %v12228_v3 = vadd.f32 %v11034_v49, %v3964_v56  ;;  %v3958_v14 = vpop.f32.mrb[131].mxu0  ;;  %v3967_v50 = vadd.f32 %v9971_v59, %v9107_v23 }
 0x692   :  { %v12233_v55 = vadd.f32 %v11035_v57, %v3956_v52  ;;  %v3959_v22 = vadd.f32 %v9107_v23, %v3958_v14 }
 0x693   :  { %v4002_v42 = vsel %vm80_vm0, %v12228_v3, 0.0  ;;  %v12249_v21 = vadd.f32 %v11037_v8, %v3967_v50  ;;  %v4031_v25 = vmul.f32 %v12228_v3, %v12228_v3 }
 0x694   :  { %v12240_v24 = vadd.f32 %v11036_v41, %v3959_v22  ;;  %4003 = vadd.xlane.f32.xlu0 %v4002_v42  ;;  %v4029_v10 = vmul.f32 %v12233_v55, %v12233_v55  ;;  %v3996_v46 = vsel %vm80_vm0, %v12233_v55, 0.0 }
 0x695   :  { %v4005_v0 = vsel %vm80_vm0, %v12249_v21, 0.0  ;;  %v4043_v60 = vsel %vm80_vm0, %v4031_v25, 0.0  ;;  %v4032_v36 = vmul.f32 %v12249_v21, %v12249_v21 }
 0x696   :  { %v3999_v37 = vsel %vm80_vm0, %v12240_v24, 0.0  ;;  %v4037_v33 = vsel %vm80_vm0, %v4029_v10, 0.0  ;;  %v4030_v45 = vmul.f32 %v12240_v24, %v12240_v24 }
 0x697   :  { %4000 = vadd.xlane.f32.xlu1 %v3999_v37  ;;  %v4046_v27 = vsel %vm80_vm0, %v4032_v36, 0.0 }
 0x698   :  { %3997 = vadd.xlane.f32.xlu0 %v3996_v46  ;;  %v4040_v34 = vsel %vm80_vm0, %v4030_v45, 0.0 }
 0x69b   :  { %4038 = vadd.xlane.f32.xlu1 %v4037_v33 }
 0x69c   :  { %4006 = vadd.xlane.f32.xlu0 %v4005_v0 }
 0x69f   :  { %4044 = vadd.xlane.f32.xlu1 %v4043_v60 }
 0x6a0   :  { %4041 = vadd.xlane.f32.xlu0 %v4040_v34 }
 0x6a4   :  { %4047 = vadd.xlane.f32.xlu0 %v4046_v27 }
 0x6cb   :  { %v9974_v26 = vpop.f32.mrb[132].mxu0 }
 0x6cc   :  { %v3980_v2 = vadd.f32 %v9974_v26, %v9107_v23  ;;  %v3971_v29 = vpop.f32.mrb[133].mxu0 }
 0x6cd   :  { %v3972_v43 = vadd.f32 %v9107_v23, %v3971_v29  ;;  %v9975_v4 = vpop.f32.mrb[134].mxu0  ;;  %v12321_v29 = vld [vmem:[%s13843_s5] ss:$0 sm:$0xff] }
 0x6ce   :  { %v12274_v58 = vadd.f32 %v11038_v44, %v3980_v2  ;;  %v3983_v1 = vadd.f32 %v9975_v4, %v9107_v23  ;;  %v3974_v40 = vpop.f32.mrb[135].mxu0 }
 0x6cf   :  { %v3975_v20 = vadd.f32 %v9107_v23, %v3974_v40  ;;  %v12279_v15 = vadd.f32 %v11039_v30, %v3972_v43 }
 0x6d0   :  { %v12284_v61 = vadd.f32 %v11040_v35, %v3983_v1  ;;  %v4014_v28 = vsel %vm80_vm0, %v12274_v58, 0.0  ;;  %v4035_v48 = vmul.f32 %v12274_v58, %v12274_v58 }
 0x6d1   :  { %4015 = vadd.xlane.f32.xlu1 %v4014_v28  ;;  %v12291_v18 = vadd.f32 %v11041_v6, %v3975_v20  ;;  %v4008_v39 = vsel %vm80_vm0, %v12279_v15, 0.0  ;;  %v4033_v19 = vmul.f32 %v12279_v15, %v12279_v15 }
 0x6d2   :  { %v4017_v7 = vsel %vm80_vm0, %v12284_v61, 0.0  ;;  %v4036_v62 = vmul.f32 %v12284_v61, %v12284_v61  ;;  %v4055_v13 = vsel %vm80_vm0, %v4035_v48, 0.0 }
 0x6d3   :  { %4018 = vadd.xlane.f32.xlu0 %v4017_v7  ;;  %v4011_v5 = vsel %vm80_vm0, %v12291_v18, 0.0  ;;  %v4034_v16 = vmul.f32 %v12291_v18, %v12291_v18  ;;  %v4049_v11 = vsel %vm80_vm0, %v4033_v19, 0.0 }
 0x6d4   :  { %v4058_v63 = vsel %vm80_vm0, %v4036_v62, 0.0 }
 0x6d5   :  { %4009 = vadd.xlane.f32.xlu1 %v4008_v39  ;;  %v4052_v38 = vsel %vm80_vm0, %v4034_v16, 0.0 }
 0x6d7   :  { %4012 = vadd.xlane.f32.xlu0 %v4011_v5 }
 0x6d9   :  { %4050 = vadd.xlane.f32.xlu1 %v4049_v11 }
 0x6db   :  { %4053 = vadd.xlane.f32.xlu0 %v4052_v38 }
 0x6dd   :  { %4056 = vadd.xlane.f32.xlu1 %v4055_v13 }
 0x6df   :  { %4059 = vadd.xlane.f32.xlu0 %v4058_v63 }
 0x721   :  { %v4004_v17 = vpop.xlane.xlu0 %4003 }
 0x722   :  { %v4023_v52 = vmul.f32 0.03125, %v4004_v17 }
 0x724   :  { %v4001_v53 = vpop.xlane.xlu1 %4000  ;;  %v4071_v50 = vmul.f32 %v4023_v52, %v4023_v52  ;;  %v4087_v4 = vsub.f32 %v12228_v3, %v4023_v52 }
 0x725   :  { %v3998_v23 = vpop.xlane.xlu0 %3997  ;;  %v4022_v14 = vmul.f32 0.03125, %v4001_v53 }
 0x726   :  { %v4021_v54 = vmul.f32 0.03125, %v3998_v23 }
 0x727   :  { %v4070_v10 = vmul.f32 %v4022_v14, %v4022_v14  ;;  %v4086_v44 = vsub.f32 %v12240_v24, %v4022_v14 }
 0x728   :  { %v4069_v56 = vmul.f32 %v4021_v54, %v4021_v54  ;;  %v4039_v12 = vpop.xlane.xlu1 %4038  ;;  %v4085_v26 = vsub.f32 %v12233_v55, %v4021_v54  ;;  %v12329_v55 = vld [vmem:[%s13844_s6] ss:$0 sm:$0xff] }
 0x729   :  { %v4061_v59 = vmul.f32 0.03125, %v4039_v12  ;;  %v4007_v49 = vpop.xlane.xlu0 %4006 }
 0x72a   :  { %v4024_v8 = vmul.f32 0.03125, %v4007_v49 }
 0x72b   :  { %v4077_v57 = vsub.f32 %v4061_v59, %v4069_v56 }
 0x72c   :  { %v4045_v22 = vpop.xlane.xlu1 %4044  ;;  %v4072_v60 = vmul.f32 %v4024_v8, %v4024_v8  ;;  %v4088_v35 = vsub.f32 %v12249_v21, %v4024_v8 }
 0x72d   :  { %v4093_v42 = vadd.f32 1e-05, %v4077_v57  ;;  %v4063_v41 = vmul.f32 0.03125, %v4045_v22  ;;  %v4042_v37 = vpop.xlane.xlu0 %4041 }
 0x72e   :  { %v4062_v46 = vmul.f32 0.03125, %v4042_v37 }
 0x72f   :  { %10842 = vrsqrt.f32 %v4093_v42  ;;  %v4079_v33 = vsub.f32 %v4063_v41, %v4071_v50 }
 0x730   :  { %v4078_v25 = vsub.f32 %v4062_v46, %v4070_v10 }
 0x731   :  { %v4095_v0 = vadd.f32 1e-05, %v4079_v33  ;;  %v4048_v45 = vpop.xlane.xlu0 %4047 }
 0x732   :  { %v4094_v34 = vadd.f32 1e-05, %v4078_v25  ;;  %v4064_v36 = vmul.f32 0.03125, %v4048_v45 }
 0x733   :  { %10844 = vrsqrt.f32 %v4095_v0 }
 0x734   :  { %10846 = vrsqrt.f32 %v4094_v34  ;;  %v4080_v27 = vsub.f32 %v4064_v36, %v4072_v60 }
 0x736   :  { %v4096_v9 = vadd.f32 1e-05, %v4080_v27 }
 0x738   :  { %10848 = vrsqrt.f32 %v4096_v9 }
 0x739   :  { %v10843_v51 = vpop.eup %10842 }
 0x73a   :  { %v4109_v2 = vmul.f32 %v10843_v51, %v4085_v26 }
 0x73c   :  { %v4123_v30 = vmul.f32 %v12321_v29, %v4109_v2 }
 0x73d   :  { %v10845_v43 = vpop.eup %10844 }
 0x73e   :  { %v10847_v1 = vpop.eup %10846  ;;  %v4111_v40 = vmul.f32 %v10845_v43, %v4087_v4  ;;  %v12334_v3 = vadd.f32 %v12329_v55, %v4123_v30 }
 0x73f   :  { %v4110_v20 = vmul.f32 %v10847_v1, %v4086_v44 }
 0x740   :  { %v4125_v39 = vmul.f32 %v12321_v29, %v4111_v40 }
 0x741   :  { %v4124_v28 = vmul.f32 %v12321_v29, %v4110_v20 }
 0x742   :  { %v10849_v6 = vpop.eup %10848  ;;  %v12345_v21 = vadd.f32 %v12329_v55, %v4125_v39 }
 0x743   :  { %v4112_v7 = vmul.f32 %v10849_v6, %v4088_v35  ;;  %v12337_v24 = vadd.f32 %v12329_v55, %v4124_v28  ;;  %v10702_v28 = vld [vmem:[%s13842_s9 + $0x10] sm:$0xff]  }
 0x744   :  { %9992 = vmatprep.subr.bf16.mxu0 %v10702_v28 }
 0x745   :  { %v4145_v19 = vpack.c.bf16 %v12337_v24, %v12334_v3  ;;  %v4126_v5 = vmul.f32 %v12321_v29, %v4112_v7  ;;  %9993 = vmatpush3.bf16.msra.mxu0 %v10702_v28 }
 0x747   :  { %9980 = vmatprep.mubr.msk.bf16.mxu1 %vm80_vm0, %v4145_v19  ;;  %v12348_v16 = vadd.f32 %v12329_v55, %v4126_v5 }
 0x749   :  { %v4146_v11 = vpack.c.bf16 %v12348_v16, %v12345_v21 }
 0x74b   :  { %9981 = vmatmul.mubr.msk.bf16.vlgmr.msra.gmra.mrb[136].mxu1 %vm80_vm0, %v4146_v11 }
 0x75e   :  { %v4016_v48 = vpop.xlane.xlu1 %4015 }
 0x75f   :  { %v4027_v17 = vmul.f32 0.03125, %v4016_v48 }
 0x760   :  { %v4019_v38 = vpop.xlane.xlu0 %4018 }
 0x761   :  { %v4028_v54 = vmul.f32 0.03125, %v4019_v38  ;;  %v4075_v14 = vmul.f32 %v4027_v17, %v4027_v17  ;;  %v4091_v27 = vsub.f32 %v12274_v58, %v4027_v17 }
 0x762   :  { %v4010_v62 = vpop.xlane.xlu1 %4009 }
 0x763   :  { %v4025_v13 = vmul.f32 0.03125, %v4010_v62  ;;  %v4076_v42 = vmul.f32 %v4028_v54, %v4028_v54  ;;  %v4092_v2 = vsub.f32 %v12284_v61, %v4028_v54 }
 0x764   :  { %v4013_v63 = vpop.xlane.xlu0 %4012 }
 0x765   :  { %v4026_v31 = vmul.f32 0.03125, %v4013_v63  ;;  %v4073_v53 = vmul.f32 %v4025_v13, %v4025_v13  ;;  %v4089_v0 = vsub.f32 %v12279_v15, %v4025_v13 }
 0x766   :  { %v4051_v47 = vpop.xlane.xlu1 %4050 }
 0x767   :  { %v4065_v23 = vmul.f32 0.03125, %v4051_v47  ;;  %v4074_v12 = vmul.f32 %v4026_v31, %v4026_v31  ;;  %v4090_v60 = vsub.f32 %v12291_v18, %v4026_v31 }
 0x768   :  { %v4054_v56 = vpop.xlane.xlu0 %4053 }
 0x769   :  { %v4081_v52 = vsub.f32 %v4065_v23, %v4073_v53  ;;  %v4066_v59 = vmul.f32 0.03125, %v4054_v56 }
 0x76a   :  { %v4057_v49 = vpop.xlane.xlu1 %4056 }
 0x76b   :  { %v4097_v57 = vadd.f32 1e-05, %v4081_v52  ;;  %v4082_v22 = vsub.f32 %v4066_v59, %v4074_v12  ;;  %v4067_v50 = vmul.f32 0.03125, %v4057_v49 }
 0x76c   :  { %v4060_v41 = vpop.xlane.xlu0 %4059 }
 0x76d   :  { %10850 = vrsqrt.f32 %v4097_v57  ;;  %v4098_v37 = vadd.f32 1e-05, %v4082_v22  ;;  %v4083_v10 = vsub.f32 %v4067_v50, %v4075_v14  ;;  %v4068_v8 = vmul.f32 0.03125, %v4060_v41 }
 0x76f   :  { %10852 = vrsqrt.f32 %v4098_v37  ;;  %v4099_v46 = vadd.f32 1e-05, %v4083_v10  ;;  %v4084_v33 = vsub.f32 %v4068_v8, %v4076_v42  ;;  %v9123_v37 = vld [vmem:[%s13846_s10] ss:$0 sm:$0xff] }
 0x771   :  { %10854 = vrsqrt.f32 %v4099_v46  ;;  %v4100_v25 = vadd.f32 1e-05, %v4084_v33 }
 0x773   :  { %10856 = vrsqrt.f32 %v4100_v25 }
 0x777   :  { %v10851_v45 = vpop.eup %10850 }
 0x778   :  { %v4113_v34 = vmul.f32 %v10851_v45, %v4089_v0 }
 0x779   :  { %v10853_v36 = vpop.eup %10852 }
 0x77a   :  { %v4114_v9 = vmul.f32 %v10853_v36, %v4090_v60  ;;  %v4127_v51 = vmul.f32 %v12321_v29, %v4113_v34 }
 0x77b   :  { %v10855_v26 = vpop.eup %10854 }
 0x77c   :  { %v4128_v43 = vmul.f32 %v12321_v29, %v4114_v9  ;;  %v4115_v4 = vmul.f32 %v10855_v26, %v4091_v27  ;;  %v12360_v1 = vadd.f32 %v12329_v55, %v4127_v51 }
 0x77d   :  { %v10857_v44 = vpop.eup %10856 }
 0x77e   :  { %v12363_v15 = vadd.f32 %v12329_v55, %v4128_v43  ;;  %v4116_v18 = vmul.f32 %v10857_v44, %v4092_v2  ;;  %v4129_v40 = vmul.f32 %v12321_v29, %v4115_v4 }
 0x780   :  { %v4147_v58 = vpack.c.bf16 %v12363_v15, %v12360_v1  ;;  %v4130_v20 = vmul.f32 %v12321_v29, %v4116_v18  ;;  %v12371_v61 = vadd.f32 %v12329_v55, %v4129_v40  ;;  %v10703_v29 = vld [vmem:[%s13842_s9 + $0x18] sm:$0xff]  }
 0x781   :  { %9994 = vmatprep.subr.bf16.mxu0 %v10703_v29 }
 0x782   :  { %9984 = vmatprep.mubr.msk.bf16.mxu1 %vm80_vm0, %v4147_v58  ;;  %v12374_v30 = vadd.f32 %v12329_v55, %v4130_v20  ;;  %9995 = vmatpush3.bf16.msra.mxu0 %v10703_v29  ;;  %v9116_v55 = vld [vmem:[%s13845_s8] ss:$0 sm:$0xff]  ;;  %v10704_v58 = vld [vmem:[%s13836_s1 + $0x10] sm:$0xff]   ;;  %v10705_v20 = vld [vmem:[%s13836_s1 + $0x18] sm:$0xff]  }
 0x783   :  { %10016 = vmatprep.subr.bf16.mxu0 %v13876_v32  ;;  %10004 = vmatprep.subr.bf16.mxu1 %v10704_v58 }
 0x784   :  { %v4148_v35 = vpack.c.bf16 %v12374_v30, %v12371_v61  ;;  %10005 = vmatpush3.bf16.msra.mxu1 %v10704_v58 }
 0x785   :  { %10006 = vmatprep.subr.bf16.mxu1 %v10705_v20 }
 0x786   :  { %9985 = vmatmul.mubr.msk.bf16.gmra.mrb[140].mxu1 %vm80_vm0, %v4148_v35 }
 0x788   :  { %10007 = vmatpush3.bf16.msra.mxu1 %v10705_v20 }
 0x789   :  { %10022 = vmatprep.subr.bf16.mxu1 %v13876_v32 }
 0x81e   :  { %v9982_v6 = vpop.f32.mrb[136].mxu1 }
 0x81f   :  { %v4227_v7 = vadd.f32 %v9982_v6, %v9116_v55  ;;  %v4218_v39 = vpop.f32.mrb[137].mxu1 }
 0x820   :  { %v4219_v19 = vadd.f32 %v9116_v55, %v4218_v39  ;;  %v9983_v5 = vpop.f32.mrb[138].mxu1 }
 0x821   :  { %v4230_v11 = vadd.f32 %v9983_v5, %v9116_v55  ;;  %v4221_v48 = vpop.f32.mrb[139].mxu1  ;;  %v4251_v62 = vmax.f32 %v4227_v7, 0.0 }
 0x822   :  { %v4222_v38 = vadd.f32 %v9116_v55, %v4221_v48  ;;  %v4249_v63 = vmax.f32 %v4219_v19, 0.0 }
 0x823   :  { %v4252_v13 = vmax.f32 %v4230_v11, 0.0 }
 0x824   :  { %v4250_v31 = vmax.f32 %v4222_v38, 0.0 }
 0x825   :  { %v4258_v47 = vpack.c.bf16 %v4252_v13, %v4251_v62 }
 0x826   :  { %v4257_v17 = vpack.c.bf16 %v4250_v31, %v4249_v63 }
 0x828   :  { %9996 = vmatprep.mubr.msk.bf16.mxu0 %vm4300_vm6, %v4257_v17 }
 0x829   :  { %9997 = vmatmul.mubr.msk.bf16.vlgmr.msra.gmra.mrb[136].mxu0 %vm4300_vm6, %v4258_v47 }
 0x859   :  { %v9986_v53 = vpop.f32.mrb[140].mxu1 }
 0x85a   :  { %v4243_v23 = vadd.f32 %v9986_v53, %v9116_v55  ;;  %v4234_v54 = vpop.f32.mrb[141].mxu1 }
 0x85b   :  { %v4235_v56 = vadd.f32 %v9116_v55, %v4234_v54  ;;  %v9987_v12 = vpop.f32.mrb[142].mxu1 }
 0x85c   :  { %v4246_v52 = vadd.f32 %v9987_v12, %v9116_v55  ;;  %v4237_v59 = vpop.f32.mrb[143].mxu1  ;;  %v4255_v14 = vmax.f32 %v4243_v23, 0.0 }
 0x85d   :  { %v4238_v49 = vadd.f32 %v9116_v55, %v4237_v59  ;;  %v4253_v22 = vmax.f32 %v4235_v56, 0.0 }
 0x85e   :  { %v4256_v57 = vmax.f32 %v4246_v52, 0.0 }
 0x85f   :  { %v4254_v50 = vmax.f32 %v4238_v49, 0.0 }
 0x860   :  { %v4260_v42 = vpack.c.bf16 %v4256_v57, %v4255_v14 }
 0x861   :  { %v4259_v41 = vpack.c.bf16 %v4254_v50, %v4253_v22 }
 0x863   :  { %10000 = vmatprep.mubr.msk.bf16.mxu0 %vm4300_vm6, %v4259_v41 }
 0x864   :  { %10001 = vmatmul.mubr.msk.bf16.gmra.mrb[140].mxu0 %vm4300_vm6, %v4260_v42 }
 0x865   :  { %10018 = vmatprep.mubr.msk.bf16.mxu0 %vm11044_vm1, %v13876_v32 }
 0x8fc   :  { %v9998_v10 = vpop.f32.mrb[136].mxu0 }
 0x8fd   :  { %v4356_v8 = vadd.f32 %v9998_v10, %v9123_v37  ;;  %v4347_v46 = vpop.f32.mrb[137].mxu0 }
 0x8fe   :  { %v4348_v33 = vadd.f32 %v9123_v37, %v4347_v46  ;;  %v9999_v25 = vpop.f32.mrb[138].mxu0 }
 0x8ff   :  { %v12399_v0 = vadd.f32 %v4356_v8, %v12345_v21  ;;  %v4359_v45 = vadd.f32 %v9999_v25, %v9123_v37  ;;  %v4350_v60 = vpop.f32.mrb[139].mxu0 }
 0x900   :  { %v4351_v34 = vadd.f32 %v9123_v37, %v4350_v60  ;;  %v12402_v36 = vadd.f32 %v4348_v33, %v12334_v3 }
 0x901   :  { %v12405_v27 = vadd.f32 %v4359_v45, %v12348_v16  ;;  %v4394_v9 = vsel %vm80_vm0, %v12399_v0, 0.0  ;;  %v4422_v43 = vmul.f32 %v12399_v0, %v12399_v0 }
 0x902   :  { %4395 = vadd.xlane.f32.xlu1 %v4394_v9  ;;  %v12410_v51 = vadd.f32 %v4351_v34, %v12337_v24  ;;  %v4388_v26 = vsel %vm80_vm0, %v12402_v36, 0.0  ;;  %v4420_v3 = vmul.f32 %v12402_v36, %v12402_v36 }
 0x903   :  { %v4397_v21 = vsel %vm80_vm0, %v12405_v27, 0.0  ;;  %v4423_v44 = vmul.f32 %v12405_v27, %v12405_v27  ;;  %v4434_v18 = vsel %vm80_vm0, %v4422_v43, 0.0 }
 0x904   :  { %4398 = vadd.xlane.f32.xlu0 %v4397_v21  ;;  %v4391_v16 = vsel %vm80_vm0, %v12410_v51, 0.0  ;;  %v4421_v2 = vmul.f32 %v12410_v51, %v12410_v51  ;;  %v4428_v24 = vsel %vm80_vm0, %v4420_v3, 0.0 }
 0x905   :  { %v4437_v40 = vsel %vm80_vm0, %v4423_v44, 0.0  ;;  %v12473_v44 = vld [vmem:[%s13847_s11] ss:$0 sm:$0xff] }
 0x906   :  { %4389 = vadd.xlane.f32.xlu1 %v4388_v26  ;;  %v4431_v4 = vsel %vm80_vm0, %v4421_v2, 0.0 }
 0x908   :  { %4392 = vadd.xlane.f32.xlu0 %v4391_v16 }
 0x90a   :  { %4429 = vadd.xlane.f32.xlu1 %v4428_v24 }
 0x90c   :  { %4432 = vadd.xlane.f32.xlu0 %v4431_v4 }
 0x90e   :  { %4435 = vadd.xlane.f32.xlu1 %v4434_v18 }
 0x910   :  { %4438 = vadd.xlane.f32.xlu0 %v4437_v40 }
 0x937   :  { %v10002_v35 = vpop.f32.mrb[140].mxu0 }
 0x938   :  { %v4372_v28 = vadd.f32 %v10002_v35, %v9123_v37  ;;  %v4363_v29 = vpop.f32.mrb[141].mxu0 }
 0x939   :  { %v4364_v55 = vadd.f32 %v9123_v37, %v4363_v29  ;;  %v10003_v6 = vpop.f32.mrb[142].mxu0 }
 0x93a   :  { %v12438_v7 = vadd.f32 %v4372_v28, %v12371_v61  ;;  %v4375_v39 = vadd.f32 %v10003_v6, %v9123_v37  ;;  %v4366_v19 = vpop.f32.mrb[143].mxu0 }
 0x93b   :  { %v4367_v5 = vadd.f32 %v9123_v37, %v4366_v19  ;;  %v12441_v11 = vadd.f32 %v4364_v55, %v12360_v1 }
 0x93c   :  { %v12444_v48 = vadd.f32 %v4375_v39, %v12374_v30  ;;  %v4406_v38 = vsel %vm80_vm0, %v12438_v7, 0.0  ;;  %v4426_v31 = vmul.f32 %v12438_v7, %v12438_v7 }
 0x93d   :  { %4407 = vadd.xlane.f32.xlu1 %v4406_v38  ;;  %v12449_v62 = vadd.f32 %v4367_v5, %v12363_v15  ;;  %v4400_v13 = vsel %vm80_vm0, %v12441_v11, 0.0  ;;  %v4424_v1 = vmul.f32 %v12441_v11, %v12441_v11 }
 0x93e   :  { %v4409_v61 = vsel %vm80_vm0, %v12444_v48, 0.0  ;;  %v4427_v17 = vmul.f32 %v12444_v48, %v12444_v48  ;;  %v4446_v53 = vsel %vm80_vm0, %v4426_v31, 0.0 }
 0x93f   :  { %4410 = vadd.xlane.f32.xlu0 %v4409_v61  ;;  %v4403_v30 = vsel %vm80_vm0, %v12449_v62, 0.0  ;;  %v4425_v63 = vmul.f32 %v12449_v62, %v12449_v62  ;;  %v4440_v15 = vsel %vm80_vm0, %v4424_v1, 0.0 }
 0x940   :  { %v4449_v23 = vsel %vm80_vm0, %v4427_v17, 0.0 }
 0x941   :  { %4401 = vadd.xlane.f32.xlu1 %v4400_v13  ;;  %v4443_v47 = vsel %vm80_vm0, %v4425_v63, 0.0 }
 0x943   :  { %4404 = vadd.xlane.f32.xlu0 %v4403_v30 }
 0x945   :  { %4441 = vadd.xlane.f32.xlu1 %v4440_v15 }
 0x947   :  { %4444 = vadd.xlane.f32.xlu0 %v4443_v47 }
 0x949   :  { %4447 = vadd.xlane.f32.xlu1 %v4446_v53 }
 0x94b   :  { %4450 = vadd.xlane.f32.xlu0 %v4449_v23 }
 0x98f   :  { %v4396_v54 = vpop.xlane.xlu1 %4395 }
 0x990   :  { %v4414_v57 = vmul.f32 0.03125, %v4396_v54 }
 0x991   :  { %v4399_v56 = vpop.xlane.xlu0 %4398 }
 0x992   :  { %v4415_v42 = vmul.f32 0.03125, %v4399_v56  ;;  %v4462_v33 = vmul.f32 %v4414_v57, %v4414_v57  ;;  %v4478_v20 = vsub.f32 %v12399_v0, %v4414_v57 }
 0x993   :  { %v4390_v12 = vpop.xlane.xlu1 %4389 }
 0x994   :  { %v4412_v52 = vmul.f32 0.03125, %v4390_v12  ;;  %v4463_v34 = vmul.f32 %v4415_v42, %v4415_v42  ;;  %v4479_v55 = vsub.f32 %v12405_v27, %v4415_v42 }
 0x995   :  { %v4393_v59 = vpop.xlane.xlu0 %4392 }
 0x996   :  { %v4413_v49 = vmul.f32 0.03125, %v4393_v59  ;;  %v4460_v22 = vmul.f32 %v4412_v52, %v4412_v52  ;;  %v4476_v43 = vsub.f32 %v12402_v36, %v4412_v52  ;;  %v12481_v36 = vld [vmem:[%s13848_s12] ss:$0 sm:$0xff] }
 0x997   :  { %v4430_v14 = vpop.xlane.xlu1 %4429 }
 0x998   :  { %v4452_v50 = vmul.f32 0.03125, %v4430_v14  ;;  %v4461_v37 = vmul.f32 %v4413_v49, %v4413_v49  ;;  %v4477_v18 = vsub.f32 %v12410_v51, %v4413_v49 }
 0x999   :  { %v4433_v41 = vpop.xlane.xlu0 %4432 }
 0x99a   :  { %v4468_v10 = vsub.f32 %v4452_v50, %v4460_v22  ;;  %v4453_v8 = vmul.f32 0.03125, %v4433_v41 }
 0x99b   :  { %v4436_v46 = vpop.xlane.xlu1 %4435 }
 0x99c   :  { %v4484_v25 = vadd.f32 1e-05, %v4468_v10  ;;  %v4469_v45 = vsub.f32 %v4453_v8, %v4461_v37  ;;  %v4454_v60 = vmul.f32 0.03125, %v4436_v46 }
 0x99d   :  { %v4439_v9 = vpop.xlane.xlu0 %4438 }
 0x99e   :  { %10858 = vrsqrt.f32 %v4484_v25  ;;  %v4485_v21 = vadd.f32 1e-05, %v4469_v45  ;;  %v4470_v26 = vsub.f32 %v4454_v60, %v4462_v33  ;;  %v4455_v3 = vmul.f32 0.03125, %v4439_v9 }
 0x9a0   :  { %10860 = vrsqrt.f32 %v4485_v21  ;;  %v4486_v16 = vadd.f32 1e-05, %v4470_v26  ;;  %v4471_v2 = vsub.f32 %v4455_v3, %v4463_v34 }
 0x9a2   :  { %10862 = vrsqrt.f32 %v4486_v16  ;;  %v4487_v24 = vadd.f32 1e-05, %v4471_v2 }
 0x9a4   :  { %10864 = vrsqrt.f32 %v4487_v24 }
 0x9a8   :  { %v10859_v4 = vpop.eup %10858 }
 0x9a9   :  { %v4500_v40 = vmul.f32 %v10859_v4, %v4476_v43 }
 0x9aa   :  { %v10861_v58 = vpop.eup %10860 }
 0x9ab   :  { %v4501_v35 = vmul.f32 %v10861_v58, %v4477_v18  ;;  %v4514_v28 = vmul.f32 %v12473_v44, %v4500_v40 }
 0x9ac   :  { %v10863_v29 = vpop.eup %10862 }
 0x9ad   :  { %v4502_v6 = vmul.f32 %v10863_v29, %v4478_v20  ;;  %v4515_v39 = vmul.f32 %v12473_v44, %v4501_v35  ;;  %v12487_v0 = vadd.f32 %v12481_v36, %v4514_v28 }
 0x9ae   :  { %v10865_v19 = vpop.eup %10864 }
 0x9af   :  { %v4516_v51 = vmul.f32 %v12473_v44, %v4502_v6  ;;  %v4503_v5 = vmul.f32 %v10865_v19, %v4479_v55  ;;  %13889 = vst [vmem:[#allocation2_spill] sm:$0xff] %v12487_v0  ;;  %v12490_v38 = vadd.f32 %v12481_v36, %v4515_v39 }
 0x9b1   :  { %13890 = vst [vmem:[#allocation3_spill] sm:$0xff] %v12490_v38  ;;  %v4517_v61 = vmul.f32 %v12473_v44, %v4503_v5  ;;  %v4536_v13 = vpack.c.bf16 %v12490_v38, %v12487_v0  ;;  %v12497_v27 = vadd.f32 %v12481_v36, %v4516_v51 }
 0x9b3   :  { %10008 = vmatprep.mubr.msk.bf16.mxu1 %vm80_vm0, %v4536_v13  ;;  %13891 = vst [vmem:[#allocation4_spill] sm:$0xff] %v12497_v27  ;;  %v12500_v1 = vadd.f32 %v12481_v36, %v4517_v61 }
 0x9b5   :  { %13892 = vst [vmem:[#allocation5_spill] sm:$0xff] %v12500_v1  ;;  %v4537_v30 = vpack.c.bf16 %v12500_v1, %v12497_v27 }
 0x9b7   :  { %10009 = vmatmul.mubr.msk.bf16.vlgmr.msra.gmra.mrb[144].mxu1 %vm80_vm0, %v4537_v30 }
 0x9ca   :  { %v4408_v63 = vpop.xlane.xlu1 %4407 }
 0x9cb   :  { %v4418_v54 = vmul.f32 0.03125, %v4408_v63 }
 0x9cc   :  { %v4411_v15 = vpop.xlane.xlu0 %4410 }
 0x9cd   :  { %v4419_v52 = vmul.f32 0.03125, %v4411_v15  ;;  %v4466_v50 = vmul.f32 %v4418_v54, %v4418_v54  ;;  %v4482_v2 = vsub.f32 %v12438_v7, %v4418_v54 }
 0x9ce   :  { %v4402_v31 = vpop.xlane.xlu1 %4401 }
 0x9cf   :  { %v4416_v47 = vmul.f32 0.03125, %v4402_v31  ;;  %v4467_v10 = vmul.f32 %v4419_v52, %v4419_v52  ;;  %v4483_v18 = vsub.f32 %v12444_v48, %v4419_v52 }
 0x9d0   :  { %v4405_v17 = vpop.xlane.xlu0 %4404 }
 0x9d1   :  { %v4417_v53 = vmul.f32 0.03125, %v4405_v17  ;;  %v4464_v56 = vmul.f32 %v4416_v47, %v4416_v47  ;;  %v4480_v9 = vsub.f32 %v12441_v11, %v4416_v47 }
 0x9d2   :  { %v4442_v23 = vpop.xlane.xlu1 %4441 }
 0x9d3   :  { %v4456_v12 = vmul.f32 0.03125, %v4442_v23  ;;  %v4465_v49 = vmul.f32 %v4417_v53, %v4417_v53  ;;  %v4481_v26 = vsub.f32 %v12449_v62, %v4417_v53 }
 0x9d4   :  { %v4445_v59 = vpop.xlane.xlu0 %4444 }
 0x9d5   :  { %v4472_v14 = vsub.f32 %v4456_v12, %v4464_v56  ;;  %v4457_v57 = vmul.f32 0.03125, %v4445_v59 }
 0x9d6   :  { %v4448_v22 = vpop.xlane.xlu1 %4447 }
 0x9d7   :  { %v4488_v42 = vadd.f32 1e-05, %v4472_v14  ;;  %v4473_v41 = vsub.f32 %v4457_v57, %v4465_v49  ;;  %v4458_v37 = vmul.f32 0.03125, %v4448_v22 }
 0x9d8   :  { %v4451_v8 = vpop.xlane.xlu0 %4450 }
 0x9d9   :  { %10866 = vrsqrt.f32 %v4488_v42  ;;  %v4489_v46 = vadd.f32 1e-05, %v4473_v41  ;;  %v4474_v33 = vsub.f32 %v4458_v37, %v4466_v50  ;;  %v4459_v25 = vmul.f32 0.03125, %v4451_v8 }
 0x9db   :  { %10868 = vrsqrt.f32 %v4489_v46  ;;  %v4490_v45 = vadd.f32 1e-05, %v4474_v33  ;;  %v4475_v60 = vsub.f32 %v4459_v25, %v4467_v10 }
 0x9dd   :  { %10870 = vrsqrt.f32 %v4490_v45  ;;  %v4491_v34 = vadd.f32 1e-05, %v4475_v60 }
 0x9df   :  { %10872 = vrsqrt.f32 %v4491_v34 }
 0x9e3   :  { %v10867_v21 = vpop.eup %10866 }
 0x9e4   :  { %v4504_v3 = vmul.f32 %v10867_v21, %v4480_v9 }
 0x9e5   :  { %v10869_v16 = vpop.eup %10868 }
 0x9e6   :  { %v4505_v24 = vmul.f32 %v10869_v16, %v4481_v26  ;;  %v4518_v43 = vmul.f32 %v12473_v44, %v4504_v3 }
 0x9e7   :  { %v10871_v4 = vpop.eup %10870 }
 0x9e8   :  { %v4519_v40 = vmul.f32 %v12473_v44, %v4505_v24  ;;  %v4506_v58 = vmul.f32 %v10871_v4, %v4482_v2  ;;  %v12512_v35 = vadd.f32 %v12481_v36, %v4518_v43 }
 0x9e9   :  { %v10873_v20 = vpop.eup %10872 }
 0x9ea   :  { %13893 = vst [vmem:[#allocation7_spill] sm:$0xff] %v12512_v35  ;;  %v12515_v11 = vadd.f32 %v12481_v36, %v4519_v40  ;;  %v4507_v62 = vmul.f32 %v10873_v20, %v4483_v18  ;;  %v4520_v28 = vmul.f32 %v12473_v44, %v4506_v58 }
 0x9ec   :  { %13894 = vst [vmem:[#allocation6_spill] sm:$0xff] %v12515_v11  ;;  %v4538_v7 = vpack.c.bf16 %v12515_v11, %v12512_v35  ;;  %v4521_v29 = vmul.f32 %v12473_v44, %v4507_v62  ;;  %v12523_v48 = vadd.f32 %v12481_v36, %v4520_v28  ;;  %v9139_v44 = vld [vmem:[%s13838_s2 + $0x1] ss:$0 sm:$0xff] }
 0x9ee   :  { %10012 = vmatprep.mubr.msk.bf16.mxu1 %vm80_vm0, %v4538_v7  ;;  %13895 = vst [vmem:[#allocation9_spill] sm:$0xff] %v12523_v48  ;;  %v12526_v55 = vadd.f32 %v12481_v36, %v4521_v29 }
 0x9f0   :  { %13896 = vst [vmem:[#allocation8_spill] sm:$0xff] %v12526_v55  ;;  %v4539_v6 = vpack.c.bf16 %v12526_v55, %v12523_v48 }
 0x9f2   :  { %10013 = vmatmul.mubr.msk.bf16.gmra.mrb[148].mxu1 %vm80_vm0, %v4539_v6 }
 0x9f3   :  { %10024 = vmatprep.mubr.msk.bf16.mxu1 %vm11044_vm1, %v13876_v32 }
 0xa8a   :  { %v10010_v39 = vpop.f32.mrb[144].mxu1 }
 0xa8b   :  { %v4611_v19 = vpop.f32.mrb[145].mxu1  ;;  %v4620_v5 = vadd.f32 %v10010_v39, %v9139_v44 }
 0xa8c   :  { %v10011_v51 = vpop.f32.mrb[146].mxu1  ;;  %v4612_v36 = vadd.f32 %v9139_v44, %v4611_v19 }
 0xa8d   :  { %v4623_v61 = vadd.f32 %v10011_v51, %v9139_v44  ;;  %v4614_v13 = vpop.f32.mrb[147].mxu1  ;;  %v12565_v42 = vpack.c.bf16 %v4620_v5, %v4620_v5 }
 0xa8e   :  { %v4615_v30 = vadd.f32 %v9139_v44, %v4614_v13  ;;  %v12538_v31 = vpack.c.bf16 %v4612_v36, %v4612_v36 }
 0xa8f   :  { %v10579_v63 = vpack.i.bf16 %v4623_v61, %v4620_v5  ;;  %v12543_v47 = vpack.c.bf16 %v4623_v61, %v4623_v61 }
 0xa90   :  { %v10574_v15 = vpack.i.bf16 %v4615_v30, %v4612_v36  ;;  %v12561_v50 = vpack.c.bf16 %v4615_v30, %v4615_v30 }
 0xa91   :  { %10580 = vrot.lane.b32.xlu0 %v10579_v63, %s11043_s30 }
 0xa92   :  { %10575 = vrot.lane.b32.xlu1 %v10574_v15, %s11043_s30 }
 0xa95   :  { %4755 = vrot.lane.b32.xlu0 %v12538_v31, %s11045_s14 }
 0xa99   :  { %10595 = vrot.lane.b32.xlu0 %v10574_v15, %s11046_s15 }
 0xa9d   :  { %4902 = vrot.lane.b32.xlu0 %v12543_v47, %s11045_s14 }
 0xac5   :  { %v10014_v17 = vpop.f32.mrb[148].mxu1 }
 0xac6   :  { %v4636_v53 = vadd.f32 %v10014_v17, %v9139_v44  ;;  %v4627_v23 = vpop.f32.mrb[149].mxu1 }
 0xac7   :  { %v4628_v54 = vadd.f32 %v9139_v44, %v4627_v23  ;;  %v10015_v56 = vpop.f32.mrb[150].mxu1 }
 0xac8   :  { %v4639_v12 = vadd.f32 %v10015_v56, %v9139_v44  ;;  %v4630_v52 = vpop.f32.mrb[151].mxu1  ;;  %v12574_v37 = vpack.c.bf16 %v4636_v53, %v4636_v53 }
 0xac9   :  { %v4631_v59 = vadd.f32 %v9139_v44, %v4630_v52  ;;  %v12547_v49 = vpack.c.bf16 %v4628_v54, %v4628_v54 }
 0xaca   :  { %v12549_v14 = vpack.i.bf16 %v4639_v12, %v4636_v53  ;;  %v12557_v22 = vpack.c.bf16 %v4639_v12, %v4639_v12 }
 0xacb   :  { %4951 = vrot.lane.b32.xlu0 %v12547_v49, %s11045_s14  ;;  %v10584_v57 = vpack.i.bf16 %v4631_v59, %v4628_v54  ;;  %v12570_v41 = vpack.c.bf16 %v4631_v59, %v4631_v59 }
 0xacd   :  { %10585 = vrot.lane.b32.xlu1 %v10584_v57, %s11043_s30 }
 0xacf   :  { %10605 = vrot.lane.b32.xlu0 %v10584_v57, %s11046_s15 }
 0xad1   :  { %10590 = vrot.lane.b32.xlu1 %v12549_v14, %s11043_s30 }
 0xad3   :  { %5098 = vrot.lane.b32.xlu0 %v12557_v22, %s11045_s14 }
 0xad5   :  { %4804 = vrot.lane.b32.xlu1 %v12561_v50, %s11045_s14 }
 0xad9   :  { %4853 = vrot.lane.b32.xlu1 %v12565_v42, %s11045_s14 }
 0xadd   :  { %10600 = vrot.lane.b32.xlu1 %v10579_v63, %s11046_s15 }
 0xae1   :  { %5000 = vrot.lane.b32.xlu1 %v12570_v41, %s11045_s14 }
 0xae5   :  { %5049 = vrot.lane.b32.xlu1 %v12574_v37, %s11045_s14 }
 0xae9   :  { %10610 = vrot.lane.b32.xlu1 %v12549_v14, %s11046_s15 }
 0xb03   :  { %v10581_v10 = vpop.permute.xlu0 %10580 }
 0xb04   :  { %v10576_v8 = vpop.permute.xlu1 %10575  ;;  %v10582_v25 = vunpack.i.l.bf16 %v10581_v10  ;;  %v10583_v21 = vunpack.i.h.bf16 %v10581_v10 }
 0xb05   :  { %v10578_v46 = vunpack.i.h.bf16 %v10576_v8  ;;  %v10577_v33 = vunpack.i.l.bf16 %v10576_v8 }
 0xb06   :  { %v12589_v26 = vpack.c.bf16 %v10582_v25, %v10582_v25  ;;  %v12595_v3 = vpack.c.bf16 %v10583_v21, %v10583_v21 }
 0xb07   :  { %v12580_v45 = vpack.c.bf16 %v10578_v46, %v10578_v46  ;;  %v12582_v60 = vpack.c.bf16 %v10577_v33, %v10577_v33  ;;  %v4756_v34 = vpop.permute.xlu0 %4755 }
 0xb08   :  { %v4761_v9 = vsel %vm273_vm2, %v4756_v34, 0 }
 0xb09   :  { %5196 = vrot.lane.b32.xlu1 %v12580_v45, %s11045_s14  ;;  %5147 = vrot.lane.b32.xlu0 %v12582_v60, %s11045_s14 }
 0xb0a   :  { %10017 = vmatpush3.bf16.xpose.msra.mxu0 %v4761_v9 }
 0xb0b   :  { %10028 = vmatprep.subr.bf16.mxu0 %v13876_v32  ;;  %v10596_v16 = vpop.permute.xlu0 %10595 }
 0xb0c   :  { %v10597_v39 = vunpack.i.l.bf16 %v10596_v16  ;;  %v10598_v19 = vunpack.i.h.bf16 %v10596_v16 }
 0xb0d   :  { %10615 = vrot.lane.b32.xlu0 %v10574_v15, %s11047_s16  ;;  %5245 = vrot.lane.b32.xlu1 %v12589_v26, %s11045_s14 }
 0xb0e   :  { %v12626_v61 = vpack.c.bf16 %v10597_v39, %v10597_v39  ;;  %v12629_v13 = vpack.c.bf16 %v10598_v19, %v10598_v19 }
 0xb0f   :  { %v4903_v20 = vpop.permute.xlu0 %4902 }
 0xb11   :  { %10019 = vmatmul.mubr.msk.bf16.vlgmr.msra.gmra.mrb[144].mxu0 %vm273_vm2, %v12538_v31  ;;  %5294 = vrot.lane.b32.xlu0 %v12595_v3, %s11045_s14 }
 0xb12   :  { %10620 = vrot.lane.b32.xlu1 %v10579_v63, %s11047_s16  ;;  %10030 = vmatprep.mubr.msk.bf16.mxu0 %vm11044_vm1, %v13876_v32  ;;  %v4908_v63 = vsel %vm273_vm2, %v4903_v20, 0 }
 0xb3d   :  { %v4952_v6 = vpop.permute.xlu0 %4951 }
 0xb3e   :  { %v4957_v52 = vsel %vm273_vm2, %v4952_v6, 0 }
 0xb3f   :  { %v10586_v2 = vpop.permute.xlu1 %10585 }
 0xb40   :  { %v10588_v24 = vunpack.i.h.bf16 %v10586_v2  ;;  %v10587_v43 = vunpack.i.l.bf16 %v10586_v2 }
 0xb41   :  { %v10606_v36 = vpop.permute.xlu0 %10605 }
 0xb42   :  { %v12604_v4 = vpack.c.bf16 %v10588_v24, %v10588_v24  ;;  %v12606_v18 = vpack.c.bf16 %v10587_v43, %v10587_v43  ;;  %v10607_v53 = vunpack.i.l.bf16 %v10606_v36  ;;  %v10608_v56 = vunpack.i.h.bf16 %v10606_v36 }
 0xb43   :  { %v10591_v40 = vpop.permute.xlu1 %10590 }
 0xb44   :  { %v10592_v58 = vunpack.i.l.bf16 %v10591_v40  ;;  %5343 = vrot.lane.b32.xlu0 %v12606_v18, %s11045_s14  ;;  %5392 = vrot.lane.b32.xlu1 %v12604_v4, %s11045_s14  ;;  %v10593_v62 = vunpack.i.h.bf16 %v10591_v40  ;;  %v12652_v59 = vpack.c.bf16 %v10607_v53, %v10607_v53 }
 0xb45   :  { %v5099_v34 = vpop.permute.xlu0 %5098 }
 0xb46   :  { %v12612_v28 = vpack.c.bf16 %v10592_v58, %v10592_v58  ;;  %v12618_v44 = vpack.c.bf16 %v10593_v62, %v10593_v62  ;;  %v5104_v16 = vsel %vm273_vm2, %v5099_v34, 0 }
 0xb47   :  { %v4805_v7 = vpop.permute.xlu1 %4804 }
 0xb48   :  { %v4810_v29 = vsel %vm273_vm2, %v4805_v7, 0  ;;  %10625 = vrot.lane.b32.xlu0 %v10584_v57, %s11047_s16  ;;  %5441 = vrot.lane.b32.xlu1 %v12612_v28, %s11045_s14 }
 0xb49   :  { %10023 = vmatpush3.bf16.xpose.msra.mxu1 %v4810_v29 }
 0xb4a   :  { %10034 = vmatprep.subr.bf16.mxu1 %v13876_v32 }
 0xb4b   :  { %v4854_v51 = vpop.permute.xlu1 %4853 }
 0xb4c   :  { %v4859_v5 = vsel %vm273_vm2, %v4854_v51, 0  ;;  %5490 = vrot.lane.b32.xlu0 %v12618_v44, %s11045_s14  ;;  %10630 = vrot.lane.b32.xlu1 %v12549_v14, %s11047_s16  ;;  %v12657_v14 = vpack.c.bf16 %v10608_v56, %v10608_v56 }
 0xb4d   :  { %10029 = vmatpush3.bf16.xpose.msra.mxu0 %v4859_v5 }
 0xb4e   :  { %10040 = vmatprep.subr.bf16.mxu0 %v13876_v32 }
 0xb4f   :  { %v10601_v30 = vpop.permute.xlu1 %10600 }
 0xb50   :  { %v10603_v15 = vunpack.i.h.bf16 %v10601_v30  ;;  %v10602_v17 = vunpack.i.l.bf16 %v10601_v30  ;;  %10025 = vmatmul.mubr.msk.bf16.vlgmr.msra.gmra.mrb[152].mxu1 %vm273_vm2, %v12561_v50  ;;  %5539 = vrot.lane.b32.xlu0 %v12626_v61, %s11045_s14 }
 0xb51   :  { %5588 = vrot.lane.b32.xlu1 %v12629_v13, %s11045_s14  ;;  %10035 = vmatpush3.bf16.xpose.msra.mxu1 %v4908_v63 }
 0xb52   :  { %v12638_v23 = vpack.c.bf16 %v10603_v15, %v10603_v15  ;;  %v12640_v54 = vpack.c.bf16 %v10602_v17, %v10602_v17  ;;  %10036 = vmatprep.mubr.msk.bf16.mxu1 %vm11044_vm1, %v13876_v32  ;;  %10046 = vmatprep.subr.bf16.mxu1 %v13876_v32 }
 0xb53   :  { %v5001_v12 = vpop.permute.xlu1 %5000 }
 0xb54   :  { %10031 = vmatmul.mubr.msk.bf16.vlgmr.msra.gmra.mrb[148].mxu0 %vm273_vm2, %v12565_v42  ;;  %5637 = vrot.lane.b32.xlu0 %v12640_v54, %s11045_s14  ;;  %v5006_v10 = vsel %vm273_vm2, %v5001_v12, 0 }
 0xb55   :  { %5686 = vrot.lane.b32.xlu1 %v12638_v23, %s11045_s14  ;;  %10041 = vmatpush3.bf16.xpose.msra.mxu0 %v4957_v52 }
 0xb56   :  { %10042 = vmatprep.mubr.msk.bf16.mxu0 %vm11044_vm1, %v13876_v32  ;;  %10052 = vmatprep.subr.bf16.mxu0 %v13876_v32 }
 0xb57   :  { %v5050_v57 = vpop.permute.xlu1 %5049 }
 0xb58   :  { %10037 = vmatmul.mubr.msk.bf16.vlgmr.msra.gmra.mrb[156].mxu1 %vm273_vm2, %v12543_v47  ;;  %5735 = vrot.lane.b32.xlu0 %v12652_v59, %s11045_s14  ;;  %v5055_v46 = vsel %vm273_vm2, %v5050_v57, 0 }
 0xb59   :  { %5784 = vrot.lane.b32.xlu1 %v12657_v14, %s11045_s14  ;;  %10047 = vmatpush3.bf16.xpose.msra.mxu1 %v5006_v10 }
 0xb5a   :  { %10048 = vmatprep.mubr.msk.bf16.mxu1 %vm11044_vm1, %v13876_v32  ;;  %10058 = vmatprep.subr.bf16.mxu1 %v13876_v32 }
 0xb5b   :  { %v10611_v8 = vpop.permute.xlu1 %10610 }
 0xb5c   :  { %v10613_v33 = vunpack.i.h.bf16 %v10611_v8  ;;  %v10612_v25 = vunpack.i.l.bf16 %v10611_v8  ;;  %10043 = vmatmul.mubr.msk.bf16.vlgmr.msra.gmra.mrb[152].mxu0 %vm273_vm2, %v12547_v49 }
 0xb5d   :  { %10053 = vmatpush3.bf16.xpose.msra.mxu0 %v5055_v46  ;;  %10054 = vmatprep.mubr.msk.bf16.mxu0 %vm11044_vm1, %v13876_v32 }
 0xb5e   :  { %v12674_v9 = vpack.c.bf16 %v10613_v33, %v10613_v33  ;;  %v12676_v21 = vpack.c.bf16 %v10612_v25, %v10612_v25  ;;  %10064 = vmatprep.subr.bf16.mxu0 %v13876_v32 }
 0xb60   :  { %10049 = vmatmul.mubr.msk.bf16.vlgmr.msra.gmra.mrb[160].mxu1 %vm273_vm2, %v12570_v41  ;;  %5833 = vrot.lane.b32.xlu0 %v12676_v21, %s11045_s14 }
 0xb61   :  { %5882 = vrot.lane.b32.xlu1 %v12674_v9, %s11045_s14  ;;  %10059 = vmatpush3.bf16.xpose.msra.mxu1 %v5104_v16 }
 0xb62   :  { %10060 = vmatprep.mubr.msk.bf16.mxu1 %vm11044_vm1, %v13876_v32  ;;  %10070 = vmatprep.subr.bf16.mxu1 %v13876_v32 }
 0xb64   :  { %10055 = vmatmul.mubr.msk.bf16.vlgmr.msra.gmra.mrb[156].mxu0 %vm273_vm2, %v12574_v37 }
 0xb65   :  { %10066 = vmatprep.mubr.msk.bf16.mxu0 %vm11044_vm1, %v13876_v32 }
 0xb68   :  { %10061 = vmatmul.mubr.msk.bf16.vlgmr.msra.gmra.mrb[164].mxu1 %vm273_vm2, %v12557_v22 }
 0xb69   :  { %10072 = vmatprep.mubr.msk.bf16.mxu1 %vm11044_vm1, %v13876_v32 }
 0xb7b   :  { %v5197_v2 = vpop.permute.xlu1 %5196  ;;  %v5148_v24 = vpop.permute.xlu0 %5147 }
 0xb7c   :  { %v5202_v43 = vsel %vm273_vm2, %v5197_v2, 0  ;;  %v5153_v40 = vsel %vm273_vm2, %v5148_v24, 0 }
 0xb7d   :  { %10065 = vmatpush3.bf16.xpose.msra.mxu0 %v5153_v40  ;;  %10071 = vmatpush3.bf16.xpose.msra.mxu1 %v5202_v43 }
 0xb7e   :  { %10076 = vmatprep.subr.bf16.mxu0 %v13876_v32  ;;  %10082 = vmatprep.subr.bf16.mxu1 %v13876_v32 }
 0xb7f   :  { %v10616_v58 = vpop.permute.xlu0 %10615  ;;  %v5246_v20 = vpop.permute.xlu1 %5245 }
 0xb80   :  { %v10618_v62 = vunpack.i.h.bf16 %v10616_v58  ;;  %v10617_v7 = vunpack.i.l.bf16 %v10616_v58  ;;  %v5251_v5 = vsel %vm273_vm2, %v5246_v20, 0 }
 0xb82   :  { %v12701_v29 = vpack.c.bf16 %v10618_v62, %v10618_v62  ;;  %v12703_v6 = vpack.c.bf16 %v10617_v7, %v10617_v7 }
 0xb83   :  { %v5295_v39 = vpop.permute.xlu0 %5294 }
 0xb84   :  { %v5300_v19 = vsel %vm273_vm2, %v5295_v39, 0  ;;  %v10621_v51 = vpop.permute.xlu1 %10620  ;;  %10067 = vmatmul.mubr.msk.bf16.vlgmr.msra.gmra.mrb[160].mxu0 %vm273_vm2, %v12582_v60  ;;  %10073 = vmatmul.mubr.msk.bf16.vlgmr.msra.gmra.mrb[168].mxu1 %vm273_vm2, %v12580_v45 }
 0xb85   :  { %v10623_v36 = vunpack.i.h.bf16 %v10621_v51  ;;  %v10622_v30 = vunpack.i.l.bf16 %v10621_v51  ;;  %5931 = vrot.lane.b32.xlu0 %v12703_v6, %s11045_s14  ;;  %5980 = vrot.lane.b32.xlu1 %v12701_v29, %s11045_s14 }
 0xb86   :  { %10077 = vmatpush3.bf16.xpose.msra.mxu0 %v5251_v5  ;;  %10083 = vmatpush3.bf16.xpose.msra.mxu1 %v5300_v19 }
 0xb87   :  { %v12715_v63 = vpack.c.bf16 %v10623_v36, %v10623_v36  ;;  %v12717_v15 = vpack.c.bf16 %v10622_v30, %v10622_v30  ;;  %10078 = vmatprep.mubr.msk.bf16.mxu0 %vm11044_vm1, %v13876_v32  ;;  %10084 = vmatprep.mubr.msk.bf16.mxu1 %vm11044_vm1, %v13876_v32 }
 0xb88   :  { %10088 = vmatprep.subr.bf16.mxu0 %v13876_v32  ;;  %10094 = vmatprep.subr.bf16.mxu1 %v13876_v32 }
 0xb89   :  { %6078 = vrot.lane.b32.xlu1 %v12715_v63, %s11045_s14  ;;  %6029 = vrot.lane.b32.xlu0 %v12717_v15, %s11045_s14 }
 0xb8d   :  { %10079 = vmatmul.mubr.msk.bf16.vlgmr.msra.gmra.mrb[164].mxu0 %vm273_vm2, %v12589_v26  ;;  %10085 = vmatmul.mubr.msk.bf16.vlgmr.msra.gmra.mrb[172].mxu1 %vm273_vm2, %v12595_v3 }
 0xb8e   :  { %10096 = vmatprep.mubr.msk.bf16.mxu1 %vm11044_vm1, %v13876_v32  ;;  %10090 = vmatprep.mubr.msk.bf16.mxu0 %vm11044_vm1, %v13876_v32 }
 0xbb6   :  { %v5344_v17 = vpop.permute.xlu0 %5343  ;;  %v5393_v53 = vpop.permute.xlu1 %5392 }
 0xbb7   :  { %v5349_v56 = vsel %vm273_vm2, %v5344_v17, 0  ;;  %v5398_v12 = vsel %vm273_vm2, %v5393_v53, 0 }
 0xbb8   :  { %10089 = vmatpush3.bf16.xpose.msra.mxu0 %v5349_v56  ;;  %10095 = vmatpush3.bf16.xpose.msra.mxu1 %v5398_v12 }
 0xbb9   :  { %10100 = vmatprep.subr.bf16.mxu0 %v13876_v32  ;;  %10106 = vmatprep.subr.bf16.mxu1 %v13876_v32 }
 0xbba   :  { %v10626_v52 = vpop.permute.xlu0 %10625  ;;  %v5442_v57 = vpop.permute.xlu1 %5441 }
 0xbbb   :  { %v10628_v10 = vunpack.i.h.bf16 %v10626_v52  ;;  %v10627_v8 = vunpack.i.l.bf16 %v10626_v52  ;;  %v5447_v43 = vsel %vm273_vm2, %v5442_v57, 0 }
 0xbbd   :  { %v12741_v46 = vpack.c.bf16 %v10628_v10, %v10628_v10  ;;  %v12743_v33 = vpack.c.bf16 %v10627_v8, %v10627_v8 }
 0xbbe   :  { %v5491_v25 = vpop.permute.xlu0 %5490  ;;  %v10631_v34 = vpop.permute.xlu1 %10630 }
 0xbbf   :  { %v5496_v16 = vsel %vm273_vm2, %v5491_v25, 0  ;;  %v10633_v2 = vunpack.i.h.bf16 %v10631_v34  ;;  %v10632_v24 = vunpack.i.l.bf16 %v10631_v34  ;;  %10091 = vmatmul.mubr.msk.bf16.vlgmr.msra.gmra.mrb[168].mxu0 %vm273_vm2, %v12606_v18  ;;  %10097 = vmatmul.mubr.msk.bf16.vlgmr.msra.gmra.mrb[176].mxu1 %vm273_vm2, %v12604_v4 }
 0xbc0   :  { %6176 = vrot.lane.b32.xlu1 %v12741_v46, %s11045_s14  ;;  %6127 = vrot.lane.b32.xlu0 %v12743_v33, %s11045_s14 }
 0xbc1   :  { %v12755_v40 = vpack.c.bf16 %v10633_v2, %v10633_v2  ;;  %v12757_v58 = vpack.c.bf16 %v10632_v24, %v10632_v24  ;;  %10101 = vmatpush3.bf16.xpose.msra.mxu0 %v5447_v43  ;;  %10107 = vmatpush3.bf16.xpose.msra.mxu1 %v5496_v16 }
 0xbc2   :  { %10102 = vmatprep.mubr.msk.bf16.mxu0 %vm11044_vm1, %v13876_v32  ;;  %10108 = vmatprep.mubr.msk.bf16.mxu1 %vm11044_vm1, %v13876_v32  ;;  %v5540_v20 = vpop.permute.xlu0 %5539 }
 0xbc3   :  { %13897 = vst [vmem:[#allocation12_spill] sm:$0xff] %v12755_v40  ;;  %13898 = vst [vmem:[#allocation10_spill] sm:$0xff] %v12757_v58  ;;  %10112 = vmatprep.subr.bf16.mxu0 %v13876_v32  ;;  %10118 = vmatprep.subr.bf16.mxu1 %v13876_v32  ;;  %v5589_v62 = vpop.permute.xlu1 %5588  ;;  %v5545_v7 = vsel %vm273_vm2, %v5540_v20, 0 }
 0xbc4   :  { %6274 = vrot.lane.b32.xlu1 %v12755_v40, %s11045_s14  ;;  %6225 = vrot.lane.b32.xlu0 %v12757_v58, %s11045_s14  ;;  %v5594_v39 = vsel %vm273_vm2, %v5589_v62, 0 }
 0xbc8   :  { %10103 = vmatmul.mubr.msk.bf16.vlgmr.msra.gmra.mrb[172].mxu0 %vm273_vm2, %v12612_v28  ;;  %10109 = vmatmul.mubr.msk.bf16.vlgmr.msra.gmra.mrb[180].mxu1 %vm273_vm2, %v12618_v44 }
 0xbc9   :  { %6706 = vrot.lane.b32.xlu1 %v12538_v31, %s11048_s17  ;;  %6754 = vrot.lane.b32.xlu0 %v12561_v50, %s11048_s17  ;;  %v5638_v31 = vpop.permute.xlu0 %5637  ;;  %v5687_v50 = vpop.permute.xlu1 %5686 }
 0xbca   :  { %10113 = vmatpush3.bf16.xpose.msra.mxu0 %v5545_v7  ;;  %10119 = vmatpush3.bf16.xpose.msra.mxu1 %v5594_v39  ;;  %v5643_v19 = vsel %vm273_vm2, %v5638_v31, 0  ;;  %v5692_v51 = vsel %vm273_vm2, %v5687_v50, 0 }
 0xbcb   :  { %10114 = vmatprep.mubr.msk.bf16.mxu0 %vm11044_vm1, %v13876_v32  ;;  %10120 = vmatprep.mubr.msk.bf16.mxu1 %vm11044_vm1, %v13876_v32 }
 0xbcc   :  { %10124 = vmatprep.subr.bf16.mxu0 %v13876_v32  ;;  %10130 = vmatprep.subr.bf16.mxu1 %v13876_v32 }
 0xbcd   :  { %6802 = vrot.lane.b32.xlu1 %v12565_v42, %s11048_s17  ;;  %6850 = vrot.lane.b32.xlu0 %v12543_v47, %s11048_s17  ;;  %v5736_v47 = vpop.permute.xlu0 %5735 }
 0xbce   :  { %v5741_v42 = vsel %vm273_vm2, %v5736_v47, 0 }
 0xbd1   :  { %10115 = vmatmul.mubr.msk.bf16.vlgmr.msra.gmra.mrb[176].mxu0 %vm273_vm2, %v12626_v61  ;;  %10121 = vmatmul.mubr.msk.bf16.vlgmr.msra.gmra.mrb[184].mxu1 %vm273_vm2, %v12629_v13 }
 0xbd2   :  { %6898 = vrot.lane.b32.xlu1 %v12547_v49, %s11048_s17  ;;  %6946 = vrot.lane.b32.xlu0 %v12570_v41, %s11048_s17  ;;  %v5785_v49 = vpop.permute.xlu1 %5784 }
 0xbd3   :  { %10125 = vmatpush3.bf16.xpose.msra.mxu0 %v5643_v19  ;;  %10131 = vmatpush3.bf16.xpose.msra.mxu1 %v5692_v51  ;;  %v5790_v41 = vsel %vm273_vm2, %v5785_v49, 0 }
 0xbd4   :  { %10126 = vmatprep.mubr.msk.bf16.mxu0 %vm11044_vm1, %v13876_v32  ;;  %10132 = vmatprep.mubr.msk.bf16.mxu1 %vm11044_vm1, %v13876_v32 }
 0xbd5   :  { %10136 = vmatprep.subr.bf16.mxu0 %v13876_v32  ;;  %10142 = vmatprep.subr.bf16.mxu1 %v13876_v32 }
 0xbd6   :  { %6994 = vrot.lane.b32.xlu1 %v12574_v37, %s11048_s17  ;;  %7042 = vrot.lane.b32.xlu0 %v12557_v22, %s11048_s17  ;;  %v5834_v22 = vpop.permute.xlu0 %5833  ;;  %v5883_v37 = vpop.permute.xlu1 %5882 }
 0xbda   :  { %10127 = vmatmul.mubr.msk.bf16.vlgmr.msra.gmra.mrb[180].mxu0 %vm273_vm2, %v12640_v54  ;;  %10133 = vmatmul.mubr.msk.bf16.vlgmr.msra.gmra.mrb[188].mxu1 %vm273_vm2, %v12638_v23 }
 0xbdb   :  { %7090 = vrot.lane.b32.xlu1 %v12582_v60, %s11048_s17  ;;  %7138 = vrot.lane.b32.xlu0 %v12580_v45, %s11048_s17  ;;  %v5839_v45 = vsel %vm273_vm2, %v5834_v22, 0  ;;  %v5888_v60 = vsel %vm273_vm2, %v5883_v37, 0 }
 0xbdc   :  { %10137 = vmatpush3.bf16.xpose.msra.mxu0 %v5741_v42  ;;  %10143 = vmatpush3.bf16.xpose.msra.mxu1 %v5790_v41 }
 0xbdd   :  { %10138 = vmatprep.mubr.msk.bf16.mxu0 %vm11044_vm1, %v13876_v32  ;;  %10144 = vmatprep.mubr.msk.bf16.mxu1 %vm11044_vm1, %v13876_v32 }
 0xbde   :  { %10148 = vmatprep.subr.bf16.mxu0 %v13876_v32  ;;  %10154 = vmatprep.subr.bf16.mxu1 %v13876_v32 }
 0xbdf   :  { %7186 = vrot.lane.b32.xlu1 %v12589_v26, %s11048_s17  ;;  %7234 = vrot.lane.b32.xlu0 %v12595_v3, %s11048_s17 }
 0xbe3   :  { %10139 = vmatmul.mubr.msk.bf16.vlgmr.msra.gmra.mrb[184].mxu0 %vm273_vm2, %v12652_v59  ;;  %10145 = vmatmul.mubr.msk.bf16.vlgmr.msra.gmra.mrb[192].mxu1 %vm273_vm2, %v12657_v14 }
 0xbe4   :  { %7282 = vrot.lane.b32.xlu1 %v12606_v18, %s11048_s17  ;;  %7426 = vrot.lane.b32.xlu0 %v12618_v44, %s11048_s17  ;;  %v12839_v26 = vpop.f32.mrb[144].mxu0 }
 0xbe5   :  { %10149 = vmatpush3.bf16.xpose.msra.mxu0 %v5839_v45  ;;  %10155 = vmatpush3.bf16.xpose.msra.mxu1 %v5888_v60  ;;  %v10020_v3 = vpop.f32.mrb[145].mxu0 }
 0xbe6   :  { %v4800_v5 = vpop.f32.mrb[146].mxu0  ;;  %10150 = vmatprep.mubr.msk.bf16.mxu0 %vm11044_vm1, %v13876_v32  ;;  %10156 = vmatprep.mubr.msk.bf16.mxu1 %vm11044_vm1, %v13876_v32 }
 0xbe7   :  { %v10021_v36 = vpop.f32.mrb[147].mxu0  ;;  %10160 = vmatprep.subr.bf16.mxu0 %v13876_v32  ;;  %10166 = vmatprep.subr.bf16.mxu1 %v13876_v32 }
 0xbe8   :  { %7378 = vrot.lane.b32.xlu1 %v12612_v28, %s11048_s17  ;;  %7522 = vrot.lane.b32.xlu0 %v12629_v13, %s11048_s17 }
 0xbec   :  { %10151 = vmatmul.mubr.msk.bf16.vlgmr.msra.gmra.mrb[188].mxu0 %vm273_vm2, %v12676_v21  ;;  %10157 = vmatmul.mubr.msk.bf16.vlgmr.msra.gmra.mrb[196].mxu1 %vm273_vm2, %v12674_v9 }
 0xbed   :  { %7474 = vrot.lane.b32.xlu1 %v12626_v61, %s11048_s17  ;;  %7618 = vrot.lane.b32.xlu0 %v12638_v23, %s11048_s17 }
 0xbee   :  { %10162 = vmatprep.mubr.msk.bf16.mxu0 %vm11044_vm1, %v13876_v32  ;;  %10168 = vmatprep.mubr.msk.bf16.mxu1 %vm11044_vm1, %v13876_v32 }
 0xbf1   :  { %7570 = vrot.lane.b32.xlu1 %v12640_v54, %s11048_s17  ;;  %7810 = vrot.lane.b32.xlu0 %v12674_v9, %s11048_s17 }
 0xbf5   :  { %7666 = vrot.lane.b32.xlu1 %v12652_v59, %s11048_s17  ;;  %7330 = vrot.lane.b32.xlu0 %v12604_v4, %s11048_s17  ;;  %v6322_v59 = vsel %vm273_vm2, %v12839_v26, -inf }
 0xbf7   :  { %v5932_v18 = vpop.permute.xlu0 %5931  ;;  %v5981_v28 = vpop.permute.xlu1 %5980 }
 0xbf8   :  { %v5937_v44 = vsel %vm273_vm2, %v5932_v18, 0  ;;  %v5986_v61 = vsel %vm273_vm2, %v5981_v28, 0 }
 0xbf9   :  { %7762 = vrot.lane.b32.xlu1 %v12676_v21, %s11048_s17  ;;  %7714 = vrot.lane.b32.xlu0 %v12657_v14, %s11048_s17 }
 0xbfa   :  { %10161 = vmatpush3.bf16.xpose.msra.mxu0 %v5937_v44  ;;  %10167 = vmatpush3.bf16.xpose.msra.mxu1 %v5986_v61 }
 0xbfb   :  { %10172 = vmatprep.subr.bf16.mxu0 %v13876_v32  ;;  %10178 = vmatprep.subr.bf16.mxu1 %v13876_v32  ;;  %v6079_v4 = vpop.permute.xlu1 %6078  ;;  %v6030_v13 = vpop.permute.xlu0 %6029 }
 0xbfc   :  { %v6084_v23 = vsel %vm273_vm2, %v6079_v4, 0  ;;  %v6035_v54 = vsel %vm273_vm2, %v6030_v13, 0 }
 0xbfd   :  { %7858 = vrot.lane.b32.xlu1 %v12703_v6, %s11048_s17 }
 0xc01   :  { %10163 = vmatmul.mubr.msk.bf16.vlgmr.msra.gmra.mrb[192].mxu0 %vm273_vm2, %v12703_v6  ;;  %10169 = vmatmul.mubr.msk.bf16.vlgmr.msra.gmra.mrb[200].mxu1 %vm273_vm2, %v12701_v29 }
 0xc02   :  { %10173 = vmatpush3.bf16.xpose.msra.mxu0 %v6035_v54  ;;  %10179 = vmatpush3.bf16.xpose.msra.mxu1 %v6084_v23 }
 0xc03   :  { %10174 = vmatprep.mubr.msk.bf16.mxu0 %vm11044_vm1, %v13876_v32  ;;  %10180 = vmatprep.mubr.msk.bf16.mxu1 %vm11044_vm1, %v13876_v32 }
 0xc04   :  { %10184 = vmatprep.subr.bf16.mxu0 %v13876_v32  ;;  %10190 = vmatprep.subr.bf16.mxu1 %v13876_v32 }
 0xc09   :  { %10175 = vmatmul.mubr.msk.bf16.vlgmr.msra.gmra.mrb[196].mxu0 %vm273_vm2, %v12717_v15  ;;  %10181 = vmatmul.mubr.msk.bf16.vlgmr.msra.gmra.mrb[204].mxu1 %vm273_vm2, %v12715_v63 }
 0xc0a   :  { %10192 = vmatprep.mubr.msk.bf16.mxu1 %vm11044_vm1, %v13876_v32  ;;  %10186 = vmatprep.mubr.msk.bf16.mxu0 %vm11044_vm1, %v13876_v32 }
 0xc18   :  { %6323 = vmax.xlane.f32.xlu0 %v6322_v59 }
 0xc23   :  { %v12903_v14 = vpop.f32.mrb[152].mxu1 }
 0xc24   :  { %v10026_v9 = vpop.f32.mrb[153].mxu1  ;;  %v6325_v21 = vsel %vm273_vm2, %v12903_v14, -inf }
 0xc25   :  { %v4849_v6 = vpop.f32.mrb[154].mxu1  ;;  %6326 = vmax.xlane.f32.xlu1 %v6325_v21 }
 0xc26   :  { %v10027_v30 = vpop.f32.mrb[155].mxu1 }
 0xc27   :  { %v12907_v17 = vpop.f32.mrb[148].mxu0 }
 0xc28   :  { %v10032_v53 = vpop.f32.mrb[149].mxu0  ;;  %v6328_v56 = vsel %vm273_vm2, %v12907_v17, -inf }
 0xc29   :  { %v4898_v12 = vpop.f32.mrb[150].mxu0  ;;  %6329 = vmax.xlane.f32.xlu0 %v6328_v56 }
 0xc2a   :  { %v10033_v52 = vpop.f32.mrb[151].mxu0 }
 0xc2b   :  { %v12911_v57 = vpop.f32.mrb[156].mxu1 }
 0xc2c   :  { %v10038_v10 = vpop.f32.mrb[157].mxu1  ;;  %v6331_v8 = vsel %vm273_vm2, %v12911_v57, -inf }
 0xc2d   :  { %v4947_v25 = vpop.f32.mrb[158].mxu1  ;;  %6332 = vmax.xlane.f32.xlu0 %v6331_v8 }
 0xc2e   :  { %v10039_v34 = vpop.f32.mrb[159].mxu1 }
 0xc2f   :  { %v12915_v16 = vpop.f32.mrb[152].mxu0 }
 0xc30   :  { %v10044_v2 = vpop.f32.mrb[153].mxu0  ;;  %v6334_v24 = vsel %vm273_vm2, %v12915_v16, -inf }
 0xc31   :  { %v4996_v43 = vpop.f32.mrb[154].mxu0  ;;  %6335 = vmax.xlane.f32.xlu1 %v6334_v24 }
 0xc32   :  { %v6177_v20 = vpop.permute.xlu1 %6176  ;;  %v6128_v62 = vpop.permute.xlu0 %6127 }
 0xc33   :  { %v6182_v7 = vsel %vm273_vm2, %v6177_v20, 0  ;;  %v6133_v39 = vsel %vm273_vm2, %v6128_v62, 0  ;;  %v10045_v31 = vpop.f32.mrb[155].mxu0  ;;  %v12921_v50 = vpop.f32.mrb[160].mxu1 }
 0xc34   :  { %10185 = vmatpush3.bf16.xpose.msra.mxu0 %v6133_v39  ;;  %10191 = vmatpush3.bf16.xpose.msra.mxu1 %v6182_v7  ;;  %v10050_v19 = vpop.f32.mrb[161].mxu1  ;;  %v6337_v51 = vsel %vm273_vm2, %v12921_v50, -inf }
 0xc35   :  { %v5045_v47 = vpop.f32.mrb[162].mxu1  ;;  %6338 = vmax.xlane.f32.xlu0 %v6337_v51  ;;  %10196 = vmatprep.subr.bf16.mxu0 %v13876_v32 }
 0xc36   :  { %v6275_v49 = vpop.permute.xlu1 %6274  ;;  %10202 = vmatprep.subr.bf16.mxu1 %v13876_v32  ;;  %v10051_v42 = vpop.f32.mrb[163].mxu1 }
 0xc37   :  { %v12927_v41 = vpop.f32.mrb[156].mxu0  ;;  %v6226_v22 = vpop.permute.xlu0 %6225  ;;  %v6280_v5 = vsel %vm273_vm2, %v6275_v49, 0 }
 0xc38   :  { %v10056_v37 = vpop.f32.mrb[157].mxu0  ;;  %v6340_v45 = vsel %vm273_vm2, %v12927_v41, -inf  ;;  %v6231_v36 = vsel %vm273_vm2, %v6226_v22, 0 }
 0xc39   :  { %v5094_v60 = vpop.f32.mrb[158].mxu0  ;;  %6341 = vmax.xlane.f32.xlu1 %v6340_v45 }
 0xc3a   :  { %v10057_v3 = vpop.f32.mrb[159].mxu0 }
 0xc3b   :  { %10187 = vmatmul.mubr.msk.bf16.vlgmr.msra.gmra.mrb[200].mxu0 %vm273_vm2, %v12743_v33  ;;  %10193 = vmatmul.mubr.msk.bf16.vlgmr.msra.gmra.mrb[208].mxu1 %vm273_vm2, %v12741_v46  ;;  %v12937_v18 = vpop.f32.mrb[164].mxu1  ;;  %v6707_v4 = vpop.permute.xlu1 %6706 }
 0xc3c   :  { %10197 = vmatpush3.bf16.xpose.msra.mxu0 %v6231_v36  ;;  %10203 = vmatpush3.bf16.xpose.msra.mxu1 %v6280_v5  ;;  %v10062_v28 = vpop.f32.mrb[165].mxu1  ;;  %v6343_v44 = vsel %vm273_vm2, %v12937_v18, -inf  ;;  %v6755_v13 = vpop.permute.xlu0 %6754  ;;  %v6712_v54 = vsel %vm2228_vm3, %v6707_v4, 0 }
 0xc3d   :  { %10204 = vmatprep.mubr.msk.bf16.mxu1 %vm11044_vm1, %v13876_v32  ;;  %10198 = vmatprep.mubr.msk.bf16.mxu0 %vm11044_vm1, %v13876_v32  ;;  %v5143_v61 = vpop.f32.mrb[166].mxu1  ;;  %v6760_v59 = vsel %vm2228_vm3, %v6755_v13, 0 }
 0xc3e   :  { %6344 = vmax.xlane.f32.xlu0 %v6343_v44  ;;  %10208 = vmatprep.subr.bf16.mxu0 %v13876_v32  ;;  %v10063_v23 = vpop.f32.mrb[167].mxu1 }
 0xc3f   :  { %10214 = vmatprep.subr.bf16.mxu1 %v13876_v32  ;;  %v12975_v19 = vpop.permute.xlu1 %6802 }
 0xc40   :  { %v12977_v51 = vpop.permute.xlu0 %6850 }
 0xc43   :  { %10199 = vmatmul.mubr.msk.bf16.vlgmr.msra.gmra.mrb[204].mxu0 %vm273_vm2, %v12757_v58  ;;  %10205 = vmatmul.mubr.msk.bf16.vlgmr.msra.gmra.mrb[212].mxu1 %vm273_vm2, %v12755_v40 }
 0xc44   :  { %10209 = vmatpush3.bf16.msra.mxu0 %v6712_v54  ;;  %10215 = vmatpush3.bf16.msra.mxu1 %v6760_v59  ;;  %v12979_v47 = vpop.permute.xlu1 %6898  ;;  %v12981_v49 = vpop.permute.xlu0 %6946 }
 0xc45   :  { %10216 = vmatprep.mubr.msk.bf16.mxu1 %vm11044_vm1, %v13876_v32  ;;  %10226 = vmatprep.subr.bf16.mxu1 %v13876_v32 }
 0xc46   :  { %10210 = vmatprep.mubr.msk.bf16.mxu0 %vm11044_vm1, %v13876_v32  ;;  %10220 = vmatprep.subr.bf16.mxu0 %v13876_v32 }
 0xc48   :  { %v12983_v42 = vpop.permute.xlu1 %6994  ;;  %v12985_v22 = vpop.permute.xlu0 %7042 }
 0xc4d   :  { %v12987_v37 = vpop.permute.xlu1 %7090  ;;  %v12989_v45 = vpop.permute.xlu0 %7138 }
 0xc51   :  { %v12991_v60 = vpop.permute.xlu1 %7186  ;;  %v12993_v3 = vpop.permute.xlu0 %7234 }
 0xc56   :  { %v12995_v5 = vpop.permute.xlu1 %7282  ;;  %v12997_v36 = vpop.permute.xlu0 %7426 }
 0xc57   :  { %v12959_v9 = vpop.f32.mrb[160].mxu0  ;;  %v12961_v21 = vpop.f32.mrb[168].mxu1 }
 0xc58   :  { %v10068_v6 = vpop.f32.mrb[161].mxu0  ;;  %v10074_v30 = vpop.f32.mrb[169].mxu1  ;;  %v6346_v53 = vsel %vm273_vm2, %v12959_v9, -inf  ;;  %v6349_v56 = vsel %vm273_vm2, %v12961_v21, -inf }
 0xc59   :  { %v5192_v12 = vpop.f32.mrb[162].mxu0  ;;  %v5241_v52 = vpop.f32.mrb[170].mxu1  ;;  %6347 = vmax.xlane.f32.xlu1 %v6346_v53  ;;  %6350 = vmax.xlane.f32.xlu0 %v6349_v56 }
 0xc5a   :  { %v10069_v10 = vpop.f32.mrb[163].mxu0  ;;  %v10075_v8 = vpop.f32.mrb[171].mxu1 }
 0xc5b   :  { %v13007_v53 = vpop.permute.xlu1 %7378  ;;  %v13009_v56 = vpop.permute.xlu0 %7522 }
 0xc5c   :  { %13899 = vst [vmem:[#allocation11_spill] sm:$0xff] %v13009_v56 }
 0xc60   :  { %v12967_v25 = vpop.f32.mrb[164].mxu0  ;;  %v12969_v34 = vpop.f32.mrb[172].mxu1 }
 0xc61   :  { %v10080_v2 = vpop.f32.mrb[165].mxu0  ;;  %v10086_v24 = vpop.f32.mrb[173].mxu1  ;;  %v6352_v43 = vsel %vm273_vm2, %v12967_v25, -inf  ;;  %v6355_v20 = vsel %vm273_vm2, %v12969_v34, -inf }
 0xc62   :  { %v5290_v62 = vpop.f32.mrb[166].mxu0  ;;  %v5339_v7 = vpop.f32.mrb[174].mxu1  ;;  %6353 = vmax.xlane.f32.xlu1 %v6352_v43  ;;  %6356 = vmax.xlane.f32.xlu0 %v6355_v20 }
 0xc63   :  { %v10081_v39 = vpop.f32.mrb[167].mxu0  ;;  %v10087_v31 = vpop.f32.mrb[175].mxu1 }
 0xc64   :  { %v13019_v39 = vpop.permute.xlu1 %7474  ;;  %v13021_v31 = vpop.permute.xlu0 %7618 }
 0xc65   :  { %13900 = vst [vmem:[#allocation13_spill] sm:$0xff] %v13021_v31 }
 0xc92   :  { %v12999_v28 = vpop.f32.mrb[168].mxu0  ;;  %v13001_v44 = vpop.f32.mrb[176].mxu1 }
 0xc93   :  { %v10092_v61 = vpop.f32.mrb[169].mxu0  ;;  %v10098_v4 = vpop.f32.mrb[177].mxu1  ;;  %v6358_v13 = vsel %vm273_vm2, %v12999_v28, -inf  ;;  %v6361_v23 = vsel %vm273_vm2, %v13001_v44, -inf }
 0xc94   :  { %v5388_v54 = vpop.f32.mrb[170].mxu0  ;;  %v5437_v59 = vpop.f32.mrb[178].mxu1  ;;  %6359 = vmax.xlane.f32.xlu1 %v6358_v13  ;;  %6362 = vmax.xlane.f32.xlu0 %v6361_v23 }
 0xc95   :  { %v10093_v6 = vpop.f32.mrb[171].mxu0  ;;  %v10099_v30 = vpop.f32.mrb[179].mxu1 }
 0xc96   :  { %v13027_v13 = vpop.permute.xlu1 %7570 }
 0xc97   :  { %13901 = vst [vmem:[#allocation14_spill] sm:$0xff] %v13027_v13 }
 0xc9b   :  { %v13011_v12 = vpop.f32.mrb[172].mxu0  ;;  %v13013_v52 = vpop.f32.mrb[180].mxu1 }
 0xc9c   :  { %v10104_v10 = vpop.f32.mrb[173].mxu0  ;;  %v10110_v8 = vpop.f32.mrb[181].mxu1  ;;  %v6364_v2 = vsel %vm273_vm2, %v13011_v12, -inf  ;;  %v6367_v24 = vsel %vm273_vm2, %v13013_v52, -inf }
 0xc9d   :  { %v5486_v43 = vpop.f32.mrb[174].mxu0  ;;  %v5535_v20 = vpop.f32.mrb[182].mxu1  ;;  %6365 = vmax.xlane.f32.xlu1 %v6364_v2  ;;  %6368 = vmax.xlane.f32.xlu0 %v6367_v24 }
 0xc9e   :  { %v10105_v62 = vpop.f32.mrb[175].mxu0  ;;  %v10111_v7 = vpop.f32.mrb[183].mxu1 }
 0xc9f   :  { %v13029_v8 = vpop.permute.xlu0 %7810  ;;  %v13031_v2 = vpop.permute.xlu1 %7666 }
 0xca0   :  { %13902 = vst [vmem:[#allocation15_spill] sm:$0xff] %v13029_v8  ;;  %13903 = vst [vmem:[#allocation16_spill] sm:$0xff] %v13031_v2 }
 0xca4   :  { %v13023_v61 = vpop.f32.mrb[176].mxu0  ;;  %v13025_v4 = vpop.f32.mrb[184].mxu1 }
 0xca5   :  { %v10116_v23 = vpop.f32.mrb[177].mxu0  ;;  %v10122_v54 = vpop.f32.mrb[185].mxu1 }
 0xca6   :  { %v5584_v59 = vpop.f32.mrb[178].mxu0  ;;  %v5633_v6 = vpop.f32.mrb[186].mxu1 }
 0xca7   :  { %v10117_v30 = vpop.f32.mrb[179].mxu0  ;;  %v10123_v10 = vpop.f32.mrb[187].mxu1 }
 0xca8   :  { %v13043_v6 = vpop.permute.xlu0 %7330  ;;  %v13045_v30 = vpop.permute.xlu1 %7762 }
 0xca9   :  { %13904 = vst [vmem:[#allocation17_spill] sm:$0xff] %v13045_v30 }
 0xcac   :  { %v13051_v11 = vpop.permute.xlu0 %7714 }
 0xcad   :  { %v13033_v24 = vpop.f32.mrb[180].mxu0  ;;  %v13035_v43 = vpop.f32.mrb[188].mxu1  ;;  %13905 = vst [vmem:[#allocation18_spill] sm:$0xff] %v13051_v11 }
 0xcae   :  { %v10128_v20 = vpop.f32.mrb[181].mxu0  ;;  %v10134_v62 = vpop.f32.mrb[189].mxu1  ;;  %7954 = vrot.lane.b32.xlu1 %v12717_v15, %s11048_s17 }
 0xcaf   :  { %v5682_v7 = vpop.f32.mrb[182].mxu0  ;;  %v5731_v23 = vpop.f32.mrb[190].mxu1 }
 0xcb0   :  { %v10129_v54 = vpop.f32.mrb[183].mxu0  ;;  %v10135_v59 = vpop.f32.mrb[191].mxu1 }
 0xcb1   :  { %v6324_v55 = vpop.xlane.xlu0 %6323 }
 0xcb2   :  { %8002 = vrot.lane.b32.xlu1 %v12715_v63, %s11048_s17  ;;  %v13053_v63 = vpop.permute.xlu1 %7858 }
 0xcb3   :  { %7906 = vrot.lane.b32.xlu0 %v12701_v29, %s11048_s17  ;;  %13906 = vst [vmem:[#allocation19_spill] sm:$0xff] %v13053_v63 }
 0xcb6   :  { %v13047_v10 = vpop.f32.mrb[184].mxu0  ;;  %v13049_v20 = vpop.f32.mrb[192].mxu1 }
 0xcb7   :  { %v10140_v62 = vpop.f32.mrb[185].mxu0  ;;  %v10146_v15 = vpop.f32.mrb[193].mxu1 }
 0xcb8   :  { %v5780_v7 = vpop.f32.mrb[186].mxu0  ;;  %v5829_v23 = vpop.f32.mrb[194].mxu1 }
 0xcb9   :  { %v10141_v54 = vpop.f32.mrb[187].mxu0  ;;  %v10147_v59 = vpop.f32.mrb[195].mxu1 }
 0xcba   :  { %v6327_v29 = vpop.xlane.xlu1 %6326  ;;  %v6330_v7 = vpop.xlane.xlu0 %6329  ;;  %v6418_v54 = vsub.f32 %v12839_v26, %v6324_v55 }
 0xcbb   :  { %v6419_v23 = vsub.f32 %v12903_v14, %v6327_v29  ;;  %v6420_v2 = vsub.f32 %v12907_v17, %v6330_v7  ;;  %v6370_v17 = vsel %vm273_vm2, %v13023_v61, -inf }
 0xcbc   :  { %v6450_v63 = vmul.f32 1.442695, %v6418_v54 }
 0xcbd   :  { %v6452_v59 = vmul.f32 1.442695, %v6419_v23 }
 0xcbe   :  { %v6333_v30 = vpop.xlane.xlu0 %6332 }
 0xcbf   :  { %v13055_v35 = vpop.f32.mrb[188].mxu0  ;;  %v13057_v48 = vpop.f32.mrb[196].mxu1  ;;  %10874 = vpow2.f32 %v6452_v59  ;;  %v6421_v8 = vsub.f32 %v12911_v57, %v6333_v30  ;;  %v6376_v59 = vsel %vm273_vm2, %v13033_v24, -inf }
 0xcc0   :  { %v10152_v1 = vpop.f32.mrb[189].mxu0  ;;  %v10158_v38 = vpop.f32.mrb[197].mxu1  ;;  %10876 = vpow2.f32 %v6450_v63 }
 0xcc1   :  { %v5878_v0 = vpop.f32.mrb[190].mxu0  ;;  %v5927_v27 = vpop.f32.mrb[198].mxu1  ;;  %v6456_v1 = vmul.f32 1.442695, %v6421_v8  ;;  %v6379_v8 = vsel %vm273_vm2, %v13035_v43, -inf }
 0xcc2   :  { %v10153_v62 = vpop.f32.mrb[191].mxu0  ;;  %v10159_v15 = vpop.f32.mrb[199].mxu1  ;;  %v6373_v0 = vsel %vm273_vm2, %v13025_v4, -inf }
 0xcc3   :  { %v6339_v38 = vpop.xlane.xlu0 %6338  ;;  %v6336_v27 = vpop.xlane.xlu1 %6335  ;;  %v6454_v62 = vmul.f32 1.442695, %v6420_v2  ;;  %10878 = vpow2.f32 %v6456_v1 }
 0xcc4   :  { %v6423_v55 = vsub.f32 %v12921_v50, %v6339_v38  ;;  %v6422_v7 = vsub.f32 %v12915_v16, %v6336_v27 }
 0xcc5   :  { %10880 = vpow2.f32 %v6454_v62 }
 0xcc6   :  { %v6460_v23 = vmul.f32 1.442695, %v6423_v55 }
 0xcc8   :  { %10882 = vpow2.f32 %v6460_v23 }
 0xcc9   :  { %v13074_v30 = vpop.eup %10874 }
 0xcca   :  { %v6517_v1 = vsel %vm273_vm2, %v13074_v30, 0.0  ;;  %v13081_v38 = vpop.eup %10876 }
 0xccb   :  { %v6345_v54 = vpop.xlane.xlu0 %6344 }
 0xcd2   :  { %6374 = vmax.xlane.f32.xlu0 %v6373_v0  ;;  %v6342_v0 = vpop.xlane.xlu1 %6341 }
 0xcd4   :  { %v13066_v26 = vpop.f32.mrb[192].mxu0  ;;  %v13068_v14 = vpop.f32.mrb[200].mxu1 }
 0xcd5   :  { %v10164_v29 = vpop.f32.mrb[193].mxu0  ;;  %v10170_v57 = vpop.f32.mrb[201].mxu1 }
 0xcd6   :  { %v5976_v63 = vpop.f32.mrb[194].mxu0  ;;  %v6025_v15 = vpop.f32.mrb[202].mxu1  ;;  %6371 = vmax.xlane.f32.xlu1 %v6370_v17  ;;  %6380 = vmax.xlane.f32.xlu0 %v6379_v8  ;;  %v6458_v29 = vmul.f32 1.442695, %v6422_v7  ;;  %v6425_v57 = vsub.f32 %v12937_v18, %v6345_v54  ;;  %v6385_v17 = vsel %vm273_vm2, %v13049_v20, -inf  ;;  %v6514_v8 = vsel %vm273_vm2, %v13081_v38, 0.0 }
 0xcd7   :  { %v10165_v2 = vpop.f32.mrb[195].mxu0  ;;  %v10171_v50 = vpop.f32.mrb[203].mxu1  ;;  %v6424_v7 = vsub.f32 %v12927_v41, %v6342_v0  ;;  %v6382_v54 = vsel %vm273_vm2, %v13047_v10, -inf  ;;  %v6388_v0 = vsel %vm273_vm2, %v13055_v35, -inf }
 0xcd8   :  { %v13092_v63 = vpop.eup %10878  ;;  %10884 = vpow2.f32 %v6458_v29  ;;  %v6464_v23 = vmul.f32 1.442695, %v6425_v57  ;;  %v6391_v29 = vsel %vm273_vm2, %v13057_v48, -inf }
 0xcda   :  { %6377 = vmax.xlane.f32.xlu1 %v6376_v59  ;;  %6518 = vadd.xlane.f32.xlu0 %v6517_v1  ;;  %v6523_v59 = vsel %vm273_vm2, %v13092_v63, 0.0  ;;  %v13099_v1 = vpop.eup %10880  ;;  %10886 = vpow2.f32 %v6464_v23 }
 0xcdb   :  { %v13105_v41 = vpop.eup %10882 }
 0xcdc   :  { %v13084_v62 = vpop.f32.mrb[196].mxu0  ;;  %v13086_v16 = vpop.f32.mrb[204].mxu1  ;;  %v6529_v57 = vsel %vm273_vm2, %v13105_v41, 0.0 }
 0xcdd   :  { %v10176_v27 = vpop.f32.mrb[197].mxu0  ;;  %v10182_v55 = vpop.f32.mrb[205].mxu1 }
 0xcde   :  { %v6074_v15 = vpop.f32.mrb[198].mxu0  ;;  %v6123_v2 = vpop.f32.mrb[206].mxu1  ;;  %6386 = vmax.xlane.f32.xlu0 %v6385_v17  ;;  %6515 = vadd.xlane.f32.xlu1 %v6514_v8  ;;  %v6462_v27 = vmul.f32 1.442695, %v6424_v7  ;;  %v6520_v55 = vsel %vm273_vm2, %v13099_v1, 0.0 }
 0xcdf   :  { %v10183_v50 = vpop.f32.mrb[207].mxu1  ;;  %v10177_v18 = vpop.f32.mrb[199].mxu0  ;;  %v6397_v15 = vsel %vm273_vm2, %v13068_v14, -inf }
 0xce0   :  { %10888 = vpow2.f32 %v6462_v27  ;;  %v6394_v50 = vsel %vm273_vm2, %v13066_v26, -inf }
 0xce2   :  { %6383 = vmax.xlane.f32.xlu1 %v6382_v54  ;;  %6524 = vadd.xlane.f32.xlu0 %v6523_v59  ;;  %v13111_v17 = vpop.eup %10884  ;;  %v6403_v54 = vsel %vm273_vm2, %v13086_v16, -inf  ;;  %v6400_v59 = vsel %vm273_vm2, %v13084_v62, -inf }
 0xce3   :  { %v6526_v8 = vsel %vm273_vm2, %v13111_v17, 0.0 }
 0xce4   :  { %v13117_v2 = vpop.eup %10886 }
 0xce5   :  { %v6535_v18 = vsel %vm273_vm2, %v13117_v2, 0.0 }
 0xce6   :  { %6521 = vadd.xlane.f32.xlu1 %v6520_v55  ;;  %6392 = vmax.xlane.f32.xlu0 %v6391_v29  ;;  %v6348_v27 = vpop.xlane.xlu1 %6347  ;;  %v6351_v55 = vpop.xlane.xlu0 %6350 }
 0xce7   :  { %v6426_v29 = vsub.f32 %v12959_v9, %v6348_v27 }
 0xcea   :  { %6389 = vmax.xlane.f32.xlu1 %v6388_v0  ;;  %6530 = vadd.xlane.f32.xlu0 %v6529_v57  ;;  %v13123_v7 = vpop.eup %10888  ;;  %v6427_v0 = vsub.f32 %v12961_v21, %v6351_v55 }
 0xceb   :  { %v6532_v23 = vsel %vm273_vm2, %v13123_v7, 0.0 }
 0xcee   :  { %6527 = vadd.xlane.f32.xlu1 %v6526_v8  ;;  %6398 = vmax.xlane.f32.xlu0 %v6397_v15  ;;  %v6466_v15 = vmul.f32 1.442695, %v6426_v29 }
 0xcef   :  { %v6354_v57 = vpop.xlane.xlu1 %6353  ;;  %v6357_v8 = vpop.xlane.xlu0 %6356 }
 0xcf0   :  { %v6429_v11 = vsub.f32 %v12969_v34, %v6357_v8  ;;  %10890 = vpow2.f32 %v6466_v15 }
 0xcf2   :  { %6395 = vmax.xlane.f32.xlu1 %v6394_v50  ;;  %6536 = vadd.xlane.f32.xlu0 %v6535_v18  ;;  %v6428_v50 = vsub.f32 %v12967_v25, %v6354_v57  ;;  %v6468_v18 = vmul.f32 1.442695, %v6427_v0 }
 0xcf4   :  { %10892 = vpow2.f32 %v6468_v18 }
 0xcf6   :  { %6533 = vadd.xlane.f32.xlu1 %v6532_v23  ;;  %6404 = vmax.xlane.f32.xlu0 %v6403_v54  ;;  %v6470_v23 = vmul.f32 1.442695, %v6428_v50  ;;  %v6472_v54 = vmul.f32 1.442695, %v6429_v11 }
 0xcf8   :  { %10894 = vpow2.f32 %v6470_v23 }
 0xcf9   :  { %10896 = vpow2.f32 %v6472_v54 }
 0xcfa   :  { %6401 = vmax.xlane.f32.xlu1 %v6400_v59 }
 0xd0e   :  { %v13135_v13 = vpop.f32.mrb[200].mxu0  ;;  %v13137_v59 = vpop.f32.mrb[208].mxu1 }
 0xd0f   :  { %v10188_v31 = vpop.f32.mrb[201].mxu0  ;;  %v10194_v9 = vpop.f32.mrb[209].mxu1  ;;  %v6406_v21 = vsel %vm273_vm2, %v13135_v13, -inf  ;;  %v6409_v27 = vsel %vm273_vm2, %v13137_v59, -inf }
 0xd10   :  { %v6172_v25 = vpop.f32.mrb[202].mxu0  ;;  %v6221_v55 = vpop.f32.mrb[210].mxu1  ;;  %6407 = vmax.xlane.f32.xlu1 %v6406_v21  ;;  %6410 = vmax.xlane.f32.xlu0 %v6409_v27 }
 0xd11   :  { %v10189_v34 = vpop.f32.mrb[203].mxu0  ;;  %v10195_v29 = vpop.f32.mrb[211].mxu1 }
 0xd12   :  { %v13147_v31 = vpop.eup %10890 }
 0xd13   :  { %v13153_v18 = vpop.eup %10892  ;;  %v6538_v25 = vsel %vm273_vm2, %v13147_v31, 0.0 }
 0xd14   :  { %v13155_v27 = vpop.eup %10894  ;;  %v6541_v55 = vsel %vm273_vm2, %v13153_v18, 0.0 }
 0xd15   :  { %v13161_v34 = vpop.eup %10896  ;;  %v6544_v29 = vsel %vm273_vm2, %v13155_v27, 0.0 }
 0xd16   :  { %v13143_v11 = vpop.f32.mrb[204].mxu0  ;;  %v13145_v0 = vpop.f32.mrb[212].mxu1 }
 0xd17   :  { %v10200_v57 = vpop.f32.mrb[205].mxu0  ;;  %v10206_v8 = vpop.f32.mrb[213].mxu1  ;;  %v6412_v15 = vsel %vm273_vm2, %v13143_v11, -inf  ;;  %v6415_v50 = vsel %vm273_vm2, %v13145_v0, -inf }
 0xd18   :  { %v6270_v23 = vpop.f32.mrb[206].mxu0  ;;  %v6319_v9 = vpop.f32.mrb[214].mxu1  ;;  %6413 = vmax.xlane.f32.xlu1 %v6412_v15  ;;  %6416 = vmax.xlane.f32.xlu0 %v6415_v50  ;;  %v6547_v57 = vsel %vm273_vm2, %v13161_v34, 0.0 }
 0xd19   :  { %v10201_v54 = vpop.f32.mrb[207].mxu0  ;;  %v10207_v21 = vpop.f32.mrb[215].mxu1 }
 0xd1c   :  { %6539 = vadd.xlane.f32.xlu1 %v6538_v25  ;;  %6542 = vadd.xlane.f32.xlu0 %v6541_v55 }
 0xd20   :  { %6545 = vadd.xlane.f32.xlu1 %v6544_v29  ;;  %6548 = vadd.xlane.f32.xlu0 %v6547_v57 }
 0xd21   :  { %v6360_v8 = vpop.xlane.xlu1 %6359  ;;  %v6363_v15 = vpop.xlane.xlu0 %6362 }
 0xd22   :  { %v6430_v50 = vsub.f32 %v12999_v28, %v6360_v8  ;;  %v6431_v23 = vsub.f32 %v13001_v44, %v6363_v15 }
 0xd24   :  { %v6474_v9 = vmul.f32 1.442695, %v6430_v50  ;;  %v6476_v54 = vmul.f32 1.442695, %v6431_v23 }
 0xd26   :  { %10898 = vpow2.f32 %v6474_v9 }
 0xd27   :  { %10900 = vpow2.f32 %v6476_v54 }
 0xd2a   :  { %v6366_v21 = vpop.xlane.xlu1 %6365  ;;  %v6369_v25 = vpop.xlane.xlu0 %6368 }
 0xd2b   :  { %v6432_v55 = vsub.f32 %v13011_v12, %v6366_v21  ;;  %v6433_v58 = vsub.f32 %v13013_v52, %v6369_v25 }
 0xd2d   :  { %v6478_v40 = vmul.f32 1.442695, %v6432_v55  ;;  %v6480_v56 = vmul.f32 1.442695, %v6433_v58 }
 0xd2e   :  { %v13189_v52 = vpop.permute.xlu0 %7906 }
 0xd2f   :  { %10902 = vpow2.f32 %v6478_v40  ;;  %13908 = vst [vmem:[#allocation21_spill] sm:$0xff] %v13189_v52 }
 0xd30   :  { %v13171_v29 = vpop.eup %10898  ;;  %10904 = vpow2.f32 %v6480_v56  ;;  %v13187_v56 = vpop.permute.xlu1 %7954 }
 0xd31   :  { %v13173_v57 = vpop.eup %10900  ;;  %v6550_v28 = vsel %vm273_vm2, %v13171_v29, 0.0  ;;  %13907 = vst [vmem:[#allocation20_spill] sm:$0xff] %v13187_v56 }
 0xd32   :  { %6551 = vadd.xlane.f32.xlu1 %v6550_v28  ;;  %v6553_v44 = vsel %vm273_vm2, %v13173_v57, 0.0 }
 0xd33   :  { %6554 = vadd.xlane.f32.xlu0 %v6553_v44 }
 0xd34   :  { %v13191_v15 = vpop.permute.xlu1 %8002 }
 0xd35   :  { %13909 = vst [vmem:[#allocation22_spill] sm:$0xff] %v13191_v15 }
 0xd39   :  { %v13179_v8 = vpop.eup %10902 }
 0xd3a   :  { %v13181_v12 = vpop.eup %10904  ;;  %v6556_v40 = vsel %vm273_vm2, %v13179_v8, 0.0 }
 0xd3b   :  { %6557 = vadd.xlane.f32.xlu1 %v6556_v40  ;;  %v6559_v58 = vsel %vm273_vm2, %v13181_v12, 0.0 }
 0xd3c   :  { %6560 = vadd.xlane.f32.xlu0 %v6559_v58 }
 0xd5f   :  { %v6375_v50 = vpop.xlane.xlu0 %6374 }
 0xd60   :  { %v6435_v23 = vsub.f32 %v13025_v4, %v6375_v50 }
 0xd62   :  { %v6484_v9 = vmul.f32 1.442695, %v6435_v23 }
 0xd63   :  { %v6372_v54 = vpop.xlane.xlu1 %6371  ;;  %v6381_v21 = vpop.xlane.xlu0 %6380 }
 0xd64   :  { %10906 = vpow2.f32 %v6484_v9  ;;  %v6434_v25 = vsub.f32 %v13023_v61, %v6372_v54  ;;  %v6437_v55 = vsub.f32 %v13035_v43, %v6381_v21 }
 0xd66   :  { %v6482_v28 = vmul.f32 1.442695, %v6434_v25  ;;  %v6488_v44 = vmul.f32 1.442695, %v6437_v55 }
 0xd67   :  { %v6378_v40 = vpop.xlane.xlu1 %6377  ;;  %v6519_v58 = vpop.xlane.xlu0 %6518 }
 0xd68   :  { %10908 = vpow2.f32 %v6482_v28  ;;  %v6436_v56 = vsub.f32 %v13033_v24, %v6378_v40 }
 0xd69   :  { %10910 = vpow2.f32 %v6488_v44 }
 0xd6a   :  { %v6486_v15 = vmul.f32 1.442695, %v6436_v56  ;;  %10912 = vrcp.f32 %v6519_v58 }
 0xd6b   :  { %v6516_v52 = vpop.xlane.xlu1 %6515  ;;  %v6387_v4 = vpop.xlane.xlu0 %6386 }
 0xd6c   :  { %10914 = vpow2.f32 %v6486_v15  ;;  %v6439_v50 = vsub.f32 %v13049_v20, %v6387_v4 }
 0xd6d   :  { %10916 = vrcp.f32 %v6516_v52 }
 0xd6e   :  { %v13198_v23 = vpop.eup %10906  ;;  %v6492_v61 = vmul.f32 1.442695, %v6439_v50 }
 0xd6f   :  { %v6384_v43 = vpop.xlane.xlu1 %6383  ;;  %v6525_v9 = vpop.xlane.xlu0 %6524  ;;  %v6565_v54 = vsel %vm273_vm2, %v13198_v23, 0.0 }
 0xd70   :  { %10918 = vpow2.f32 %v6492_v61  ;;  %v6438_v24 = vsub.f32 %v13047_v10, %v6384_v43  ;;  %6566 = vadd.xlane.f32.xlu0 %v6565_v54 }
 0xd71   :  { %10920 = vrcp.f32 %v6525_v9 }
 0xd72   :  { %v13203_v56 = vpop.eup %10908  ;;  %v6490_v21 = vmul.f32 1.442695, %v6438_v24 }
 0xd73   :  { %v13205_v15 = vpop.eup %10910  ;;  %v6522_v20 = vpop.xlane.xlu1 %6521  ;;  %v6562_v25 = vsel %vm273_vm2, %v13203_v56, 0.0 }
 0xd74   :  { %v6393_v52 = vpop.xlane.xlu0 %6392  ;;  %v10913_v55 = vpop.eup %10912  ;;  %10922 = vpow2.f32 %v6490_v21  ;;  %6563 = vadd.xlane.f32.xlu1 %v6562_v25  ;;  %v6571_v10 = vsel %vm273_vm2, %v13205_v15, 0.0 }
 0xd75   :  { %v6441_v28 = vsub.f32 %v13057_v48, %v6393_v52  ;;  %v6643_v44 = vmul.f32 %v10913_v55, %v13074_v30  ;;  %10924 = vrcp.f32 %v6522_v20  ;;  %6572 = vadd.xlane.f32.xlu0 %v6571_v10  ;;  %v6856_v30 = vsel %vm2228_vm3, %v12977_v51, 0 }
 0xd76   :  { %v13213_v40 = vpop.eup %10914  ;;  %v6808_v51 = vsel %vm2228_vm3, %v12975_v19, 0 }
 0xd77   :  { %v6496_v58 = vmul.f32 1.442695, %v6441_v28  ;;  %v10917_v4 = vpop.eup %10916  ;;  %v6390_v50 = vpop.xlane.xlu1 %6389  ;;  %v6675_v61 = vpack.c.bf16 %v6643_v44, %v6643_v44  ;;  %v6568_v9 = vsel %vm273_vm2, %v13213_v40, 0.0 }
 0xd78   :  { %v6531_v43 = vpop.xlane.xlu0 %6530  ;;  %v6642_v48 = vmul.f32 %v10917_v4, %v13081_v38  ;;  %v6440_v54 = vsub.f32 %v13055_v35, %v6390_v50  ;;  %6569 = vadd.xlane.f32.xlu1 %v6568_v9 }
 0xd79   :  { %10926 = vpow2.f32 %v6496_v58  ;;  %10217 = vmatmul.mubr.msk.bf16.vlgmr.msra.gmra.mrb[216].mxu1 %vm273_vm2, %v6675_v61 }
 0xd7a   :  { %10928 = vrcp.f32 %v6531_v43  ;;  %v13222_v24 = vpop.eup %10918  ;;  %v6494_v21 = vmul.f32 1.442695, %v6440_v54  ;;  %10227 = vmatpush3.bf16.msra.mxu1 %v6856_v30  ;;  %v6674_v20 = vpack.c.bf16 %v6642_v48, %v6642_v48  ;;  %10228 = vmatprep.mubr.msk.bf16.mxu1 %vm11044_vm1, %v13876_v32  ;;  %v6952_v43 = vsel %vm2228_vm3, %v12981_v49, 0 }
 0xd7b   :  { %v10921_v52 = vpop.eup %10920  ;;  %v6528_v38 = vpop.xlane.xlu1 %6527  ;;  %v6577_v35 = vsel %vm273_vm2, %v13222_v24, 0.0  ;;  %10238 = vmatprep.subr.bf16.mxu1 %v13876_v32  ;;  %v6904_v49 = vsel %vm2228_vm3, %v12979_v47, 0 }
 0xd7c   :  { %v6399_v25 = vpop.xlane.xlu0 %6398  ;;  %v6645_v55 = vmul.f32 %v10921_v52, %v13092_v63  ;;  %10930 = vpow2.f32 %v6494_v21  ;;  %10211 = vmatmul.mubr.msk.bf16.vlgmr.msra.gmra.mrb[208].mxu0 %vm273_vm2, %v6674_v20  ;;  %6578 = vadd.xlane.f32.xlu0 %v6577_v35 }
 0xd7d   :  { %v6443_v28 = vsub.f32 %v13068_v14, %v6399_v25  ;;  %10221 = vmatpush3.bf16.msra.mxu0 %v6808_v51  ;;  %10932 = vrcp.f32 %v6528_v38  ;;  %10222 = vmatprep.mubr.msk.bf16.mxu0 %vm11044_vm1, %v13876_v32 }
 0xd7e   :  { %v13236_v10 = vpop.eup %10922  ;;  %v6677_v58 = vpack.c.bf16 %v6645_v55, %v6645_v55  ;;  %10232 = vmatprep.subr.bf16.mxu0 %v13876_v32 }
 0xd7f   :  { %v6500_v44 = vmul.f32 1.442695, %v6443_v28  ;;  %v10925_v19 = vpop.eup %10924  ;;  %v6396_v4 = vpop.xlane.xlu1 %6395  ;;  %v6574_v50 = vsel %vm273_vm2, %v13236_v10, 0.0  ;;  %v7048_v28 = vsel %vm2228_vm3, %v12985_v22, 0 }
 0xd80   :  { %v6537_v63 = vpop.xlane.xlu0 %6536  ;;  %v6644_v14 = vmul.f32 %v10925_v19, %v13099_v1  ;;  %v6442_v61 = vsub.f32 %v13066_v26, %v6396_v4  ;;  %6575 = vadd.xlane.f32.xlu1 %v6574_v50 }
 0xd81   :  { %10934 = vpow2.f32 %v6500_v44  ;;  %10229 = vmatmul.mubr.msk.bf16.vlgmr.msra.gmra.mrb[220].mxu1 %vm273_vm2, %v6677_v58 }
 0xd82   :  { %10936 = vrcp.f32 %v6537_v63  ;;  %v6498_v48 = vmul.f32 1.442695, %v6442_v61  ;;  %10239 = vmatpush3.bf16.msra.mxu1 %v6952_v43  ;;  %v6676_v54 = vpack.c.bf16 %v6644_v14, %v6644_v14  ;;  %10240 = vmatprep.mubr.msk.bf16.mxu1 %vm11044_vm1, %v13876_v32 }
 0xd83   :  { %v13246_v9 = vpop.eup %10926  ;;  %v6534_v1 = vpop.xlane.xlu1 %6533  ;;  %10250 = vmatprep.subr.bf16.mxu1 %v13876_v32 }
 0xd84   :  { %v10929_v30 = vpop.eup %10928  ;;  %v6405_v21 = vpop.xlane.xlu0 %6404  ;;  %v6583_v26 = vsel %vm273_vm2, %v13246_v9, 0.0  ;;  %10938 = vpow2.f32 %v6498_v48  ;;  %10223 = vmatmul.mubr.msk.bf16.vlgmr.msra.gmra.mrb[212].mxu0 %vm273_vm2, %v6676_v54 }
 0xd85   :  { %v6647_v20 = vmul.f32 %v10929_v30, %v13105_v41  ;;  %v6445_v52 = vsub.f32 %v13086_v16, %v6405_v21  ;;  %6584 = vadd.xlane.f32.xlu0 %v6583_v26  ;;  %10233 = vmatpush3.bf16.msra.mxu0 %v6904_v49  ;;  %10940 = vrcp.f32 %v6534_v1 }
 0xd86   :  { %10234 = vmatprep.mubr.msk.bf16.mxu0 %vm11044_vm1, %v13876_v32  ;;  %v13260_v38 = vpop.eup %10930  ;;  %10244 = vmatprep.subr.bf16.mxu0 %v13876_v32 }
 0xd87   :  { %v6504_v25 = vmul.f32 1.442695, %v6445_v52  ;;  %v6679_v35 = vpack.c.bf16 %v6647_v20, %v6647_v20  ;;  %v10933_v47 = vpop.eup %10932  ;;  %v6402_v51 = vpop.xlane.xlu1 %6401  ;;  %v6580_v41 = vsel %vm273_vm2, %v13260_v38, 0.0 }
 0xd88   :  { %v6646_v55 = vmul.f32 %v10933_v47, %v13111_v17  ;;  %v6444_v16 = vsub.f32 %v13084_v62, %v6402_v51  ;;  %6581 = vadd.xlane.f32.xlu1 %v6580_v41  ;;  %v7000_v62 = vsel %vm2228_vm3, %v12983_v42, 0 }
 0xd89   :  { %10942 = vpow2.f32 %v6504_v25  ;;  %10241 = vmatmul.mubr.msk.bf16.vlgmr.msra.gmra.mrb[224].mxu1 %vm273_vm2, %v6679_v35 }
 0xd8a   :  { %v6502_v58 = vmul.f32 1.442695, %v6444_v16  ;;  %10251 = vmatpush3.bf16.msra.mxu1 %v7048_v28  ;;  %v6678_v19 = vpack.c.bf16 %v6646_v55, %v6646_v55  ;;  %10252 = vmatprep.mubr.msk.bf16.mxu1 %vm11044_vm1, %v13876_v32 }
 0xd8b   :  { %v13270_v44 = vpop.eup %10934  ;;  %10262 = vmatprep.subr.bf16.mxu1 %v13876_v32 }
 0xd8c   :  { %v10937_v4 = vpop.eup %10936  ;;  %v6589_v17 = vsel %vm273_vm2, %v13270_v44, 0.0  ;;  %10944 = vpow2.f32 %v6502_v58  ;;  %10235 = vmatmul.mubr.msk.bf16.vlgmr.msra.gmra.mrb[216].mxu0 %vm273_vm2, %v6678_v19 }
 0xd8d   :  { %v6649_v22 = vmul.f32 %v10937_v4, %v13117_v2  ;;  %6590 = vadd.xlane.f32.xlu0 %v6589_v17  ;;  %10245 = vmatpush3.bf16.msra.mxu0 %v7000_v62  ;;  %v7144_v2 = vsel %vm2228_vm3, %v12989_v45, 0  ;;  %v7192_v62 = vsel %vm2228_vm3, %v12991_v60, 0 }
 0xd8e   :  { %10246 = vmatprep.mubr.msk.bf16.mxu0 %vm11044_vm1, %v13876_v32  ;;  %v13283_v63 = vpop.eup %10938  ;;  %10256 = vmatprep.subr.bf16.mxu0 %v13876_v32 }
 0xd8f   :  { %v6681_v50 = vpack.c.bf16 %v6649_v22, %v6649_v22  ;;  %v10941_v14 = vpop.eup %10940  ;;  %v6586_v61 = vsel %vm273_vm2, %v13283_v63, 0.0 }
 0xd90   :  { %v6648_v42 = vmul.f32 %v10941_v14, %v13123_v7  ;;  %6587 = vadd.xlane.f32.xlu1 %v6586_v61  ;;  %v7096_v7 = vsel %vm2228_vm3, %v12987_v37, 0 }
 0xd91   :  { %10253 = vmatmul.mubr.msk.bf16.vlgmr.msra.gmra.mrb[228].mxu1 %vm273_vm2, %v6681_v50  ;;  %v7288_v50 = vsel %vm2228_vm3, %v12995_v5, 0 }
 0xd92   :  { %10263 = vmatpush3.bf16.msra.mxu1 %v7144_v2  ;;  %v6680_v48 = vpack.c.bf16 %v6648_v42, %v6648_v42  ;;  %10264 = vmatprep.mubr.msk.bf16.mxu1 %vm11044_vm1, %v13876_v32 }
 0xd93   :  { %v13292_v43 = vpop.eup %10942  ;;  %10274 = vmatprep.subr.bf16.mxu1 %v13876_v32 }
 0xd94   :  { %v6595_v54 = vsel %vm273_vm2, %v13292_v43, 0.0  ;;  %10247 = vmatmul.mubr.msk.bf16.vlgmr.msra.gmra.mrb[220].mxu0 %vm273_vm2, %v6680_v48 }
 0xd95   :  { %6596 = vadd.xlane.f32.xlu0 %v6595_v54  ;;  %10257 = vmatpush3.bf16.msra.mxu0 %v7096_v7 }
 0xd96   :  { %10258 = vmatprep.mubr.msk.bf16.mxu0 %vm11044_vm1, %v13876_v32  ;;  %v13304_v45 = vpop.eup %10944  ;;  %10268 = vmatprep.subr.bf16.mxu0 %v13876_v32 }
 0xd97   :  { %v6592_v30 = vsel %vm273_vm2, %v13304_v45, 0.0 }
 0xd98   :  { %6593 = vadd.xlane.f32.xlu1 %v6592_v30 }
 0xd9d   :  { %v6408_v1 = vpop.xlane.xlu1 %6407  ;;  %v6411_v21 = vpop.xlane.xlu0 %6410 }
 0xd9e   :  { %v6447_v35 = vsub.f32 %v13137_v59, %v6411_v21  ;;  %v6446_v51 = vsub.f32 %v13135_v13, %v6408_v1 }
 0xda0   :  { %v6508_v55 = vmul.f32 1.442695, %v6447_v35  ;;  %v6506_v19 = vmul.f32 1.442695, %v6446_v51  ;;  %v7480_v51 = vsel %vm2228_vm3, %v13019_v39, 0  ;;  %v13911_v39 = vld [vmem:[#allocation12_spill] sm:$0xff] }
 0xda5   :  { %v6414_v26 = vpop.xlane.xlu1 %6413  ;;  %v6417_v49 = vpop.xlane.xlu0 %6416 }
 0xda6   :  { %v6448_v59 = vsub.f32 %v13143_v11, %v6414_v26 }
 0xda8   :  { %v6510_v11 = vmul.f32 1.442695, %v6448_v59  ;;  %v13913_v59 = vld [vmem:[#allocation13_spill] sm:$0xff] }
 0xda9   :  { %8098 = vrot.lane.b32.xlu1 %v12741_v46, %s11048_s17  ;;  %v6540_v37 = vpop.xlane.xlu1 %6539  ;;  %v6543_v20 = vpop.xlane.xlu0 %6542  ;;  %v6449_v46 = vsub.f32 %v13145_v0, %v6417_v49  ;;  %v7240_v0 = vsel %vm2228_vm3, %v12993_v3, 0 }
 0xdaa   :  { %10946 = vrcp.f32 %v6540_v37 }
 0xdab   :  { %8050 = vrot.lane.b32.xlu0 %v12743_v33, %s11048_s17  ;;  %10948 = vrcp.f32 %v6543_v20  ;;  %v6512_v13 = vmul.f32 1.442695, %v6449_v46  ;;  %v7384_v20 = vsel %vm2228_vm3, %v13007_v53, 0 }
 0xdad   :  { %v6546_v52 = vpop.xlane.xlu1 %6545  ;;  %v6549_v25 = vpop.xlane.xlu0 %6548 }
 0xdae   :  { %10950 = vrcp.f32 %v6546_v52 }
 0xdaf   :  { %10952 = vrcp.f32 %v6549_v25 }
 0xdb0   :  { %10954 = vpow2.f32 %v6508_v55 }
 0xdb1   :  { %10956 = vpow2.f32 %v6506_v19 }
 0xdb2   :  { %10958 = vpow2.f32 %v6512_v13  ;;  %v7624_v13 = vsel %vm2228_vm3, %v13913_v59, 0 }
 0xdb4   :  { %v10947_v47 = vpop.eup %10946 }
 0xdb5   :  { %v10949_v41 = vpop.eup %10948  ;;  %v6650_v16 = vmul.f32 %v10947_v47, %v13147_v31 }
 0xdb6   :  { %v6651_v28 = vmul.f32 %v10949_v41, %v13153_v18  ;;  %v13910_v41 = vld [vmem:[#allocation11_spill] sm:$0xff] }
 0xdb7   :  { %v6682_v33 = vpack.c.bf16 %v6650_v16, %v6650_v16  ;;  %v7528_v55 = vsel %vm2228_vm3, %v13910_v41, 0 }
 0xdb8   :  { %v10951_v58 = vpop.eup %10950  ;;  %v6683_v4 = vpack.c.bf16 %v6651_v28, %v6651_v28 }
 0xdb9   :  { %v10953_v17 = vpop.eup %10952  ;;  %10259 = vmatmul.mubr.msk.bf16.vlgmr.msra.gmra.mrb[224].mxu0 %vm273_vm2, %v6682_v33  ;;  %v6652_v31 = vmul.f32 %v10951_v58, %v13155_v27 }
 0xdba   :  { %10265 = vmatmul.mubr.msk.bf16.vlgmr.msra.gmra.mrb[232].mxu1 %vm273_vm2, %v6683_v4  ;;  %10269 = vmatpush3.bf16.msra.mxu0 %v7192_v62  ;;  %v6653_v60 = vmul.f32 %v10953_v17, %v13161_v34  ;;  %v7336_v34 = vsel %vm2228_vm3, %v13043_v6, 0  ;;  %v13339_v14 = vpop.eup %10954 }
 0xdbb   :  { %10275 = vmatpush3.bf16.msra.mxu1 %v7240_v0  ;;  %10270 = vmatprep.mubr.msk.bf16.mxu0 %vm11044_vm1, %v13876_v32  ;;  %v6684_v27 = vpack.c.bf16 %v6652_v31, %v6652_v31  ;;  %v13347_v5 = vpop.eup %10956  ;;  %v6601_v6 = vsel %vm273_vm2, %v13339_v14, 0.0 }
 0xdbc   :  { %10280 = vmatprep.subr.bf16.mxu0 %v13876_v32  ;;  %10276 = vmatprep.mubr.msk.bf16.mxu1 %vm11044_vm1, %v13876_v32  ;;  %v6685_v22 = vpack.c.bf16 %v6653_v60, %v6653_v60  ;;  %v13351_v42 = vpop.eup %10958  ;;  %v6598_v1 = vsel %vm273_vm2, %v13347_v5, 0.0 }
 0xdbd   :  { %10286 = vmatprep.subr.bf16.mxu1 %v13876_v32  ;;  %v6607_v21 = vsel %vm273_vm2, %v13351_v42, 0.0 }
 0xdbf   :  { %v6552_v3 = vpop.xlane.xlu1 %6551 }
 0xdc0   :  { %10960 = vrcp.f32 %v6552_v3  ;;  %v6555_v18 = vpop.xlane.xlu0 %6554  ;;  %v13914_v3 = vld [vmem:[#allocation14_spill] sm:$0xff] }
 0xdc1   :  { %10962 = vrcp.f32 %v6555_v18  ;;  %10271 = vmatmul.mubr.msk.bf16.vlgmr.msra.gmra.mrb[228].mxu0 %vm273_vm2, %v6684_v27  ;;  %v7576_v18 = vsel %vm2228_vm3, %v13914_v3, 0 }
 0xdc2   :  { %10964 = vpow2.f32 %v6510_v11  ;;  %10277 = vmatmul.mubr.msk.bf16.vlgmr.msra.gmra.mrb[236].mxu1 %vm273_vm2, %v6685_v22  ;;  %10281 = vmatpush3.bf16.msra.mxu0 %v7288_v50  ;;  %v13915_v50 = vld [vmem:[#allocation18_spill] sm:$0xff] }
 0xdc3   :  { %10287 = vmatpush3.bf16.msra.mxu1 %v7336_v34  ;;  %10282 = vmatprep.mubr.msk.bf16.mxu0 %vm11044_vm1, %v13876_v32  ;;  %v7720_v34 = vsel %vm2228_vm3, %v13915_v50, 0 }
 0xdc4   :  { %10288 = vmatprep.mubr.msk.bf16.mxu1 %vm11044_vm1, %v13876_v32  ;;  %10292 = vmatprep.subr.bf16.mxu0 %v13876_v32 }
 0xdc5   :  { %10298 = vmatprep.subr.bf16.mxu1 %v13876_v32 }
 0xdc8   :  { %v6558_v61 = vpop.xlane.xlu1 %6557 }
 0xdc9   :  { %10966 = vrcp.f32 %v6558_v61  ;;  %v6561_v2 = vpop.xlane.xlu0 %6560 }
 0xdca   :  { %6602 = vadd.xlane.f32.xlu0 %v6601_v6  ;;  %v10961_v48 = vpop.eup %10960  ;;  %10968 = vrcp.f32 %v6561_v2 }
 0xdcb   :  { %v10963_v54 = vpop.eup %10962  ;;  %v6654_v7 = vmul.f32 %v10961_v48, %v13171_v29  ;;  %v7432_v29 = vsel %vm2228_vm3, %v12997_v36, 0  ;;  %v13916_v48 = vld [vmem:[#allocation16_spill] sm:$0xff] }
 0xdcc   :  { %v6655_v30 = vmul.f32 %v10963_v54, %v13173_v57  ;;  %v13359_v26 = vpop.eup %10964  ;;  %v7672_v54 = vsel %vm2228_vm3, %v13916_v48, 0 }
 0xdcd   :  { %6599 = vadd.xlane.f32.xlu1 %v6598_v1  ;;  %v6686_v49 = vpack.c.bf16 %v6654_v7, %v6654_v7  ;;  %v6604_v57 = vsel %vm273_vm2, %v13359_v26, 0.0 }
 0xdce   :  { %6608 = vadd.xlane.f32.xlu0 %v6607_v21  ;;  %v6687_v37 = vpack.c.bf16 %v6655_v30, %v6655_v30  ;;  %v13917_v21 = vld [vmem:[#allocation15_spill] sm:$0xff] }
 0xdcf   :  { %10283 = vmatmul.mubr.msk.bf16.vlgmr.msra.gmra.mrb[232].mxu0 %vm273_vm2, %v6686_v49  ;;  %v7816_v49 = vsel %vm2228_vm3, %v13917_v21, 0 }
 0xdd0   :  { %10289 = vmatmul.mubr.msk.bf16.vlgmr.msra.gmra.mrb[240].mxu1 %vm273_vm2, %v6687_v37  ;;  %10293 = vmatpush3.bf16.msra.mxu0 %v7384_v20 }
 0xdd1   :  { %10299 = vmatpush3.bf16.msra.mxu1 %v7432_v29  ;;  %6605 = vadd.xlane.f32.xlu1 %v6604_v57  ;;  %v13918_v57 = vld [vmem:[#allocation17_spill] sm:$0xff] }
 0xdd2   :  { %10294 = vmatprep.mubr.msk.bf16.mxu0 %vm11044_vm1, %v13876_v32  ;;  %10300 = vmatprep.mubr.msk.bf16.mxu1 %vm11044_vm1, %v13876_v32 }
 0xdd3   :  { %v10967_v53 = vpop.eup %10966  ;;  %10304 = vmatprep.subr.bf16.mxu0 %v13876_v32  ;;  %10310 = vmatprep.subr.bf16.mxu1 %v13876_v32 }
 0xdd4   :  { %v10969_v36 = vpop.eup %10968  ;;  %v6656_v52 = vmul.f32 %v10967_v53, %v13179_v8  ;;  %v13912_v8 = vld [vmem:[#allocation10_spill] sm:$0xff]  ;;  %v7768_v53 = vsel %vm2228_vm3, %v13918_v57, 0 }
 0xdd5   :  { %v6657_v25 = vmul.f32 %v10969_v36, %v13181_v12 }
 0xdd6   :  { %v6688_v35 = vpack.c.bf16 %v6656_v52, %v6656_v52 }
 0xdd7   :  { %v6689_v47 = vpack.c.bf16 %v6657_v25, %v6657_v25 }
 0xdd8   :  { %10295 = vmatmul.mubr.msk.bf16.vlgmr.msra.gmra.mrb[236].mxu0 %vm273_vm2, %v6688_v35  ;;  %v13919_v35 = vld [vmem:[#allocation21_spill] sm:$0xff] }
 0xdd9   :  { %10301 = vmatmul.mubr.msk.bf16.vlgmr.msra.gmra.mrb[244].mxu1 %vm273_vm2, %v6689_v47  ;;  %10305 = vmatpush3.bf16.msra.mxu0 %v7480_v51  ;;  %v7912_v47 = vsel %vm2228_vm3, %v13919_v35, 0 }
 0xdda   :  { %10311 = vmatpush3.bf16.msra.mxu1 %v7528_v55  ;;  %10312 = vmatprep.mubr.msk.bf16.mxu1 %vm11044_vm1, %v13876_v32 }
 0xddb   :  { %10322 = vmatprep.subr.bf16.mxu1 %v13876_v32  ;;  %10306 = vmatprep.mubr.msk.bf16.mxu0 %vm11044_vm1, %v13876_v32 }
 0xddc   :  { %10316 = vmatprep.subr.bf16.mxu0 %v13876_v32 }
 0xde2   :  { %8194 = vrot.lane.b32.xlu1 %v13911_v39, %s11048_s17  ;;  %v13920_v39 = vld [vmem:[#allocation19_spill] sm:$0xff] }
 0xde4   :  { %8146 = vrot.lane.b32.xlu0 %v13912_v8, %s11048_s17  ;;  %v7864_v8 = vsel %vm2228_vm3, %v13920_v39, 0 }
 0xdfd   :  { %v6567_v12 = vpop.xlane.xlu0 %6566 }
 0xdfe   :  { %10970 = vrcp.f32 %v6567_v12 }
 0xe01   :  { %v6564_v46 = vpop.xlane.xlu1 %6563 }
 0xe02   :  { %10972 = vrcp.f32 %v6564_v46  ;;  %v6573_v16 = vpop.xlane.xlu0 %6572 }
 0xe03   :  { %10974 = vrcp.f32 %v6573_v16 }
 0xe05   :  { %v6570_v28 = vpop.xlane.xlu1 %6569 }
 0xe06   :  { %10976 = vrcp.f32 %v6570_v28 }
 0xe08   :  { %v10971_v33 = vpop.eup %10970 }
 0xe09   :  { %v6659_v58 = vmul.f32 %v10971_v33, %v13198_v23  ;;  %v6579_v19 = vpop.xlane.xlu0 %6578 }
 0xe0a   :  { %10978 = vrcp.f32 %v6579_v19 }
 0xe0b   :  { %v6691_v4 = vpack.c.bf16 %v6659_v58, %v6659_v58 }
 0xe0c   :  { %v10973_v17 = vpop.eup %10972 }
 0xe0d   :  { %v10975_v62 = vpop.eup %10974  ;;  %v6658_v0 = vmul.f32 %v10973_v17, %v13203_v56  ;;  %v6576_v31 = vpop.xlane.xlu1 %6575  ;;  %10313 = vmatmul.mubr.msk.bf16.vlgmr.msra.gmra.mrb[248].mxu1 %vm273_vm2, %v6691_v4  ;;  %v13922_v4 = vld [vmem:[#allocation20_spill] sm:$0xff] }
 0xe0e   :  { %10980 = vrcp.f32 %v6576_v31  ;;  %10323 = vmatpush3.bf16.msra.mxu1 %v7624_v13  ;;  %10324 = vmatprep.mubr.msk.bf16.mxu1 %vm11044_vm1, %v13876_v32  ;;  %v6661_v23 = vmul.f32 %v10975_v62, %v13205_v15 }
 0xe0f   :  { %v6690_v60 = vpack.c.bf16 %v6658_v0, %v6658_v0  ;;  %10334 = vmatprep.subr.bf16.mxu1 %v13876_v32 }
 0xe10   :  { %v10977_v11 = vpop.eup %10976  ;;  %v6693_v22 = vpack.c.bf16 %v6661_v23, %v6661_v23 }
 0xe11   :  { %10307 = vmatmul.mubr.msk.bf16.vlgmr.msra.gmra.mrb[240].mxu0 %vm273_vm2, %v6690_v60  ;;  %v6660_v27 = vmul.f32 %v10977_v11, %v13213_v40 }
 0xe12   :  { %v6585_v56 = vpop.xlane.xlu0 %6584  ;;  %10317 = vmatpush3.bf16.msra.mxu0 %v7576_v18  ;;  %10318 = vmatprep.mubr.msk.bf16.mxu0 %vm11044_vm1, %v13876_v32 }
 0xe13   :  { %10982 = vrcp.f32 %v6585_v56  ;;  %10328 = vmatprep.subr.bf16.mxu0 %v13876_v32  ;;  %v6692_v2 = vpack.c.bf16 %v6660_v27, %v6660_v27 }
 0xe14   :  { %v10979_v15 = vpop.eup %10978 }
 0xe15   :  { %v6582_v61 = vpop.xlane.xlu1 %6581  ;;  %10325 = vmatmul.mubr.msk.bf16.vlgmr.msra.gmra.mrb[252].mxu1 %vm273_vm2, %v6693_v22  ;;  %v6663_v6 = vmul.f32 %v10979_v15, %v13222_v24 }
 0xe16   :  { %10984 = vrcp.f32 %v6582_v61  ;;  %10335 = vmatpush3.bf16.msra.mxu1 %v7720_v34  ;;  %10336 = vmatprep.mubr.msk.bf16.mxu1 %vm11044_vm1, %v13876_v32 }
 0xe17   :  { %10346 = vmatprep.subr.bf16.mxu1 %v13876_v32  ;;  %v6695_v30 = vpack.c.bf16 %v6663_v6, %v6663_v6 }
 0xe18   :  { %v10981_v40 = vpop.eup %10980 }
 0xe19   :  { %10319 = vmatmul.mubr.msk.bf16.vlgmr.msra.gmra.mrb[244].mxu0 %vm273_vm2, %v6692_v2  ;;  %v6662_v1 = vmul.f32 %v10981_v40, %v13236_v10 }
 0xe1a   :  { %v6591_v7 = vpop.xlane.xlu0 %6590  ;;  %10329 = vmatpush3.bf16.msra.mxu0 %v7672_v54  ;;  %10330 = vmatprep.mubr.msk.bf16.mxu0 %vm11044_vm1, %v13876_v32 }
 0xe1b   :  { %10986 = vrcp.f32 %v6591_v7  ;;  %10340 = vmatprep.subr.bf16.mxu0 %v13876_v32  ;;  %v6694_v29 = vpack.c.bf16 %v6662_v1, %v6662_v1 }
 0xe1d   :  { %v10983_v24 = vpop.eup %10982  ;;  %v6588_v37 = vpop.xlane.xlu1 %6587  ;;  %10337 = vmatmul.mubr.msk.bf16.vlgmr.msra.gmra.mrb[0].mxu1 %vm273_vm2, %v6695_v30 }
 0xe1e   :  { %10988 = vrcp.f32 %v6588_v37  ;;  %10347 = vmatpush3.bf16.msra.mxu1 %v7816_v49  ;;  %10348 = vmatprep.mubr.msk.bf16.mxu1 %vm11044_vm1, %v13876_v32  ;;  %v6665_v20 = vmul.f32 %v10983_v24, %v13246_v9 }
 0xe1f   :  { %10358 = vmatprep.subr.bf16.mxu1 %v13876_v32 }
 0xe20   :  { %v10985_v10 = vpop.eup %10984  ;;  %v6697_v52 = vpack.c.bf16 %v6665_v20, %v6665_v20 }
 0xe21   :  { %10331 = vmatmul.mubr.msk.bf16.vlgmr.msra.gmra.mrb[248].mxu0 %vm273_vm2, %v6694_v29  ;;  %v6664_v25 = vmul.f32 %v10985_v10, %v13260_v38 }
 0xe22   :  { %v6597_v36 = vpop.xlane.xlu0 %6596  ;;  %10341 = vmatpush3.bf16.msra.mxu0 %v7768_v53  ;;  %10342 = vmatprep.mubr.msk.bf16.mxu0 %vm11044_vm1, %v13876_v32 }
 0xe23   :  { %10990 = vrcp.f32 %v6597_v36  ;;  %10352 = vmatprep.subr.bf16.mxu0 %v13876_v32  ;;  %v6696_v55 = vpack.c.bf16 %v6664_v25, %v6664_v25 }
 0xe25   :  { %v10987_v9 = vpop.eup %10986  ;;  %v6594_v51 = vpop.xlane.xlu1 %6593  ;;  %10349 = vmatmul.mubr.msk.bf16.vlgmr.msra.gmra.mrb[4].mxu1 %vm273_vm2, %v6697_v52 }
 0xe26   :  { %10992 = vrcp.f32 %v6594_v51  ;;  %10359 = vmatpush3.bf16.msra.mxu1 %v7912_v47  ;;  %10360 = vmatprep.mubr.msk.bf16.mxu1 %vm11044_vm1, %v13876_v32  ;;  %v6667_v41 = vmul.f32 %v10987_v9, %v13270_v44  ;;  %v13921_v44 = vld [vmem:[#allocation22_spill] sm:$0xff]  ;;  %v8051_v13 = vpop.permute.xlu0 %8050 }
 0xe27   :  { %10370 = vmatprep.subr.bf16.mxu1 %v13876_v32  ;;  %v8008_v28 = vsel %vm2228_vm3, %v13921_v44, 0  ;;  %v8056_v31 = vsel %vm2228_vm3, %v8051_v13, 0 }
 0xe28   :  { %v10989_v38 = vpop.eup %10988  ;;  %v6699_v12 = vpack.c.bf16 %v6667_v41, %v6667_v41 }
 0xe29   :  { %10343 = vmatmul.mubr.msk.bf16.vlgmr.msra.gmra.mrb[252].mxu0 %vm273_vm2, %v6696_v55  ;;  %v6666_v46 = vmul.f32 %v10989_v38, %v13283_v63  ;;  %v7960_v63 = vsel %vm2228_vm3, %v13922_v4, 0  ;;  %v8099_v17 = vpop.permute.xlu1 %8098 }
 0xe2a   :  { %10353 = vmatpush3.bf16.msra.mxu0 %v7864_v8  ;;  %10354 = vmatprep.mubr.msk.bf16.mxu0 %vm11044_vm1, %v13876_v32 }
 0xe2b   :  { %10364 = vmatprep.subr.bf16.mxu0 %v13876_v32  ;;  %v6698_v33 = vpack.c.bf16 %v6666_v46, %v6666_v46 }
 0xe2d   :  { %v10991_v16 = vpop.eup %10990  ;;  %10361 = vmatmul.mubr.msk.bf16.vlgmr.msra.gmra.mrb[8].mxu1 %vm273_vm2, %v6699_v12 }
 0xe2e   :  { %10371 = vmatpush3.bf16.msra.mxu1 %v8008_v28  ;;  %10372 = vmatprep.mubr.msk.bf16.mxu1 %vm11044_vm1, %v13876_v32  ;;  %v6669_v58 = vmul.f32 %v10991_v16, %v13292_v43  ;;  %v8104_v43 = vsel %vm2228_vm3, %v8099_v17, 0 }
 0xe2f   :  { %10382 = vmatprep.subr.bf16.mxu1 %v13876_v32 }
 0xe30   :  { %v10993_v19 = vpop.eup %10992  ;;  %v6701_v62 = vpack.c.bf16 %v6669_v58, %v6669_v58 }
 0xe31   :  { %10355 = vmatmul.mubr.msk.bf16.vlgmr.msra.gmra.mrb[0].mxu0 %vm273_vm2, %v6698_v33  ;;  %v6668_v59 = vmul.f32 %v10993_v19, %v13304_v45 }
 0xe32   :  { %10365 = vmatpush3.bf16.msra.mxu0 %v7960_v63  ;;  %10366 = vmatprep.mubr.msk.bf16.mxu0 %vm11044_vm1, %v13876_v32 }
 0xe33   :  { %10376 = vmatprep.subr.bf16.mxu0 %v13876_v32  ;;  %v6700_v0 = vpack.c.bf16 %v6668_v59, %v6668_v59 }
 0xe35   :  { %10373 = vmatmul.mubr.msk.bf16.vlgmr.msra.gmra.mrb[12].mxu1 %vm273_vm2, %v6701_v62 }
 0xe36   :  { %10383 = vmatpush3.bf16.msra.mxu1 %v8104_v43  ;;  %10384 = vmatprep.mubr.msk.bf16.mxu1 %vm11044_vm1, %v13876_v32 }
 0xe37   :  { %10394 = vmatprep.subr.bf16.mxu1 %v13876_v32 }
 0xe39   :  { %10367 = vmatmul.mubr.msk.bf16.vlgmr.msra.gmra.mrb[4].mxu0 %vm273_vm2, %v6700_v0 }
 0xe3a   :  { %10377 = vmatpush3.bf16.msra.mxu0 %v8056_v31  ;;  %10378 = vmatprep.mubr.msk.bf16.mxu0 %vm11044_vm1, %v13876_v32 }
 0xe3b   :  { %10388 = vmatprep.subr.bf16.mxu0 %v13876_v32 }
 0xe4c   :  { %v13475_v45 = vpop.f32.mrb[216].mxu1 }
 0xe4d   :  { %v10218_v23 = vpop.f32.mrb[217].mxu1 }
 0xe4e   :  { %v6799_v60 = vpop.f32.mrb[218].mxu1 }
 0xe4f   :  { %v10219_v11 = vpop.f32.mrb[219].mxu1  ;;  %v13477_v3 = vpop.f32.mrb[208].mxu0 }
 0xe50   :  { %v10212_v18 = vpop.f32.mrb[209].mxu0 }
 0xe51   :  { %v6751_v56 = vpop.f32.mrb[210].mxu0 }
 0xe52   :  { %v10213_v27 = vpop.f32.mrb[211].mxu0 }
 0xe54   :  { %v13479_v22 = vpop.f32.mrb[220].mxu1 }
 0xe55   :  { %v10230_v15 = vpop.f32.mrb[221].mxu1 }
 0xe56   :  { %v6895_v50 = vpop.f32.mrb[222].mxu1 }
 0xe57   :  { %v6603_v34 = vpop.xlane.xlu0 %6602  ;;  %v10231_v61 = vpop.f32.mrb[223].mxu1 }
 0xe58   :  { %v13481_v6 = vpop.f32.mrb[212].mxu0  ;;  %10994 = vrcp.f32 %v6603_v34 }
 0xe59   :  { %v10224_v2 = vpop.f32.mrb[213].mxu0 }
 0xe5a   :  { %v6847_v40 = vpop.f32.mrb[214].mxu0  ;;  %v6600_v54 = vpop.xlane.xlu1 %6599 }
 0xe5b   :  { %v10225_v48 = vpop.f32.mrb[215].mxu0  ;;  %10996 = vrcp.f32 %v6600_v54  ;;  %v6609_v7 = vpop.xlane.xlu0 %6608 }
 0xe5c   :  { %v13483_v30 = vpop.f32.mrb[224].mxu1  ;;  %10998 = vrcp.f32 %v6609_v7 }
 0xe5d   :  { %v10242_v1 = vpop.f32.mrb[225].mxu1 }
 0xe5e   :  { %v6991_v24 = vpop.f32.mrb[226].mxu1  ;;  %v6606_v21 = vpop.xlane.xlu1 %6605 }
 0xe5f   :  { %v10243_v49 = vpop.f32.mrb[227].mxu1  ;;  %v13485_v37 = vpop.f32.mrb[216].mxu0  ;;  %11000 = vrcp.f32 %v6606_v21 }
 0xe60   :  { %v10236_v20 = vpop.f32.mrb[217].mxu0  ;;  %v8147_v41 = vpop.permute.xlu0 %8146 }
 0xe61   :  { %v6943_v10 = vpop.f32.mrb[218].mxu0 }
 0xe62   :  { %v10995_v29 = vpop.eup %10994  ;;  %v10237_v53 = vpop.f32.mrb[219].mxu0 }
 0xe63   :  { %v6671_v57 = vmul.f32 %v10995_v29, %v13339_v14  ;;  %v8195_v36 = vpop.permute.xlu1 %8194 }
 0xe64   :  { %v13488_v25 = vpop.f32.mrb[228].mxu1  ;;  %v8200_v55 = vsel %vm2228_vm3, %v8195_v36, 0 }
 0xe65   :  { %v6703_v52 = vpack.c.bf16 %v6671_v57, %v6671_v57  ;;  %v10997_v9 = vpop.eup %10996  ;;  %v10254_v35 = vpop.f32.mrb[229].mxu1 }
 0xe66   :  { %v10999_v47 = vpop.eup %10998  ;;  %v6670_v51 = vmul.f32 %v10997_v9, %v13347_v5  ;;  %v7087_v38 = vpop.f32.mrb[230].mxu1  ;;  %v8152_v5 = vsel %vm2228_vm3, %v8147_v41, 0 }
 0xe67   :  { %10385 = vmatmul.mubr.msk.bf16.vlgmr.msra.gmra.mrb[16].mxu1 %vm273_vm2, %v6703_v52  ;;  %v10255_v39 = vpop.f32.mrb[231].mxu1  ;;  %v13493_v8 = vpop.f32.mrb[220].mxu0  ;;  %v6673_v12 = vmul.f32 %v10999_v47, %v13351_v42 }
 0xe68   :  { %10395 = vmatpush3.bf16.msra.mxu1 %v8200_v55  ;;  %10396 = vmatprep.mubr.msk.bf16.mxu1 %vm11044_vm1, %v13876_v32  ;;  %v6702_v14 = vpack.c.bf16 %v6670_v51, %v6670_v51  ;;  %v10248_v46 = vpop.f32.mrb[221].mxu0 }
 0xe69   :  { %v11001_v16 = vpop.eup %11000  ;;  %v7039_v44 = vpop.f32.mrb[222].mxu0  ;;  %v6705_v33 = vpack.c.bf16 %v6673_v12, %v6673_v12 }
 0xe6a   :  { %v10249_v28 = vpop.f32.mrb[223].mxu0  ;;  %10379 = vmatmul.mubr.msk.bf16.vlgmr.msra.gmra.mrb[8].mxu0 %vm273_vm2, %v6702_v14  ;;  %v6672_v58 = vmul.f32 %v11001_v16, %v13359_v26 }
 0xe6b   :  { %10389 = vmatpush3.bf16.msra.mxu0 %v8152_v5  ;;  %10390 = vmatprep.mubr.msk.bf16.mxu0 %vm11044_vm1, %v13876_v32 }
 0xe6c   :  { %v6704_v19 = vpack.c.bf16 %v6672_v58, %v6672_v58 }
 0xe6f   :  { %10397 = vmatmul.mubr.msk.bf16.vlgmr.msra.gmra.mrb[20].mxu1 %vm273_vm2, %v6705_v33 }
 0xe72   :  { %10391 = vmatmul.mubr.msk.bf16.vlgmr.msra.gmra.mrb[12].mxu0 %vm273_vm2, %v6704_v19 }
 0xe8c   :  { %v7132_v42 = vpop.f32.mrb[224].mxu0 }
 0xe8d   :  { %v7180_v4 = vpop.f32.mrb[232].mxu1  ;;  %v10260_v63 = vpop.f32.mrb[225].mxu0 }
 0xe8e   :  { %v10634_v17 = vpack.i.bf16 %v7180_v4, %v7132_v42  ;;  %v10266_v62 = vpop.f32.mrb[233].mxu1  ;;  %v7135_v59 = vpop.f32.mrb[226].mxu0 }
 0xe8f   :  { %v7183_v43 = vpop.f32.mrb[234].mxu1  ;;  %v10261_v13 = vpop.f32.mrb[227].mxu0 }
 0xe90   :  { %10635 = vrot.lane.b32.xlu0 %v10634_v17, %s11049_s18  ;;  %v10267_v0 = vpop.f32.mrb[235].mxu1 }
 0xe94   :  { %v7228_v32 = vpop.f32.mrb[228].mxu0 }
 0xe95   :  { %v7276_v31 = vpop.f32.mrb[236].mxu1  ;;  %v10272_v23 = vpop.f32.mrb[229].mxu0 }
 0xe96   :  { %v10639_v26 = vpack.i.bf16 %v7276_v31, %v7228_v32  ;;  %v10278_v60 = vpop.f32.mrb[237].mxu1  ;;  %v7231_v11 = vpop.f32.mrb[230].mxu0 }
 0xe97   :  { %v7279_v18 = vpop.f32.mrb[238].mxu1  ;;  %v10273_v56 = vpop.f32.mrb[231].mxu0 }
 0xe98   :  { %10640 = vrot.lane.b32.xlu1 %v10639_v26, %s11049_s18  ;;  %v10279_v27 = vpop.f32.mrb[239].mxu1 }
 0xe99   :  { %v10706_v27 = vld [vmem:[%s13839_s3 + $0x10] sm:$0xff]  }
 0xe9a   :  { %10400 = vmatprep.subr.bf16.mxu0 %v10706_v27 }
 0xe9b   :  { %10401 = vmatpush3.bf16.msra.mxu0 %v10706_v27 }
 0xea2   :  { %v7324_v15 = vpop.f32.mrb[232].mxu0 }
 0xea3   :  { %v7372_v50 = vpop.f32.mrb[240].mxu1  ;;  %v10284_v34 = vpop.f32.mrb[233].mxu0 }
 0xea4   :  { %v10644_v61 = vpack.i.bf16 %v7372_v50, %v7324_v15  ;;  %v10290_v2 = vpop.f32.mrb[241].mxu1  ;;  %v7327_v40 = vpop.f32.mrb[234].mxu0 }
 0xea5   :  { %v7375_v48 = vpop.f32.mrb[242].mxu1  ;;  %v10285_v54 = vpop.f32.mrb[235].mxu0 }
 0xea6   :  { %10645 = vrot.lane.b32.xlu0 %v10644_v61, %s11049_s18  ;;  %v10291_v7 = vpop.f32.mrb[243].mxu1  ;;  %v10707_v48 = vld [vmem:[%s13839_s3 + $0x18] sm:$0xff]  }
 0xea7   :  { %10402 = vmatprep.subr.bf16.mxu0 %v10707_v48 }
 0xea8   :  { %10403 = vmatpush3.bf16.msra.mxu0 %v10707_v48 }
 0xeab   :  { %v7420_v1 = vpop.f32.mrb[236].mxu0 }
 0xeac   :  { %v7468_v24 = vpop.f32.mrb[244].mxu1  ;;  %v10296_v21 = vpop.f32.mrb[237].mxu0 }
 0xead   :  { %v10649_v49 = vpack.i.bf16 %v7468_v24, %v7420_v1  ;;  %v10302_v20 = vpop.f32.mrb[245].mxu1  ;;  %v7423_v29 = vpop.f32.mrb[238].mxu0 }
 0xeae   :  { %v7471_v10 = vpop.f32.mrb[246].mxu1  ;;  %v10297_v57 = vpop.f32.mrb[239].mxu0 }
 0xeaf   :  { %10650 = vrot.lane.b32.xlu1 %v10649_v49, %s11049_s18  ;;  %v10303_v53 = vpop.f32.mrb[247].mxu1 }
 0xee0   :  { %v7564_v36 = vpop.f32.mrb[248].mxu1 }
 0xee1   :  { %v10314_v52 = vpop.f32.mrb[249].mxu1 }
 0xee2   :  { %v7567_v9 = vpop.f32.mrb[250].mxu1 }
 0xee3   :  { %v10315_v35 = vpop.f32.mrb[251].mxu1 }
 0xee4   :  { %v7516_v47 = vpop.f32.mrb[240].mxu0 }
 0xee5   :  { %v10654_v51 = vpack.i.bf16 %v7564_v36, %v7516_v47  ;;  %v10308_v41 = vpop.f32.mrb[241].mxu0 }
 0xee6   :  { %v7519_v55 = vpop.f32.mrb[242].mxu0 }
 0xee7   :  { %v10309_v38 = vpop.f32.mrb[243].mxu0  ;;  %10655 = vrot.lane.b32.xlu0 %v10654_v51, %s11050_s19 }
 0xee8   :  { %v7660_v39 = vpop.f32.mrb[252].mxu1 }
 0xee9   :  { %v10326_v14 = vpop.f32.mrb[253].mxu1 }
 0xeea   :  { %v7663_v12 = vpop.f32.mrb[254].mxu1 }
 0xeeb   :  { %v10327_v46 = vpop.f32.mrb[255].mxu1 }
 0xeec   :  { %v7612_v16 = vpop.f32.mrb[244].mxu0 }
 0xeed   :  { %v10659_v44 = vpack.i.bf16 %v7660_v39, %v7612_v16  ;;  %v10320_v5 = vpop.f32.mrb[245].mxu0 }
 0xeee   :  { %v7615_v28 = vpop.f32.mrb[246].mxu0 }
 0xeef   :  { %v10321_v33 = vpop.f32.mrb[247].mxu0  ;;  %10660 = vrot.lane.b32.xlu1 %v10659_v44, %s11050_s19 }
 0xef0   :  { %v7756_v58 = vpop.f32.mrb[0].mxu1 }
 0xef1   :  { %v10338_v19 = vpop.f32.mrb[1].mxu1 }
 0xef2   :  { %v7759_v42 = vpop.f32.mrb[2].mxu1 }
 0xef3   :  { %v10339_v4 = vpop.f32.mrb[3].mxu1 }
 0xef4   :  { %v7708_v63 = vpop.f32.mrb[248].mxu0 }
 0xef5   :  { %v10669_v17 = vpack.i.bf16 %v7756_v58, %v7708_v63  ;;  %v10332_v62 = vpop.f32.mrb[249].mxu0 }
 0xef6   :  { %v7711_v59 = vpop.f32.mrb[250].mxu0 }
 0xef7   :  { %v10333_v43 = vpop.f32.mrb[251].mxu0 }
 0xef8   :  { %v7852_v13 = vpop.f32.mrb[4].mxu1 }
 0xef9   :  { %v10350_v0 = vpop.f32.mrb[5].mxu1 }
 0xefa   :  { %v7855_v32 = vpop.f32.mrb[6].mxu1 }
 0xefb   :  { %v10351_v31 = vpop.f32.mrb[7].mxu1 }
 0xefc   :  { %v7804_v23 = vpop.f32.mrb[252].mxu0 }
 0xefd   :  { %v10679_v26 = vpack.i.bf16 %v7852_v13, %v7804_v23  ;;  %v10344_v60 = vpop.f32.mrb[253].mxu0 }
 0xefe   :  { %v7807_v11 = vpop.f32.mrb[254].mxu0 }
 0xeff   :  { %v10345_v18 = vpop.f32.mrb[255].mxu0 }
 0xf00   :  { %v7948_v56 = vpop.f32.mrb[8].mxu1 }
 0xf01   :  { %v10362_v15 = vpop.f32.mrb[9].mxu1 }
 0xf02   :  { %v7951_v50 = vpop.f32.mrb[10].mxu1  ;;  %v10636_v58 = vpop.permute.xlu0 %10635 }
 0xf03   :  { %v10363_v34 = vpop.f32.mrb[11].mxu1  ;;  %v10638_v63 = vunpack.i.h.bf16 %v10636_v58 }
 0xf04   :  { %v7900_v61 = vpop.f32.mrb[0].mxu0 }
 0xf05   :  { %v10664_v2 = vpack.i.bf16 %v7948_v56, %v7900_v61  ;;  %v10356_v40 = vpop.f32.mrb[1].mxu0  ;;  %v8339_v0 = vsel %vm273_vm2, %v13475_v45, %v10638_v63 }
 0xf06   :  { %v7903_v54 = vpop.f32.mrb[2].mxu0 }
 0xf07   :  { %v10357_v7 = vpop.f32.mrb[3].mxu0  ;;  %10665 = vrot.lane.b32.xlu0 %v10664_v2, %s11051_s24 }
 0xf08   :  { %v8044_v1 = vpop.f32.mrb[12].mxu1 }
 0xf09   :  { %v10374_v24 = vpop.f32.mrb[13].mxu1 }
 0xf0a   :  { %v8047_v21 = vpop.f32.mrb[14].mxu1  ;;  %v10641_v42 = vpop.permute.xlu1 %10640 }
 0xf0b   :  { %10670 = vrot.lane.b32.xlu0 %v10669_v17, %s11050_s19  ;;  %v10375_v49 = vpop.f32.mrb[15].mxu1  ;;  %v10637_v17 = vunpack.i.l.bf16 %v10636_v58  ;;  %v10643_v15 = vunpack.i.h.bf16 %v10641_v42  ;;  %v10642_v50 = vunpack.i.l.bf16 %v10641_v42 }
 0xf0c   :  { %v7996_v20 = vpop.f32.mrb[4].mxu0 }
 0xf0d   :  { %v10674_v29 = vpack.i.bf16 %v8044_v1, %v7996_v20  ;;  %v10368_v10 = vpop.f32.mrb[5].mxu0  ;;  %v8338_v32 = vsel %vm273_vm2, %v13477_v3, %v10637_v17  ;;  %v8341_v3 = vsel %vm273_vm2, %v13479_v22, %v10643_v15  ;;  %v8340_v2 = vsel %vm273_vm2, %v13481_v6, %v10642_v50 }
 0xf0e   :  { %v7999_v57 = vpop.f32.mrb[6].mxu0 }
 0xf0f   :  { %v10369_v53 = vpop.f32.mrb[7].mxu0  ;;  %10675 = vrot.lane.b32.xlu1 %v10674_v29, %s11051_s24 }
 0xf13   :  { %10680 = vrot.lane.b32.xlu1 %v10679_v26, %s11050_s19 }
 0xf18   :  { %v10646_v19 = vpop.permute.xlu0 %10645 }
 0xf19   :  { %v10648_v20 = vunpack.i.h.bf16 %v10646_v19  ;;  %v10647_v29 = vunpack.i.l.bf16 %v10646_v19 }
 0xf1b   :  { %v8343_v6 = vsel %vm273_vm2, %v13483_v30, %v10648_v20  ;;  %v8342_v53 = vsel %vm273_vm2, %v13485_v37, %v10647_v29  ;;  %v13927_v29 = vld [vmem:[#allocation9_spill] sm:$0xff] }
 0xf21   :  { %v10651_v43 = vpop.permute.xlu1 %10650 }
 0xf3a   :  { %v8140_v36 = vpop.f32.mrb[16].mxu1 }
 0xf3b   :  { %v10386_v52 = vpop.f32.mrb[17].mxu1 }
 0xf3c   :  { %v8143_v9 = vpop.f32.mrb[18].mxu1 }
 0xf3d   :  { %v10387_v35 = vpop.f32.mrb[19].mxu1  ;;  %v8092_v47 = vpop.f32.mrb[8].mxu0 }
 0xf3e   :  { %v10684_v51 = vpack.i.bf16 %v8140_v36, %v8092_v47  ;;  %v10380_v41 = vpop.f32.mrb[9].mxu0 }
 0xf3f   :  { %v8095_v55 = vpop.f32.mrb[10].mxu0 }
 0xf40   :  { %v10381_v38 = vpop.f32.mrb[11].mxu0  ;;  %10685 = vrot.lane.b32.xlu0 %v10684_v51, %s11051_s24 }
 0xf41   :  { %v10653_v38 = vunpack.i.h.bf16 %v10651_v43 }
 0xf42   :  { %v8236_v39 = vpop.f32.mrb[20].mxu1 }
 0xf43   :  { %v10398_v14 = vpop.f32.mrb[21].mxu1  ;;  %v8345_v37 = vsel %vm273_vm2, %v13488_v25, %v10653_v38  ;;  %v9215_v25 = vld [vmem:[%s13840_s4 + $0x1] ss:$0 sm:$0xff] }
 0xf44   :  { %v8239_v12 = vpop.f32.mrb[22].mxu1 }
 0xf45   :  { %v10399_v46 = vpop.f32.mrb[23].mxu1  ;;  %v8188_v16 = vpop.f32.mrb[12].mxu0 }
 0xf46   :  { %v10689_v44 = vpack.i.bf16 %v8236_v39, %v8188_v16  ;;  %v10392_v5 = vpop.f32.mrb[13].mxu0  ;;  %v10652_v39 = vunpack.i.l.bf16 %v10651_v43 }
 0xf47   :  { %v8191_v28 = vpop.f32.mrb[14].mxu0 }
 0xf48   :  { %10690 = vrot.lane.b32.xlu1 %v10689_v44, %s11051_s24  ;;  %v10393_v33 = vpop.f32.mrb[15].mxu0  ;;  %v8344_v46 = vsel %vm273_vm2, %v13493_v8, %v10652_v39 }
 0xf59   :  { %v10656_v4 = vpop.permute.xlu0 %10655 }
 0xf5a   :  { %v10658_v62 = vunpack.i.h.bf16 %v10656_v4  ;;  %v10657_v59 = vunpack.i.l.bf16 %v10656_v4 }
 0xf5c   :  { %v8346_v26 = vsel %vm3864_vm4, %v8338_v32, %v10657_v59  ;;  %v8347_v60 = vsel %vm3864_vm4, %v8339_v0, %v10658_v62  ;;  %v13923_v62 = vld [vmem:[#allocation4_spill] sm:$0xff]  ;;  %v13924_v0 = vld [vmem:[#allocation2_spill] sm:$0xff] }
 0xf61   :  { %v10661_v11 = vpop.permute.xlu1 %10660 }
 0xf62   :  { %v10663_v34 = vunpack.i.h.bf16 %v10661_v11  ;;  %v10662_v61 = vunpack.i.l.bf16 %v10661_v11 }
 0xf64   :  { %v8349_v54 = vsel %vm3864_vm4, %v8341_v3, %v10663_v34  ;;  %v8348_v7 = vsel %vm3864_vm4, %v8340_v2, %v10662_v61 }
 0xf79   :  { %v10666_v13 = vpop.permute.xlu0 %10665 }
 0xf7a   :  { %v10668_v31 = vunpack.i.h.bf16 %v10666_v13  ;;  %v10667_v23 = vunpack.i.l.bf16 %v10666_v13 }
 0xf7c   :  { %v8354_v18 = vsel %vm3873_vm5, %v8346_v26, %v10667_v23  ;;  %v8355_v56 = vsel %vm3873_vm5, %v8347_v60, %v10668_v31  ;;  %v13925_v60 = vld [vmem:[#allocation3_spill] sm:$0xff] }
 0xf7d   :  { %v8362_v27 = vpack.c.bf16 %v8355_v56, %v8354_v18  ;;  %v10671_v49 = vpop.permute.xlu0 %10670  ;;  %v13926_v56 = vld [vmem:[#allocation5_spill] sm:$0xff] }
 0xf7e   :  { %v10673_v22 = vunpack.i.h.bf16 %v10671_v49  ;;  %v10672_v10 = vunpack.i.l.bf16 %v10671_v49 }
 0xf7f   :  { %10404 = vmatprep.mubr.msk.bf16.mxu0 %vm80_vm0, %v8362_v27 }
 0xf80   :  { %v8350_v9 = vsel %vm3864_vm4, %v8342_v53, %v10672_v10  ;;  %v8351_v35 = vsel %vm3864_vm4, %v8343_v6, %v10673_v22  ;;  %v13928_v53 = vld [vmem:[#allocation7_spill] sm:$0xff] }
 0xf81   :  { %v10676_v45 = vpop.permute.xlu1 %10675 }
 0xf82   :  { %v10678_v40 = vunpack.i.h.bf16 %v10676_v45  ;;  %v10677_v48 = vunpack.i.l.bf16 %v10676_v45 }
 0xf84   :  { %v8357_v1 = vsel %vm3873_vm5, %v8349_v54, %v10678_v40  ;;  %v8356_v24 = vsel %vm3873_vm5, %v8348_v7, %v10677_v48  ;;  %v10708_v54 = vld [vmem:[%s13841_s7 + $0x10] sm:$0xff]   ;;  %v10709_v7 = vld [vmem:[%s13841_s7 + $0x18] sm:$0xff]  }
 0xf85   :  { %v8363_v21 = vpack.c.bf16 %v8357_v1, %v8356_v24  ;;  %v10681_v47 = vpop.permute.xlu1 %10680  ;;  %10412 = vmatprep.subr.bf16.mxu1 %v10708_v54 }
 0xf86   :  { %v10683_v14 = vunpack.i.h.bf16 %v10681_v47  ;;  %v10682_v12 = vunpack.i.l.bf16 %v10681_v47  ;;  %10413 = vmatpush3.bf16.msra.mxu1 %v10708_v54  ;;  %v13930_v47 = vld [vmem:[#allocation6_spill] sm:$0xff] }
 0xf87   :  { %10405 = vmatmul.mubr.msk.bf16.vlgmr.msra.gmra.mrb[16].mxu0 %vm80_vm0, %v8363_v21  ;;  %10414 = vmatprep.subr.bf16.mxu1 %v10709_v7 }
 0xf88   :  { %v8353_v5 = vsel %vm3864_vm4, %v8345_v37, %v10683_v14  ;;  %v8352_v28 = vsel %vm3864_vm4, %v8344_v46, %v10682_v12 }
 0xf8a   :  { %10415 = vmatpush3.bf16.msra.mxu1 %v10709_v7 }
 0xfb2   :  { %v10686_v57 = vpop.permute.xlu0 %10685 }
 0xfb3   :  { %v10688_v36 = vunpack.i.h.bf16 %v10686_v57  ;;  %v10687_v52 = vunpack.i.l.bf16 %v10686_v57 }
 0xfb5   :  { %v8358_v51 = vsel %vm3873_vm5, %v8350_v9, %v10687_v52  ;;  %v8359_v41 = vsel %vm3873_vm5, %v8351_v35, %v10688_v36  ;;  %v13929_v52 = vld [vmem:[#allocation8_spill] sm:$0xff] }
 0xfb6   :  { %v8364_v55 = vpack.c.bf16 %v8359_v41, %v8358_v51 }
 0xfb8   :  { %10408 = vmatprep.mubr.msk.bf16.mxu0 %vm80_vm0, %v8364_v55 }
 0xfba   :  { %v10691_v30 = vpop.permute.xlu1 %10690 }
 0xfbb   :  { %v10693_v16 = vunpack.i.h.bf16 %v10691_v30  ;;  %v10692_v44 = vunpack.i.l.bf16 %v10691_v30 }
 0xfbd   :  { %v8361_v33 = vsel %vm3873_vm5, %v8353_v5, %v10693_v16  ;;  %v8360_v58 = vsel %vm3873_vm5, %v8352_v28, %v10692_v44  ;;  %v10710_v5 = vld [vmem:[%s13842_s9 + $0x20] sm:$0xff]   ;;  %v10711_v28 = vld [vmem:[%s13842_s9 + $0x28] sm:$0xff]  }
 0xfbe   :  { %v8365_v19 = vpack.c.bf16 %v8361_v33, %v8360_v58  ;;  %10424 = vmatprep.subr.bf16.mxu0 %v10710_v5 }
 0xfbf   :  { %10425 = vmatpush3.bf16.msra.mxu0 %v10710_v5 }
 0xfc0   :  { %10409 = vmatmul.mubr.msk.bf16.gmra.mrb[20].mxu0 %vm80_vm0, %v8365_v19  ;;  %10426 = vmatprep.subr.bf16.mxu0 %v10711_v28 }
 0xfc3   :  { %10427 = vmatpush3.bf16.msra.mxu0 %v10711_v28 }
0x105a   :  { %v10406_v42 = vpop.f32.mrb[16].mxu0 }
0x105b   :  { %v8446_v4 = vadd.f32 %v10406_v42, %v9215_v25  ;;  %v8437_v8 = vpop.f32.mrb[17].mxu0 }
0x105c   :  { %v8438_v63 = vadd.f32 %v9215_v25, %v8437_v8  ;;  %v10407_v17 = vpop.f32.mrb[18].mxu0 }
0x105d   :  { %v13563_v59 = vadd.f32 %v8446_v4, %v13923_v62  ;;  %v8440_v43 = vpop.f32.mrb[19].mxu0  ;;  %v8449_v31 = vadd.f32 %v10407_v17, %v9215_v25 }
0x105e   :  { %v8441_v13 = vadd.f32 %v9215_v25, %v8440_v43  ;;  %v13566_v32 = vadd.f32 %v8438_v63, %v13924_v0 }
0x105f   :  { %v8486_v23 = vsel %vm80_vm0, %v13563_v59, 0.0  ;;  %v8514_v26 = vmul.f32 %v13563_v59, %v13563_v59  ;;  %v13577_v27 = vadd.f32 %v8449_v31, %v13926_v56 }
0x1060   :  { %8487 = vadd.xlane.f32.xlu0 %v8486_v23  ;;  %v13573_v11 = vadd.f32 %v8441_v13, %v13925_v60  ;;  %v8480_v15 = vsel %vm80_vm0, %v13566_v32, 0.0  ;;  %v8512_v34 = vmul.f32 %v13566_v32, %v13566_v32 }
0x1061   :  { %v8526_v18 = vsel %vm80_vm0, %v8514_v26, 0.0  ;;  %v8489_v61 = vsel %vm80_vm0, %v13577_v27, 0.0  ;;  %v8515_v45 = vmul.f32 %v13577_v27, %v13577_v27 }
0x1062   :  { %8527 = vadd.xlane.f32.xlu1 %v8526_v18  ;;  %v8483_v50 = vsel %vm80_vm0, %v13573_v11, 0.0  ;;  %v8520_v3 = vsel %vm80_vm0, %v8512_v34, 0.0  ;;  %v8513_v40 = vmul.f32 %v13573_v11, %v13573_v11 }
0x1063   :  { %v8529_v2 = vsel %vm80_vm0, %v8515_v45, 0.0 }
0x1064   :  { %8481 = vadd.xlane.f32.xlu0 %v8480_v15  ;;  %v8523_v48 = vsel %vm80_vm0, %v8513_v40, 0.0 }
0x1066   :  { %8484 = vadd.xlane.f32.xlu1 %v8483_v50 }
0x1068   :  { %8490 = vadd.xlane.f32.xlu0 %v8489_v61 }
0x106a   :  { %8521 = vadd.xlane.f32.xlu1 %v8520_v3 }
0x106c   :  { %8530 = vadd.xlane.f32.xlu0 %v8529_v2 }
0x1070   :  { %8524 = vadd.xlane.f32.xlu0 %v8523_v48 }
0x1093   :  { %v10410_v1 = vpop.f32.mrb[20].mxu0 }
0x1094   :  { %v8462_v24 = vadd.f32 %v10410_v1, %v9215_v25  ;;  %v8453_v21 = vpop.f32.mrb[21].mxu0 }
0x1095   :  { %v8454_v49 = vadd.f32 %v9215_v25, %v8453_v21  ;;  %v10411_v20 = vpop.f32.mrb[22].mxu0 }
0x1096   :  { %v13601_v22 = vadd.f32 %v8462_v24, %v13927_v29  ;;  %v8465_v10 = vadd.f32 %v10411_v20, %v9215_v25  ;;  %v8456_v57 = vpop.f32.mrb[23].mxu0 }
0x1097   :  { %v8457_v6 = vadd.f32 %v9215_v25, %v8456_v57  ;;  %v13604_v36 = vadd.f32 %v8454_v49, %v13928_v53  ;;  %v13644_v57 = vld [vmem:[%s13843_s5 + $0x1] ss:$0 sm:$0xff] }
0x1098   :  { %v13607_v9 = vadd.f32 %v8465_v10, %v13929_v52  ;;  %v8498_v35 = vsel %vm80_vm0, %v13601_v22, 0.0  ;;  %v8518_v30 = vmul.f32 %v13601_v22, %v13601_v22 }
0x1099   :  { %8499 = vadd.xlane.f32.xlu1 %v8498_v35  ;;  %v13612_v51 = vadd.f32 %v8457_v6, %v13930_v47  ;;  %v8492_v55 = vsel %vm80_vm0, %v13604_v36, 0.0  ;;  %v8516_v38 = vmul.f32 %v13604_v36, %v13604_v36 }
0x109a   :  { %v8501_v41 = vsel %vm80_vm0, %v13607_v9, 0.0  ;;  %v8519_v46 = vmul.f32 %v13607_v9, %v13607_v9  ;;  %v8538_v16 = vsel %vm80_vm0, %v8518_v30, 0.0 }
0x109b   :  { %8502 = vadd.xlane.f32.xlu0 %v8501_v41  ;;  %v8495_v39 = vsel %vm80_vm0, %v13612_v51, 0.0  ;;  %v8517_v14 = vmul.f32 %v13612_v51, %v13612_v51  ;;  %v8532_v12 = vsel %vm80_vm0, %v8516_v38, 0.0 }
0x109c   :  { %v8541_v44 = vsel %vm80_vm0, %v8519_v46, 0.0 }
0x109d   :  { %8493 = vadd.xlane.f32.xlu1 %v8492_v55  ;;  %v8535_v37 = vsel %vm80_vm0, %v8517_v14, 0.0 }
0x109f   :  { %8496 = vadd.xlane.f32.xlu0 %v8495_v39 }
0x10a1   :  { %8533 = vadd.xlane.f32.xlu1 %v8532_v12 }
0x10a3   :  { %8536 = vadd.xlane.f32.xlu0 %v8535_v37 }
0x10a5   :  { %8539 = vadd.xlane.f32.xlu1 %v8538_v16 }
0x10a7   :  { %8542 = vadd.xlane.f32.xlu0 %v8541_v44 }
0x10ed   :  { %v8488_v33 = vpop.xlane.xlu0 %8487 }
0x10ee   :  { %v8506_v58 = vmul.f32 0.03125, %v8488_v33 }
0x10ef   :  { %v8528_v19 = vpop.xlane.xlu1 %8527 }
0x10f0   :  { %v8554_v42 = vmul.f32 %v8506_v58, %v8506_v58  ;;  %v8546_v4 = vmul.f32 0.03125, %v8528_v19  ;;  %v8570_v49 = vsub.f32 %v13563_v59, %v8506_v58  ;;  %v9225_v59 = vld [vmem:[%s13844_s6 + $0x1] ss:$0 sm:$0xff] }
0x10f1   :  { %v8482_v25 = vpop.xlane.xlu0 %8481 }
0x10f2   :  { %v8504_v63 = vmul.f32 0.03125, %v8482_v25  ;;  %v8562_v43 = vsub.f32 %v8546_v4, %v8554_v42 }
0x10f3   :  { %v8485_v8 = vpop.xlane.xlu1 %8484 }
0x10f4   :  { %v8552_v0 = vmul.f32 %v8504_v63, %v8504_v63  ;;  %v8505_v26 = vmul.f32 0.03125, %v8485_v8  ;;  %v8578_v15 = vadd.f32 1e-05, %v8562_v43  ;;  %v8568_v1 = vsub.f32 %v13566_v32, %v8504_v63 }
0x10f5   :  { %v8491_v17 = vpop.xlane.xlu0 %8490 }
0x10f6   :  { %v8507_v62 = vmul.f32 0.03125, %v8491_v17  ;;  %v8553_v45 = vmul.f32 %v8505_v26, %v8505_v26  ;;  %v8569_v6 = vsub.f32 %v13573_v11, %v8505_v26 }
0x10f7   :  { %v8522_v13 = vpop.xlane.xlu1 %8521 }
0x10f8   :  { %v8544_v31 = vmul.f32 0.03125, %v8522_v13  ;;  %v8555_v60 = vmul.f32 %v8507_v62, %v8507_v62  ;;  %v8571_v24 = vsub.f32 %v13577_v27, %v8507_v62 }
0x10f9   :  { %v8531_v23 = vpop.xlane.xlu0 %8530 }
0x10fa   :  { %v8560_v18 = vsub.f32 %v8544_v31, %v8552_v0  ;;  %v8547_v56 = vmul.f32 0.03125, %v8531_v23 }
0x10fc   :  { %v8576_v50 = vadd.f32 1e-05, %v8560_v18  ;;  %v8563_v34 = vsub.f32 %v8547_v56, %v8555_v60 }
0x10fd   :  { %v8525_v61 = vpop.xlane.xlu0 %8524 }
0x10fe   :  { %11002 = vrsqrt.f32 %v8576_v50  ;;  %v8579_v3 = vadd.f32 1e-05, %v8563_v34  ;;  %v8545_v2 = vmul.f32 0.03125, %v8525_v61 }
0x10ff   :  { %11004 = vrsqrt.f32 %v8578_v15 }
0x1100   :  { %11006 = vrsqrt.f32 %v8579_v3  ;;  %v8561_v40 = vsub.f32 %v8545_v2, %v8553_v45 }
0x1102   :  { %v8577_v48 = vadd.f32 1e-05, %v8561_v40 }
0x1104   :  { %11008 = vrsqrt.f32 %v8577_v48 }
0x1108   :  { %v11003_v54 = vpop.eup %11002 }
0x1109   :  { %v11005_v7 = vpop.eup %11004  ;;  %v8592_v29 = vmul.f32 %v11003_v54, %v8568_v1 }
0x110a   :  { %v11007_v21 = vpop.eup %11006  ;;  %v8594_v10 = vmul.f32 %v11005_v7, %v8570_v49 }
0x110b   :  { %v8595_v20 = vmul.f32 %v11007_v21, %v8571_v24  ;;  %v8606_v32 = vmul.f32 %v13644_v57, %v8592_v29 }
0x110c   :  { %v8608_v27 = vmul.f32 %v13644_v57, %v8594_v10 }
0x110d   :  { %v8609_v52 = vmul.f32 %v13644_v57, %v8595_v20  ;;  %v13656_v55 = vadd.f32 %v9225_v59, %v8606_v32 }
0x110e   :  { %v11009_v53 = vpop.eup %11008  ;;  %v13660_v11 = vadd.f32 %v9225_v59, %v8608_v27 }
0x110f   :  { %v8593_v35 = vmul.f32 %v11009_v53, %v8569_v6  ;;  %v13654_v41 = vadd.f32 %v9225_v59, %v8609_v52  ;;  %v10712_v53 = vld [vmem:[%s13842_s9 + $0x30] sm:$0xff]   ;;  %v9231_v52 = vld [vmem:[%s13845_s8 + $0x1] ss:$0 sm:$0xff] }
0x1110   :  { %10428 = vmatprep.subr.bf16.mxu0 %v10712_v53 }
0x1111   :  { %v8607_v47 = vmul.f32 %v13644_v57, %v8593_v35  ;;  %v8629_v14 = vpack.c.bf16 %v13654_v41, %v13660_v11  ;;  %10429 = vmatpush3.bf16.msra.mxu0 %v10712_v53 }
0x1113   :  { %v13658_v38 = vadd.f32 %v9225_v59, %v8607_v47 }
0x1115   :  { %v8628_v39 = vpack.c.bf16 %v13658_v38, %v13656_v55 }
0x1117   :  { %10416 = vmatprep.mubr.msk.bf16.mxu1 %vm80_vm0, %v8628_v39 }
0x1118   :  { %10417 = vmatmul.mubr.msk.bf16.vlgmr.msra.gmra.mrb[24].mxu1 %vm80_vm0, %v8629_v14 }
0x1126   :  { %v8500_v12 = vpop.xlane.xlu1 %8499 }
0x1127   :  { %v8510_v28 = vmul.f32 0.03125, %v8500_v12 }
0x1128   :  { %v8503_v30 = vpop.xlane.xlu0 %8502 }
0x1129   :  { %v8511_v19 = vmul.f32 0.03125, %v8503_v30  ;;  %v8558_v17 = vmul.f32 %v8510_v28, %v8510_v28  ;;  %v8574_v2 = vsub.f32 %v13601_v22, %v8510_v28 }
0x112a   :  { %v8494_v37 = vpop.xlane.xlu1 %8493 }
0x112b   :  { %v8508_v46 = vmul.f32 0.03125, %v8494_v37  ;;  %v8559_v0 = vmul.f32 %v8511_v19, %v8511_v19  ;;  %v8575_v7 = vsub.f32 %v13607_v9, %v8511_v19 }
0x112c   :  { %v8497_v16 = vpop.xlane.xlu0 %8496 }
0x112d   :  { %v8509_v44 = vmul.f32 0.03125, %v8497_v16  ;;  %v8556_v33 = vmul.f32 %v8508_v46, %v8508_v46  ;;  %v8572_v50 = vsub.f32 %v13604_v36, %v8508_v46 }
0x112e   :  { %v8534_v5 = vpop.xlane.xlu1 %8533 }
0x112f   :  { %v8548_v58 = vmul.f32 0.03125, %v8534_v5  ;;  %v8557_v42 = vmul.f32 %v8509_v44, %v8509_v44  ;;  %v8573_v61 = vsub.f32 %v13612_v51, %v8509_v44 }
0x1130   :  { %v8537_v25 = vpop.xlane.xlu0 %8536 }
0x1131   :  { %v8564_v4 = vsub.f32 %v8548_v58, %v8556_v33  ;;  %v8549_v8 = vmul.f32 0.03125, %v8537_v25 }
0x1132   :  { %v8540_v63 = vpop.xlane.xlu1 %8539 }
0x1133   :  { %v8580_v62 = vadd.f32 1e-05, %v8564_v4  ;;  %v8565_v43 = vsub.f32 %v8549_v8, %v8557_v42  ;;  %v8550_v13 = vmul.f32 0.03125, %v8540_v63 }
0x1134   :  { %v8543_v31 = vpop.xlane.xlu0 %8542 }
0x1135   :  { %11010 = vrsqrt.f32 %v8580_v62  ;;  %v8581_v23 = vadd.f32 1e-05, %v8565_v43  ;;  %v8566_v26 = vsub.f32 %v8550_v13, %v8558_v17  ;;  %v8551_v60 = vmul.f32 0.03125, %v8543_v31  ;;  %v9247_v31 = vld [vmem:[%s13846_s10 + $0x1] ss:$0 sm:$0xff] }
0x1137   :  { %11012 = vrsqrt.f32 %v8581_v23  ;;  %v8582_v18 = vadd.f32 1e-05, %v8566_v26  ;;  %v8567_v56 = vsub.f32 %v8551_v60, %v8559_v0 }
0x1139   :  { %11014 = vrsqrt.f32 %v8582_v18  ;;  %v8583_v15 = vadd.f32 1e-05, %v8567_v56 }
0x113b   :  { %11016 = vrsqrt.f32 %v8583_v15 }
0x113f   :  { %v11011_v34 = vpop.eup %11010 }
0x1140   :  { %v8596_v45 = vmul.f32 %v11011_v34, %v8572_v50 }
0x1141   :  { %v11013_v3 = vpop.eup %11012 }
0x1142   :  { %v8597_v40 = vmul.f32 %v11013_v3, %v8573_v61  ;;  %v8610_v48 = vmul.f32 %v13644_v57, %v8596_v45 }
0x1143   :  { %v11015_v54 = vpop.eup %11014 }
0x1144   :  { %v8598_v1 = vmul.f32 %v11015_v54, %v8574_v2  ;;  %v8611_v24 = vmul.f32 %v13644_v57, %v8597_v40  ;;  %v13675_v20 = vadd.f32 %v9225_v59, %v8610_v48 }
0x1145   :  { %v11017_v21 = vpop.eup %11016 }
0x1146   :  { %v8612_v49 = vmul.f32 %v13644_v57, %v8598_v1  ;;  %v8599_v36 = vmul.f32 %v11017_v21, %v8575_v7  ;;  %v13677_v51 = vadd.f32 %v9225_v59, %v8611_v24 }
0x1148   :  { %v8613_v29 = vmul.f32 %v13644_v57, %v8599_v36  ;;  %v8630_v22 = vpack.c.bf16 %v13677_v51, %v13675_v20  ;;  %v13682_v10 = vadd.f32 %v9225_v59, %v8612_v49  ;;  %v10713_v57 = vld [vmem:[%s13842_s9 + $0x38] sm:$0xff]  }
0x1149   :  { %10430 = vmatprep.subr.bf16.mxu0 %v10713_v57 }
0x114a   :  { %v13684_v6 = vadd.f32 %v9225_v59, %v8613_v29  ;;  %10420 = vmatprep.mubr.msk.bf16.mxu1 %vm80_vm0, %v8630_v22  ;;  %10431 = vmatpush3.bf16.msra.mxu0 %v10713_v57 }
0x114c   :  { %v8631_v9 = vpack.c.bf16 %v13684_v6, %v13682_v10 }
0x114e   :  { %10421 = vmatmul.mubr.msk.bf16.gmra.mrb[28].mxu1 %vm80_vm0, %v8631_v9 }
0x11eb   :  { %v10418_v35 = vpop.f32.mrb[24].mxu1 }
0x11ec   :  { %v8712_v32 = vadd.f32 %v10418_v35, %v9231_v52  ;;  %v8703_v27 = vpop.f32.mrb[25].mxu1 }
0x11ed   :  { %v8704_v59 = vadd.f32 %v9231_v52, %v8703_v27  ;;  %v10419_v47 = vpop.f32.mrb[26].mxu1 }
0x11ee   :  { %v8715_v39 = vadd.f32 %v10419_v47, %v9231_v52  ;;  %v8706_v14 = vpop.f32.mrb[27].mxu1  ;;  %v8736_v30 = vmax.f32 %v8712_v32, 0.0 }
0x11ef   :  { %v8707_v12 = vadd.f32 %v9231_v52, %v8706_v14  ;;  %v8734_v46 = vmax.f32 %v8704_v59, 0.0 }
0x11f0   :  { %v8737_v37 = vmax.f32 %v8715_v39, 0.0 }
0x11f1   :  { %v8735_v16 = vmax.f32 %v8707_v12, 0.0 }
0x11f2   :  { %v8743_v44 = vpack.c.bf16 %v8737_v37, %v8736_v30 }
0x11f3   :  { %v8742_v5 = vpack.c.bf16 %v8735_v16, %v8734_v46 }
0x11f5   :  { %10432 = vmatprep.mubr.msk.bf16.mxu0 %vm4300_vm6, %v8742_v5 }
0x11f6   :  { %10433 = vmatmul.mubr.msk.bf16.vlgmr.msra.gmra.mrb[24].mxu0 %vm4300_vm6, %v8743_v44 }
0x1221   :  { %v10422_v28 = vpop.f32.mrb[28].mxu1 }
0x1222   :  { %v8728_v33 = vadd.f32 %v10422_v28, %v9231_v52  ;;  %v8719_v58 = vpop.f32.mrb[29].mxu1 }
0x1223   :  { %v8720_v19 = vadd.f32 %v9231_v52, %v8719_v58  ;;  %v10423_v25 = vpop.f32.mrb[30].mxu1 }
0x1224   :  { %v8731_v42 = vadd.f32 %v10423_v25, %v9231_v52  ;;  %v8722_v4 = vpop.f32.mrb[31].mxu1  ;;  %v8740_v63 = vmax.f32 %v8728_v33, 0.0 }
0x1225   :  { %v8723_v8 = vadd.f32 %v9231_v52, %v8722_v4  ;;  %v8738_v62 = vmax.f32 %v8720_v19, 0.0 }
0x1226   :  { %v8741_v17 = vmax.f32 %v8731_v42, 0.0 }
0x1227   :  { %v8739_v43 = vmax.f32 %v8723_v8, 0.0 }
0x1228   :  { %v8745_v13 = vpack.c.bf16 %v8741_v17, %v8740_v63 }
0x1229   :  { %v8744_v0 = vpack.c.bf16 %v8739_v43, %v8738_v62 }
0x122b   :  { %10436 = vmatprep.mubr.msk.bf16.mxu0 %vm4300_vm6, %v8744_v0 }
0x122c   :  { %10437 = vmatmul.mubr.msk.bf16.gmra.mrb[28].mxu0 %vm4300_vm6, %v8745_v13 }
0x12c9   :  { %v10434_v23 = vpop.f32.mrb[24].mxu0 }
0x12ca   :  { %v8842_v26 = vadd.f32 %v10434_v23, %v9247_v31  ;;  %v8833_v60 = vpop.f32.mrb[25].mxu0 }
0x12cb   :  { %v8834_v18 = vadd.f32 %v9247_v31, %v8833_v60  ;;  %v10435_v56 = vpop.f32.mrb[26].mxu0 }
0x12cc   :  { %v13707_v15 = vadd.f32 %v8842_v26, %v13660_v11  ;;  %v8845_v50 = vadd.f32 %v10435_v56, %v9247_v31  ;;  %v8836_v34 = vpop.f32.mrb[27].mxu0 }
0x12cd   :  { %v8837_v61 = vadd.f32 %v9247_v31, %v8836_v34  ;;  %v13710_v45 = vadd.f32 %v8834_v18, %v13656_v55 }
0x12ce   :  { %v13713_v3 = vadd.f32 %v8845_v50, %v13654_v41  ;;  %v8882_v2 = vsel %vm80_vm0, %v13707_v15, 0.0  ;;  %v8910_v55 = vmul.f32 %v13707_v15, %v13707_v15 }
0x12cf   :  { %8883 = vadd.xlane.f32.xlu1 %v8882_v2  ;;  %v13718_v40 = vadd.f32 %v8837_v61, %v13658_v38  ;;  %v8876_v48 = vsel %vm80_vm0, %v13710_v45, 0.0  ;;  %v8908_v7 = vmul.f32 %v13710_v45, %v13710_v45 }
0x12d0   :  { %v8885_v11 = vsel %vm80_vm0, %v13713_v3, 0.0  ;;  %v8911_v54 = vmul.f32 %v13713_v3, %v13713_v3  ;;  %v8922_v38 = vsel %vm80_vm0, %v8910_v55, 0.0 }
0x12d1   :  { %8886 = vadd.xlane.f32.xlu0 %v8885_v11  ;;  %v8879_v41 = vsel %vm80_vm0, %v13718_v40, 0.0  ;;  %v8909_v24 = vmul.f32 %v13718_v40, %v13718_v40  ;;  %v8916_v21 = vsel %vm80_vm0, %v8908_v7, 0.0 }
0x12d2   :  { %v8925_v1 = vsel %vm80_vm0, %v8911_v54, 0.0 }
0x12d3   :  { %8877 = vadd.xlane.f32.xlu1 %v8876_v48  ;;  %v8919_v49 = vsel %vm80_vm0, %v8909_v24, 0.0 }
0x12d5   :  { %8880 = vadd.xlane.f32.xlu0 %v8879_v41 }
0x12d7   :  { %8923 = vadd.xlane.f32.xlu1 %v8922_v38  ;;  %v13774_v38 = vld [vmem:[%s13847_s11 + $0x1] ss:$0 sm:$0xff] }
0x12d9   :  { %8926 = vadd.xlane.f32.xlu0 %v8925_v1 }
0x12db   :  { %8917 = vadd.xlane.f32.xlu1 %v8916_v21  ;;  %v13780_v21 = vld [vmem:[%s13848_s12 + $0x1] ss:$0 sm:$0xff] }
0x12dd   :  { %8920 = vadd.xlane.f32.xlu0 %v8919_v49 }
0x12ff   :  { %v10438_v36 = vpop.f32.mrb[28].mxu0 }
0x1300   :  { %v8858_v29 = vadd.f32 %v10438_v36, %v9247_v31  ;;  %v8849_v22 = vpop.f32.mrb[29].mxu0 }
0x1301   :  { %v8850_v9 = vadd.f32 %v9247_v31, %v8849_v22  ;;  %v10439_v53 = vpop.f32.mrb[30].mxu0 }
0x1302   :  { %v13739_v57 = vadd.f32 %v8858_v29, %v13682_v10  ;;  %v8861_v52 = vadd.f32 %v10439_v53, %v9247_v31  ;;  %v8852_v35 = vpop.f32.mrb[31].mxu0 }
0x1303   :  { %v8853_v32 = vadd.f32 %v9247_v31, %v8852_v35  ;;  %v13742_v27 = vadd.f32 %v8850_v9, %v13675_v20 }
0x1304   :  { %v13745_v59 = vadd.f32 %v8861_v52, %v13684_v6  ;;  %v8894_v47 = vsel %vm80_vm0, %v13739_v57, 0.0  ;;  %v8914_v30 = vmul.f32 %v13739_v57, %v13739_v57 }
0x1305   :  { %8895 = vadd.xlane.f32.xlu1 %v8894_v47  ;;  %v13750_v39 = vadd.f32 %v8853_v32, %v13677_v51  ;;  %v8888_v14 = vsel %vm80_vm0, %v13742_v27, 0.0  ;;  %v8912_v20 = vmul.f32 %v13742_v27, %v13742_v27 }
0x1306   :  { %v8897_v10 = vsel %vm80_vm0, %v13745_v59, 0.0  ;;  %v8915_v46 = vmul.f32 %v13745_v59, %v13745_v59  ;;  %v8934_v16 = vsel %vm80_vm0, %v8914_v30, 0.0 }
0x1307   :  { %8898 = vadd.xlane.f32.xlu0 %v8897_v10  ;;  %v8891_v6 = vsel %vm80_vm0, %v13750_v39, 0.0  ;;  %v8913_v12 = vmul.f32 %v13750_v39, %v13750_v39  ;;  %v8928_v51 = vsel %vm80_vm0, %v8912_v20, 0.0 }
0x1308   :  { %v8937_v44 = vsel %vm80_vm0, %v8915_v46, 0.0 }
0x1309   :  { %8889 = vadd.xlane.f32.xlu1 %v8888_v14  ;;  %v8931_v37 = vsel %vm80_vm0, %v8913_v12, 0.0 }
0x130b   :  { %8892 = vadd.xlane.f32.xlu0 %v8891_v6 }
0x130d   :  { %8929 = vadd.xlane.f32.xlu1 %v8928_v51 }
0x130f   :  { %8932 = vadd.xlane.f32.xlu0 %v8931_v37 }
0x1311   :  { %8935 = vadd.xlane.f32.xlu1 %v8934_v16 }
0x1313   :  { %8938 = vadd.xlane.f32.xlu0 %v8937_v44 }
0x135c   :  { %v8884_v5 = vpop.xlane.xlu1 %8883 }
0x135d   :  { %v8902_v58 = vmul.f32 0.03125, %v8884_v5 }
0x135e   :  { %v8887_v28 = vpop.xlane.xlu0 %8886 }
0x135f   :  { %v8903_v25 = vmul.f32 0.03125, %v8887_v28  ;;  %v8950_v4 = vmul.f32 %v8902_v58, %v8902_v58  ;;  %v8966_v41 = vsub.f32 %v13707_v15, %v8902_v58 }
0x1360   :  { %v8878_v33 = vpop.xlane.xlu1 %8877 }
0x1361   :  { %v8900_v8 = vmul.f32 0.03125, %v8878_v33  ;;  %v8951_v43 = vmul.f32 %v8903_v25, %v8903_v25  ;;  %v8967_v7 = vsub.f32 %v13713_v3, %v8903_v25 }
0x1362   :  { %v8881_v19 = vpop.xlane.xlu0 %8880 }
0x1363   :  { %v8901_v17 = vmul.f32 0.03125, %v8881_v19  ;;  %v8948_v23 = vmul.f32 %v8900_v8, %v8900_v8  ;;  %v8964_v49 = vsub.f32 %v13710_v45, %v8900_v8 }
0x1364   :  { %v8924_v42 = vpop.xlane.xlu1 %8923 }
0x1365   :  { %v8942_v63 = vmul.f32 0.03125, %v8924_v42  ;;  %v8949_v56 = vmul.f32 %v8901_v17, %v8901_v17  ;;  %v8965_v22 = vsub.f32 %v13718_v40, %v8901_v17 }
0x1366   :  { %v8927_v62 = vpop.xlane.xlu0 %8926 }
0x1367   :  { %v8958_v13 = vsub.f32 %v8942_v63, %v8950_v4  ;;  %v8943_v0 = vmul.f32 0.03125, %v8927_v62 }
0x1368   :  { %v8918_v31 = vpop.xlane.xlu1 %8917 }
0x1369   :  { %v8974_v26 = vadd.f32 1e-05, %v8958_v13  ;;  %v8959_v60 = vsub.f32 %v8943_v0, %v8951_v43  ;;  %v8940_v18 = vmul.f32 0.03125, %v8918_v31 }
0x136a   :  { %v8921_v50 = vpop.xlane.xlu0 %8920 }
0x136b   :  { %11018 = vrsqrt.f32 %v8974_v26  ;;  %v8975_v34 = vadd.f32 1e-05, %v8959_v60  ;;  %v8956_v61 = vsub.f32 %v8940_v18, %v8948_v23  ;;  %v8941_v2 = vmul.f32 0.03125, %v8921_v50 }
0x136d   :  { %11020 = vrsqrt.f32 %v8975_v34  ;;  %v8972_v11 = vadd.f32 1e-05, %v8956_v61  ;;  %v8957_v48 = vsub.f32 %v8941_v2, %v8949_v56 }
0x136f   :  { %11022 = vrsqrt.f32 %v8972_v11  ;;  %v8973_v55 = vadd.f32 1e-05, %v8957_v48 }
0x1371   :  { %11024 = vrsqrt.f32 %v8973_v55 }
0x1375   :  { %v11019_v54 = vpop.eup %11018 }
0x1376   :  { %v8990_v1 = vmul.f32 %v11019_v54, %v8966_v41 }
0x1377   :  { %v11021_v24 = vpop.eup %11020 }
0x1378   :  { %v9004_v36 = vmul.f32 %v13774_v38, %v8990_v1  ;;  %v8991_v15 = vmul.f32 %v11021_v24, %v8967_v7 }
0x1379   :  { %v11023_v29 = vpop.eup %11022 }
0x137a   :  { %v9018_v9 = vadd.f32 %v13780_v21, %v9004_v36  ;;  %v9005_v53 = vmul.f32 %v13774_v38, %v8991_v15  ;;  %v8988_v3 = vmul.f32 %v11023_v29, %v8964_v49 }
0x137b   :  { %v11025_v52 = vpop.eup %11024 }
0x137c   :  { %9026 = vst.msk [vmem:[%s13849_s13 + $0x10] sm:$0xff] %vm80_vm0, %v9018_v9  ;;  %v9019_v35 = vadd.f32 %v13780_v21, %v9005_v53  ;;  %v9002_v45 = vmul.f32 %v13774_v38, %v8988_v3  ;;  %v8989_v32 = vmul.f32 %v11025_v52, %v8965_v22 }
0x137e   :  { %9027 = vst.msk [vmem:[%s13849_s13 + $0x18] sm:$0xff] %vm80_vm0, %v9019_v35  ;;  %v9016_v40 = vadd.f32 %v13780_v21, %v9002_v45  ;;  %v9003_v47 = vmul.f32 %v13774_v38, %v8989_v32 }
0x1380   :  { %9024 = vst.msk [vmem:[%s13849_s13] sm:$0xff] %vm80_vm0, %v9016_v40  ;;  %v9017_v10 = vadd.f32 %v13780_v21, %v9003_v47 }
0x1382   :  { %9025 = vst.msk [vmem:[%s13849_s13 + $0x8] sm:$0xff] %vm80_vm0, %v9017_v10 }
0x1392   :  { %v8896_v14 = vpop.xlane.xlu1 %8895 }
0x1393   :  { %v8906_v46 = vmul.f32 0.03125, %v8896_v14 }
0x1394   :  { %v8899_v20 = vpop.xlane.xlu0 %8898 }
0x1395   :  { %v8907_v5 = vmul.f32 0.03125, %v8899_v20  ;;  %v8954_v42 = vmul.f32 %v8906_v46, %v8906_v46  ;;  %v8970_v61 = vsub.f32 %v13739_v57, %v8906_v46 }
0x1396   :  { %v8890_v6 = vpop.xlane.xlu1 %8889 }
0x1397   :  { %v8904_v12 = vmul.f32 0.03125, %v8890_v6  ;;  %v8955_v17 = vmul.f32 %v8907_v5, %v8907_v5  ;;  %v8971_v55 = vsub.f32 %v13745_v59, %v8907_v5 }
0x1398   :  { %v8893_v51 = vpop.xlane.xlu0 %8892 }
0x1399   :  { %v8905_v30 = vmul.f32 0.03125, %v8893_v51  ;;  %v8952_v16 = vmul.f32 %v8904_v12, %v8904_v12  ;;  %v8968_v60 = vsub.f32 %v13742_v27, %v8904_v12 }
0x139a   :  { %v8930_v37 = vpop.xlane.xlu1 %8929 }
0x139b   :  { %v8944_v44 = vmul.f32 0.03125, %v8930_v37  ;;  %v8953_v33 = vmul.f32 %v8905_v30, %v8905_v30  ;;  %v8969_v56 = vsub.f32 %v13750_v39, %v8905_v30 }
0x139c   :  { %v8933_v28 = vpop.xlane.xlu0 %8932 }
0x139d   :  { %v8960_v58 = vsub.f32 %v8944_v44, %v8952_v16  ;;  %v8945_v19 = vmul.f32 0.03125, %v8933_v28 }
0x139e   :  { %v8936_v25 = vpop.xlane.xlu1 %8935 }
0x139f   :  { %v8976_v4 = vadd.f32 1e-05, %v8960_v58  ;;  %v8961_v8 = vsub.f32 %v8945_v19, %v8953_v33  ;;  %v8946_v63 = vmul.f32 0.03125, %v8936_v25 }
0x13a0   :  { %v8939_v62 = vpop.xlane.xlu0 %8938 }
0x13a1   :  { %11026 = vrsqrt.f32 %v8976_v4  ;;  %v8977_v43 = vadd.f32 1e-05, %v8961_v8  ;;  %v8962_v13 = vsub.f32 %v8946_v63, %v8954_v42  ;;  %v8947_v0 = vmul.f32 0.03125, %v8939_v62 }
0x13a3   :  { %11028 = vrsqrt.f32 %v8977_v43  ;;  %v8978_v31 = vadd.f32 1e-05, %v8962_v13  ;;  %v8963_v23 = vsub.f32 %v8947_v0, %v8955_v17 }
0x13a5   :  { %11030 = vrsqrt.f32 %v8978_v31  ;;  %v8979_v26 = vadd.f32 1e-05, %v8963_v23 }
0x13a7   :  { %11032 = vrsqrt.f32 %v8979_v26 }
0x13ab   :  { %v11027_v18 = vpop.eup %11026 }
0x13ac   :  { %v8992_v50 = vmul.f32 %v11027_v18, %v8968_v60 }
0x13ad   :  { %v11029_v34 = vpop.eup %11028 }
0x13ae   :  { %v9006_v2 = vmul.f32 %v13774_v38, %v8992_v50  ;;  %v8993_v11 = vmul.f32 %v11029_v34, %v8969_v56 }
0x13af   :  { %v11031_v48 = vpop.eup %11030 }
0x13b0   :  { %v9020_v41 = vadd.f32 %v13780_v21, %v9006_v2  ;;  %v9007_v54 = vmul.f32 %v13774_v38, %v8993_v11  ;;  %v8994_v7 = vmul.f32 %v11031_v48, %v8970_v61 }
0x13b1   :  { %v11033_v1 = vpop.eup %11032 }
0x13b2   :  { %9028 = vst.msk [vmem:[%s13849_s13 + $0x20] sm:$0xff] %vm80_vm0, %v9020_v41  ;;  %v9021_v27 = vadd.f32 %v13780_v21, %v9007_v54  ;;  %v9008_v57 = vmul.f32 %v13774_v38, %v8994_v7  ;;  %v8995_v39 = vmul.f32 %v11033_v1, %v8971_v55 }
0x13b4   :  { %9029 = vst.msk [vmem:[%s13849_s13 + $0x28] sm:$0xff] %vm80_vm0, %v9021_v27  ;;  %v9022_v59 = vadd.f32 %v13780_v21, %v9008_v57  ;;  %v9009_v24 = vmul.f32 %v13774_v38, %v8995_v39 }
0x13b6   :  { %9030 = vst.msk [vmem:[%s13849_s13 + $0x30] sm:$0xff] %vm80_vm0, %v9022_v59  ;;  %v9023_v49 = vadd.f32 %v13780_v21, %v9009_v24 }
0x13b8   :  { %9031 = vst.msk [vmem:[%s13849_s13 + $0x38] sm:$0xff] %vm80_vm0, %v9023_v49 }

</bundles_post_ra>
